<compile_context>
chip_gen: v7x
topology: tpu7x:2x2x1
jax: 0.10.0
libtpu: 0.0.40
codegen_flags: <defaults>
</compile_context>

<pallas_src>
import functools

import numpy as np

import jax
import jax.numpy as jnp
from jax.experimental import pallas as pl
from jax.experimental.pallas import tpu as pltpu


def _round_up(x, m):
    return ((x + m - 1) // m) * m


# ----------------------------------------------------------------------------
# Fused kernel: conv1 -> conv2 -> flatten -> FC(+ReLU) -> fused heads
# ----------------------------------------------------------------------------
def _encoder_kernel(cols1_ref, w1_ref, b1_ref, mask_ref, w2_ref, b2_ref,
                    wfc_ref, bfc_ref, wh_ref, bh_ref, out_ref, fc_ref, *, tb):
    f32 = jnp.float32
    bf16 = jnp.bfloat16

    # ---- conv1 as ONE matmul on the space-to-depth block grid --------------
    # rows ordered (block rc = r*8+c, image n); 36 cols = 6x6 input patch.
    cols1 = cols1_ref[...].reshape(64 * tb, 36)                    # bf16
    s = jnp.dot(cols1, w1_ref[...], preferred_element_type=f32)    # (64*tb,128)
    s = jnp.maximum(s + b1_ref[...], 0.0)
    # zero the pad ring of conv2's zero-padded 16x16 input
    s = s.reshape(64, tb, 128) * mask_ref[...]
    s = s.reshape(64 * tb, 128).astype(bf16)

    # ---- conv2 = 4 shifted partial matmuls, accumulated in place -----------
    y2 = None
    for a in range(2):
        for b in range(2):
            pm = jnp.dot(s, w2_ref[2 * a + b], preferred_element_type=f32)
            pm = pm.reshape(8, 8, tb, 64)[a:a + 7, b:b + 7]        # (7,7,tb,64)
            y2 = pm if y2 is None else y2 + pm
    y2 = jnp.maximum(y2 + b2_ref[...].reshape(1, 1, 1, 64), 0.0).astype(bf16)

    # Dropout(0.2): inference-mode identity.
    # ---- flatten (oh, ow, channel) into the bf16 scratch -------------------
    # lane-dense stores: 24 x 128-wide slabs + one trailing 64-wide store.
    for p in range(24):
        s0, s1 = 2 * p, 2 * p + 1
        pair = jnp.concatenate(
            [y2[s0 // 7, s0 % 7], y2[s1 // 7, s1 % 7]], axis=-1)   # (tb, 128)
        fc_ref[:, s0 * 64:(s0 + 2) * 64] = pair
    fc_ref[:, 48 * 64:49 * 64] = y2[6, 6]

    # ---- FC 3136->128 (+ReLU) and fused, lane-padded mu/log_var heads ------
    h = jnp.dot(fc_ref[...], wfc_ref[...], preferred_element_type=f32)
    h = jnp.maximum(h + bfc_ref[...], 0.0)                         # (tb, 128)
    o = jnp.dot(h.astype(bf16), wh_ref[...], preferred_element_type=f32)
    out_ref[...] = (o + bh_ref[...]).astype(out_ref.dtype)


# ----------------------------------------------------------------------------
# Wrapper-side glue: conv1 block-im2col + one-time weight repacking
# ----------------------------------------------------------------------------
def _conv1_block_cols(x_nchw):
    """Block im2col for conv1: (64, N, 36) f32.

    Row-block rc = r*8+c is the 2x2 output block whose top-left sits at
    coordinate (2r, 2c) of conv2's zero-padded 16x16 input grid; the 36
    columns are the 6x6 input patch (di*6+dj) feeding that block.
    """
    x = x_nchw[:, 0].astype(jnp.float32)                   # (N, 28, 28)
    xp = jnp.pad(x, ((0, 0), (3, 3), (3, 3)))              # (N, 34, 34)
    patches = [xp[:, di:di + 29:4, dj:dj + 29:4]           # (N, 8, 8) each
               for di in range(6) for dj in range(6)]
    cols = jnp.stack(patches, axis=-1).reshape(x.shape[0], 64, 36)
    return jnp.transpose(cols, (1, 0, 2))                  # (64, N, 36)


def _conv2_pad_mask():
    """(64, 1, 128) {0,1} mask zeroing conv2's zero-padding ring."""
    m = np.ones((8, 8, 2, 2, 32), np.float32)              # (r, c, p, q, ch)
    m[0, :, 0, :, :] = 0.0    # padded row 0
    m[7, :, 1, :, :] = 0.0    # padded row 15
    m[:, 0, :, 0, :] = 0.0    # padded col 0
    m[:, 7, :, 1, :] = 0.0    # padded col 15
    return jnp.asarray(m.reshape(64, 1, 128))


def _const_spec(shape):
    """Grid-invariant (VMEM-resident) input: no re-DMA, no double buffer."""
    nd = len(shape)
    return pl.BlockSpec(shape, lambda i: (0,) * nd,
                        pipeline_mode=pl.Buffered(1))


def lvae_encoder_forward(params, x_nchw, *, batch_tile=128):
    assert x_nchw.shape[1:] == (1, 28, 28), x_nchw.shape
    N = x_nchw.shape[0]
    L = params["wemb"].shape[1]
    head_w = max(128, _round_up(2 * L, 128))

    # Batch tile: multiple of 16 (bf16 sublane tiling), clamped to the batch,
    # halved if it would leave a single grid step (keep both v7x TCs busy).
    tb = max(16, min(_round_up(batch_tile, 16), _round_up(N, 16)))
    n_pad = _round_up(N, tb)
    if n_pad // tb < 2 and tb >= 32:
        tb = _round_up(tb // 2, 16)
        n_pad = _round_up(N, tb)

    f32, bf16 = jnp.float32, jnp.bfloat16

    # per-batch input: conv1 block im2col, streamed as bf16
    cols1 = _conv1_block_cols(x_nchw)                      # (64, N, 36) f32
    if n_pad != N:
        cols1 = jnp.pad(cols1, ((0, 0), (0, n_pad - N), (0, 0)))
    cols1 = cols1.astype(bf16)                             # (64, n_pad, 36)

    # conv1 weight in block form: (36, 128) = (6x6 patch) -> (p, q, ch)
    w1 = params["w1"].astype(f32)                          # (32, 1, 4, 4) OIHW
    w1t = jnp.transpose(w1[:, 0], (1, 2, 0))               # (i, j, ch)
    w1b = jnp.zeros((6, 6, 2, 2, 32), f32)                 # (di, dj, p, q, ch)
    for p in range(2):
        for q in range(2):
            w1b = w1b.at[2 * p:2 * p + 4, 2 * q:2 * q + 4, p, q, :].set(w1t)
    w1b = w1b.reshape(36, 128).astype(bf16)
    b1t = jnp.tile(params["b1"].astype(f32), 4).reshape(1, 128)

    mask = _conv2_pad_mask()

    # conv2 weight as 4 shifted (128, 64) matrices indexed by (a, b)
    w2 = params["w2"].astype(f32)                          # (64, 32, 4, 4) OIHW
    w2r = jnp.transpose(w2, (2, 3, 1, 0)).reshape(2, 2, 2, 2, 32, 64)  # (a,p,b,q,ci,co)
    w2ab = jnp.transpose(w2r, (0, 2, 1, 3, 4, 5)).reshape(4, 128, 64).astype(bf16)
    b2 = params["b2"].astype(f32).reshape(1, 64)

    # fold PyTorch channel-major Flatten into the FC weight (rows -> (oh,ow,c))
    wfc = params["wfc"].astype(f32).reshape(64, 7, 7, 128)           # (c, oh, ow, k)
    wfcp = jnp.transpose(wfc, (1, 2, 0, 3)).reshape(49 * 64, 128).astype(bf16)
    bfc = params["bfc"].astype(f32).reshape(1, 128)

    # fuse mu / log_var heads into one lane-dense matmul
    wh = jnp.zeros((128, head_w), f32)
    wh = wh.at[:, :L].set(params["wemb"].astype(f32))
    wh = wh.at[:, L:2 * L].set(params["wlv"].astype(f32))
    wh = wh.astype(bf16)
    bh = jnp.zeros((1, head_w), f32)
    bh = bh.at[0, :L].set(params["bemb"].astype(f32))
    bh = bh.at[0, L:2 * L].set(params["blv"].astype(f32))

    flops_per_img = (2 * 64 * 36 * 128 + 4 * 2 * 64 * 128 * 64
                     + 2 * 3136 * 128 + 2 * 128 * head_w)
    bytes_acc = (cols1.size * 2 + n_pad * head_w * 4
                 + (w1b.size + w2ab.size + wfcp.size + wh.size) * 2
                 + (b1t.size + b2.size + bfc.size + bh.size + mask.size) * 4)

    out = pl.pallas_call(
        functools.partial(_encoder_kernel, tb=tb),
        out_shape=jax.ShapeDtypeStruct((n_pad, head_w), f32),
        grid=(n_pad // tb,),
        in_specs=[
            pl.BlockSpec((64, tb, 36), lambda i: (0, i, 0)),    # conv1 cols (streamed)
            _const_spec((36, 128)),                             # w1 (block form)
            _const_spec((1, 128)),                              # b1 (tiled x4)
            _const_spec((64, 1, 128)),                          # conv2 pad mask
            _const_spec((4, 128, 64)),                          # w2 (4 shifts)
            _const_spec((1, 64)),                               # b2
            _const_spec((49 * 64, 128)),                        # wfc (permuted)
            _const_spec((1, 128)),                              # bfc
            _const_spec((128, head_w)),                         # fused head W
            _const_spec((1, head_w)),                           # fused head b
        ],
        out_specs=pl.BlockSpec((tb, head_w), lambda i: (i, 0)),
        scratch_shapes=[pltpu.VMEM((tb, 49 * 64), bf16)],
        compiler_params=pltpu.CompilerParams(
            dimension_semantics=("parallel",),
            vmem_limit_bytes=48 * 1024 * 1024),
        cost_estimate=pl.CostEstimate(
            flops=flops_per_img * n_pad,
            transcendentals=0,
            bytes_accessed=int(bytes_acc)),
    )(cols1, w1b, b1t, mask, w2ab, b2, wfcp, bfc, wh, bh)

    mu = out[:N, :L]
    log_var = out[:N, L:2 * L]
    return mu, log_var


# ----------------------------------------------------------------------------
# References (f32 and bf16-operand) mirroring the PyTorch module
# ----------------------------------------------------------------------------
def _reference_forward(params, x_nchw):
    hi = jax.lax.Precision.HIGHEST
    dn = ("NCHW", "OIHW", "NCHW")
    y = jax.lax.conv_general_dilated(
        x_nchw, params["w1"], window_strides=(2, 2), padding=((1, 1), (1, 1)),
        dimension_numbers=dn, precision=hi)
    y = jnp.maximum(y + params["b1"].reshape(1, -1, 1, 1), 0.0)
    y = jax.lax.conv_general_dilated(
        y, params["w2"], window_strides=(2, 2), padding=((1, 1), (1, 1)),
        dimension_numbers=dn, precision=hi)
    y = jnp.maximum(y + params["b2"].reshape(1, -1, 1, 1), 0.0)
    flat = y.reshape(y.shape[0], -1)                       # channel-major flatten
    h = jnp.maximum(jnp.dot(flat, params["wfc"], precision=hi) + params["bfc"], 0.0)
    mu = jnp.dot(h, params["wemb"], precision=hi) + params["bemb"]
    log_var = jnp.dot(h, params["wlv"], precision=hi) + params["blv"]
    return mu, log_var


def _reference_forward_bf16(params, x_nchw):
    """Matches the kernel's bf16-operand / f32-accumulate rounding points."""
    f32, bf16 = jnp.float32, jnp.bfloat16
    dn = ("NCHW", "OIHW", "NCHW")
    y = jax.lax.conv_general_dilated(
        x_nchw.astype(bf16), params["w1"].astype(bf16), window_strides=(2, 2),
        padding=((1, 1), (1, 1)), dimension_numbers=dn,
        preferred_element_type=f32)
    y = jnp.maximum(y + params["b1"].reshape(1, -1, 1, 1), 0.0)
    y = jax.lax.conv_general_dilated(
        y.astype(bf16), params["w2"].astype(bf16), window_strides=(2, 2),
        padding=((1, 1), (1, 1)), dimension_numbers=dn,
        preferred_element_type=f32)
    y = jnp.maximum(y + params["b2"].reshape(1, -1, 1, 1), 0.0)
    flat = y.astype(bf16).reshape(y.shape[0], -1)
    h = jnp.dot(flat, params["wfc"].astype(bf16), preferred_element_type=f32)
    h = jnp.maximum(h + params["bfc"], 0.0).astype(bf16)
    mu = jnp.dot(h, params["wemb"].astype(bf16),
                 preferred_element_type=f32) + params["bemb"]
    log_var = jnp.dot(h, params["wlv"].astype(bf16),
                      preferred_element_type=f32) + params["blv"]
    return mu, log_var


def init_params(latent_dim, key):
    ks = jax.random.split(key, 10)

    def normal(k, shape, scale=0.05):
        return (scale * jax.random.normal(k, shape)).astype(jnp.float32)

    return {
        "w1": normal(ks[0], (32, 1, 4, 4)),     # Conv2d(1, 32, k=4, s=2, p=1)
        "b1": normal(ks[1], (32,)),
        "w2": normal(ks[2], (64, 32, 4, 4)),    # Conv2d(32, 64, k=4, s=2, p=1)
        "b2": normal(ks[3], (64,)),
        "wfc": normal(ks[4], (64 * 7 * 7, 128)),  # Linear(3136, 128), (in, out)
        "bfc": normal(ks[5], (128,)),
        "wemb": normal(ks[6], (128, latent_dim)),
        "bemb": normal(ks[7], (latent_dim,)),
        "wlv": normal(ks[8], (128, latent_dim)),
        "blv": normal(ks[9], (latent_dim,)),
    }


if __name__ == "__main__":
    latent_dim = 16
    key = jax.random.PRNGKey(0)
    k_param, k_x = jax.random.split(key)

    params = init_params(latent_dim, k_param)
    # MNIST-shaped input (the 64*7*7 Linear pins spatial size to 28x28, C=1)
    x = jax.random.normal(k_x, (2, 1, 28, 28), dtype=jnp.float32)

    fwd = jax.jit(lvae_encoder_forward)
    mu, log_var = fwd(params, x)
    jax.block_until_ready((mu, log_var))

    assert mu.shape == (2, latent_dim) and log_var.shape == (2, latent_dim)
    assert mu.dtype == jnp.float32 and log_var.dtype == jnp.float32

    # Loose check vs the pure-f32 XLA reference (bf16 matmul operands)
    mu_ref, lv_ref = jax.jit(_reference_forward)(params, x)
    np.testing.assert_allclose(np.asarray(mu), np.asarray(mu_ref),
                               rtol=1e-1, atol=5e-2)
    np.testing.assert_allclose(np.asarray(log_var), np.asarray(lv_ref),
                               rtol=1e-1, atol=5e-2)

    # Tight check vs a bf16-operand / f32-accumulate reference
    mu_bf, lv_bf = jax.jit(_reference_forward_bf16)(params, x)
    np.testing.assert_allclose(np.asarray(mu), np.asarray(mu_bf),
                               rtol=2e-2, atol=2e-3)
    np.testing.assert_allclose(np.asarray(log_var), np.asarray(lv_bf),
                               rtol=2e-2, atol=2e-3)

    # Exercise the default large-tile path (tb=128, grid=2) on a bigger batch.
    x_big = jax.random.normal(jax.random.PRNGKey(1), (256, 1, 28, 28),
                              dtype=jnp.float32)
    mu_b, lv_b = fwd(params, x_big)
    jax.block_until_ready((mu_b, lv_b))
    mu_bref, lv_bref = jax.jit(_reference_forward_bf16)(params, x_big)
    np.testing.assert_allclose(np.asarray(mu_b), np.asarray(mu_bref),
                               rtol=2e-2, atol=2e-3)
    np.testing.assert_allclose(np.asarray(lv_b), np.asarray(lv_bref),
                               rtol=2e-2, atol=2e-3)

    print("KERNEL_OK")
</pallas_src>

<mosaic_0001>
module attributes {stable_mosaic.version = 11 : i64} {
  func.func @_encoder_kernel(%arg0: i32, %arg1: memref<64x16x36xbf16, #tpu.memory_space<vmem>>, %arg2: memref<36x128xbf16, #tpu.memory_space<vmem>>, %arg3: memref<1x128xf32, #tpu.memory_space<vmem>>, %arg4: memref<64x1x128xf32, #tpu.memory_space<vmem>>, %arg5: memref<4x128x64xbf16, #tpu.memory_space<vmem>>, %arg6: memref<1x64xf32, #tpu.memory_space<vmem>>, %arg7: memref<3136x128xbf16, #tpu.memory_space<vmem>>, %arg8: memref<1x128xf32, #tpu.memory_space<vmem>>, %arg9: memref<128x128xbf16, #tpu.memory_space<vmem>>, %arg10: memref<1x128xf32, #tpu.memory_space<vmem>>, %arg11: memref<16x128xf32, #tpu.memory_space<vmem>>, %arg12: memref<16x3136xbf16, #tpu.memory_space<vmem>>) attributes {dimension_semantics = [#tpu.dimension_semantics<parallel>], iteration_bounds = array<i64: 1>, scalar_prefetch = 0 : i64, scratch_operands = 1 : i64, tpu.core_type = #tpu.core_type<tc>, window_params = [{transform_indices = @transform_0, window_bounds = array<i64: 64, 16, 36>}, {pipeline_mode = #tpu.pipeline_mode<synchronous>, transform_indices = @transform_1, window_bounds = array<i64: 36, 128>}, {pipeline_mode = #tpu.pipeline_mode<synchronous>, transform_indices = @transform_2, window_bounds = array<i64: 1, 128>}, {pipeline_mode = #tpu.pipeline_mode<synchronous>, transform_indices = @transform_3, window_bounds = array<i64: 64, 1, 128>}, {pipeline_mode = #tpu.pipeline_mode<synchronous>, transform_indices = @transform_4, window_bounds = array<i64: 4, 128, 64>}, {pipeline_mode = #tpu.pipeline_mode<synchronous>, transform_indices = @transform_5, window_bounds = array<i64: 1, 64>}, {pipeline_mode = #tpu.pipeline_mode<synchronous>, transform_indices = @transform_6, window_bounds = array<i64: 3136, 128>}, {pipeline_mode = #tpu.pipeline_mode<synchronous>, transform_indices = @transform_7, window_bounds = array<i64: 1, 128>}, {pipeline_mode = #tpu.pipeline_mode<synchronous>, transform_indices = @transform_8, window_bounds = array<i64: 128, 128>}, {pipeline_mode = #tpu.pipeline_mode<synchronous>, transform_indices = @transform_9, window_bounds = array<i64: 1, 128>}, {transform_indices = @transform_10, window_bounds = array<i64: 16, 128>}]} {
    %c0 = arith.constant 0 : index
    %c0_0 = arith.constant 0 : index
    %c0_1 = arith.constant 0 : index
    %0 = vector.load %arg1[%c0, %c0_0, %c0_1] : memref<64x16x36xbf16, #tpu.memory_space<vmem>>, vector<64x16x36xbf16>
    %1 = vector.shape_cast %0 : vector<64x16x36xbf16> to vector<1024x36xbf16>
    %c0_2 = arith.constant 0 : index
    %c0_3 = arith.constant 0 : index
    %2 = vector.load %arg2[%c0_2, %c0_3] : memref<36x128xbf16, #tpu.memory_space<vmem>>, vector<36x128xbf16>
    %cst = arith.constant dense<0.000000e+00> : vector<1024x128xf32>
    %3 = tpu.matmul %1, %2, %cst {dimension_numbers = #tpu.dot_dimension_numbers<[1], [0], [0], [1], [0, 0, 1, 1], [], []>} : vector<1024x36xbf16>, vector<36x128xbf16>, vector<1024x128xf32> -> vector<1024x128xf32>
    %c0_4 = arith.constant 0 : index
    %c0_5 = arith.constant 0 : index
    %4 = vector.load %arg3[%c0_4, %c0_5] : memref<1x128xf32, #tpu.memory_space<vmem>>, vector<1x128xf32>
    %5 = vector.broadcast %4 : vector<1x128xf32> to vector<1024x128xf32>
    %6 = arith.addf %3, %5 : vector<1024x128xf32>
    %cst_6 = arith.constant 0.000000e+00 : f32
    %7 = vector.broadcast %cst_6 : f32 to vector<1024x128xf32>
    %8 = arith.maximumf %6, %7 : vector<1024x128xf32>
    %9 = vector.shape_cast %8 : vector<1024x128xf32> to vector<64x16x128xf32>
    %c0_7 = arith.constant 0 : index
    %c0_8 = arith.constant 0 : index
    %c0_9 = arith.constant 0 : index
    %10 = vector.load %arg4[%c0_7, %c0_8, %c0_9] : memref<64x1x128xf32, #tpu.memory_space<vmem>>, vector<64x1x128xf32>
    %11 = vector.broadcast %10 : vector<64x1x128xf32> to vector<64x16x128xf32>
    %12 = arith.mulf %9, %11 : vector<64x16x128xf32>
    %13 = vector.shape_cast %12 : vector<64x16x128xf32> to vector<1024x128xf32>
    %14 = arith.truncf %13 : vector<1024x128xf32> to vector<1024x128xbf16>
    %c0_10 = arith.constant 0 : index
    %c0_11 = arith.constant 0 : index
    %c0_12 = arith.constant 0 : index
    %15 = vector.load %arg5[%c0_10, %c0_11, %c0_12] : memref<4x128x64xbf16, #tpu.memory_space<vmem>>, vector<1x128x64xbf16>
    %16 = vector.shape_cast %15 : vector<1x128x64xbf16> to vector<128x64xbf16>
    %cst_13 = arith.constant dense<0.000000e+00> : vector<1024x64xf32>
    %17 = tpu.matmul %14, %16, %cst_13 {dimension_numbers = #tpu.dot_dimension_numbers<[1], [0], [0], [1], [0, 0, 1, 1], [], []>} : vector<1024x128xbf16>, vector<128x64xbf16>, vector<1024x64xf32> -> vector<1024x64xf32>
    %18 = vector.shape_cast %17 : vector<1024x64xf32> to vector<8x8x16x64xf32>
    %19 = vector.extract_strided_slice %18 {offsets = [0, 0, 0, 0], sizes = [7, 7, 16, 64], strides = [1, 1, 1, 1]} : vector<8x8x16x64xf32> to vector<7x7x16x64xf32>
    %c1 = arith.constant 1 : index
    %c0_14 = arith.constant 0 : index
    %c0_15 = arith.constant 0 : index
    %20 = vector.load %arg5[%c1, %c0_14, %c0_15] : memref<4x128x64xbf16, #tpu.memory_space<vmem>>, vector<1x128x64xbf16>
    %21 = vector.shape_cast %20 : vector<1x128x64xbf16> to vector<128x64xbf16>
    %cst_16 = arith.constant dense<0.000000e+00> : vector<1024x64xf32>
    %22 = tpu.matmul %14, %21, %cst_16 {dimension_numbers = #tpu.dot_dimension_numbers<[1], [0], [0], [1], [0, 0, 1, 1], [], []>} : vector<1024x128xbf16>, vector<128x64xbf16>, vector<1024x64xf32> -> vector<1024x64xf32>
    %23 = vector.shape_cast %22 : vector<1024x64xf32> to vector<8x8x16x64xf32>
    %24 = vector.extract_strided_slice %23 {offsets = [0, 1, 0, 0], sizes = [7, 7, 16, 64], strides = [1, 1, 1, 1]} : vector<8x8x16x64xf32> to vector<7x7x16x64xf32>
    %25 = arith.addf %19, %24 : vector<7x7x16x64xf32>
    %c2 = arith.constant 2 : index
    %c0_17 = arith.constant 0 : index
    %c0_18 = arith.constant 0 : index
    %26 = vector.load %arg5[%c2, %c0_17, %c0_18] : memref<4x128x64xbf16, #tpu.memory_space<vmem>>, vector<1x128x64xbf16>
    %27 = vector.shape_cast %26 : vector<1x128x64xbf16> to vector<128x64xbf16>
    %cst_19 = arith.constant dense<0.000000e+00> : vector<1024x64xf32>
    %28 = tpu.matmul %14, %27, %cst_19 {dimension_numbers = #tpu.dot_dimension_numbers<[1], [0], [0], [1], [0, 0, 1, 1], [], []>} : vector<1024x128xbf16>, vector<128x64xbf16>, vector<1024x64xf32> -> vector<1024x64xf32>
    %29 = vector.shape_cast %28 : vector<1024x64xf32> to vector<8x8x16x64xf32>
    %30 = vector.extract_strided_slice %29 {offsets = [1, 0, 0, 0], sizes = [7, 7, 16, 64], strides = [1, 1, 1, 1]} : vector<8x8x16x64xf32> to vector<7x7x16x64xf32>
    %31 = arith.addf %25, %30 : vector<7x7x16x64xf32>
    %c3 = arith.constant 3 : index
    %c0_20 = arith.constant 0 : index
    %c0_21 = arith.constant 0 : index
    %32 = vector.load %arg5[%c3, %c0_20, %c0_21] : memref<4x128x64xbf16, #tpu.memory_space<vmem>>, vector<1x128x64xbf16>
    %33 = vector.shape_cast %32 : vector<1x128x64xbf16> to vector<128x64xbf16>
    %cst_22 = arith.constant dense<0.000000e+00> : vector<1024x64xf32>
    %34 = tpu.matmul %14, %33, %cst_22 {dimension_numbers = #tpu.dot_dimension_numbers<[1], [0], [0], [1], [0, 0, 1, 1], [], []>} : vector<1024x128xbf16>, vector<128x64xbf16>, vector<1024x64xf32> -> vector<1024x64xf32>
    %35 = vector.shape_cast %34 : vector<1024x64xf32> to vector<8x8x16x64xf32>
    %36 = vector.extract_strided_slice %35 {offsets = [1, 1, 0, 0], sizes = [7, 7, 16, 64], strides = [1, 1, 1, 1]} : vector<8x8x16x64xf32> to vector<7x7x16x64xf32>
    %37 = arith.addf %31, %36 : vector<7x7x16x64xf32>
    %c0_23 = arith.constant 0 : index
    %c0_24 = arith.constant 0 : index
    %38 = vector.load %arg6[%c0_23, %c0_24] : memref<1x64xf32, #tpu.memory_space<vmem>>, vector<1x64xf32>
    %39 = vector.shape_cast %38 : vector<1x64xf32> to vector<1x1x1x64xf32>
    %40 = vector.broadcast %39 : vector<1x1x1x64xf32> to vector<7x7x16x64xf32>
    %41 = arith.addf %37, %40 : vector<7x7x16x64xf32>
    %cst_25 = arith.constant 0.000000e+00 : f32
    %42 = vector.broadcast %cst_25 : f32 to vector<7x7x16x64xf32>
    %43 = arith.maximumf %41, %42 : vector<7x7x16x64xf32>
    %44 = arith.truncf %43 : vector<7x7x16x64xf32> to vector<7x7x16x64xbf16>
    %45 = vector.extract_strided_slice %44 {offsets = [0, 0, 0, 0], sizes = [1, 1, 16, 64], strides = [1, 1, 1, 1]} : vector<7x7x16x64xbf16> to vector<1x1x16x64xbf16>
    %46 = vector.shape_cast %45 : vector<1x1x16x64xbf16> to vector<16x64xbf16>
    %47 = vector.extract_strided_slice %44 {offsets = [0, 1, 0, 0], sizes = [1, 1, 16, 64], strides = [1, 1, 1, 1]} : vector<7x7x16x64xbf16> to vector<1x1x16x64xbf16>
    %48 = vector.shape_cast %47 : vector<1x1x16x64xbf16> to vector<16x64xbf16>
    %49 = tpu.concatenate %46, %48 in 1 : vector<16x64xbf16>, vector<16x64xbf16> -> vector<16x128xbf16>
    %c0_26 = arith.constant 0 : index
    %c0_27 = arith.constant 0 : index
    %50 = vector.load %arg12[%c0_26, %c0_27] : memref<16x3136xbf16, #tpu.memory_space<vmem>>, vector<16x128xbf16>
    tpu.vector_store %arg12[%c0_26, %c0_27], %49 {strides = array<i32>} : memref<16x3136xbf16, #tpu.memory_space<vmem>>, vector<16x128xbf16>,
    %51 = vector.extract_strided_slice %44 {offsets = [0, 2, 0, 0], sizes = [1, 1, 16, 64], strides = [1, 1, 1, 1]} : vector<7x7x16x64xbf16> to vector<1x1x16x64xbf16>
    %52 = vector.shape_cast %51 : vector<1x1x16x64xbf16> to vector<16x64xbf16>
    %53 = vector.extract_strided_slice %44 {offsets = [0, 3, 0, 0], sizes = [1, 1, 16, 64], strides = [1, 1, 1, 1]} : vector<7x7x16x64xbf16> to vector<1x1x16x64xbf16>
    %54 = vector.shape_cast %53 : vector<1x1x16x64xbf16> to vector<16x64xbf16>
    %55 = tpu.concatenate %52, %54 in 1 : vector<16x64xbf16>, vector<16x64xbf16> -> vector<16x128xbf16>
    %c0_28 = arith.constant 0 : index
    %c128 = arith.constant 128 : index
    %56 = vector.load %arg12[%c0_28, %c128] : memref<16x3136xbf16, #tpu.memory_space<vmem>>, vector<16x128xbf16>
    tpu.vector_store %arg12[%c0_28, %c128], %55 {strides = array<i32>} : memref<16x3136xbf16, #tpu.memory_space<vmem>>, vector<16x128xbf16>,
    %57 = vector.extract_strided_slice %44 {offsets = [0, 4, 0, 0], sizes = [1, 1, 16, 64], strides = [1, 1, 1, 1]} : vector<7x7x16x64xbf16> to vector<1x1x16x64xbf16>
    %58 = vector.shape_cast %57 : vector<1x1x16x64xbf16> to vector<16x64xbf16>
    %59 = vector.extract_strided_slice %44 {offsets = [0, 5, 0, 0], sizes = [1, 1, 16, 64], strides = [1, 1, 1, 1]} : vector<7x7x16x64xbf16> to vector<1x1x16x64xbf16>
    %60 = vector.shape_cast %59 : vector<1x1x16x64xbf16> to vector<16x64xbf16>
    %61 = tpu.concatenate %58, %60 in 1 : vector<16x64xbf16>, vector<16x64xbf16> -> vector<16x128xbf16>
    %c0_29 = arith.constant 0 : index
    %c256 = arith.constant 256 : index
    %62 = vector.load %arg12[%c0_29, %c256] : memref<16x3136xbf16, #tpu.memory_space<vmem>>, vector<16x128xbf16>
    tpu.vector_store %arg12[%c0_29, %c256], %61 {strides = array<i32>} : memref<16x3136xbf16, #tpu.memory_space<vmem>>, vector<16x128xbf16>,
    %63 = vector.extract_strided_slice %44 {offsets = [0, 6, 0, 0], sizes = [1, 1, 16, 64], strides = [1, 1, 1, 1]} : vector<7x7x16x64xbf16> to vector<1x1x16x64xbf16>
    %64 = vector.shape_cast %63 : vector<1x1x16x64xbf16> to vector<16x64xbf16>
    %65 = vector.extract_strided_slice %44 {offsets = [1, 0, 0, 0], sizes = [1, 1, 16, 64], strides = [1, 1, 1, 1]} : vector<7x7x16x64xbf16> to vector<1x1x16x64xbf16>
    %66 = vector.shape_cast %65 : vector<1x1x16x64xbf16> to vector<16x64xbf16>
    %67 = tpu.concatenate %64, %66 in 1 : vector<16x64xbf16>, vector<16x64xbf16> -> vector<16x128xbf16>
    %c0_30 = arith.constant 0 : index
    %c384 = arith.constant 384 : index
    %68 = vector.load %arg12[%c0_30, %c384] : memref<16x3136xbf16, #tpu.memory_space<vmem>>, vector<16x128xbf16>
    tpu.vector_store %arg12[%c0_30, %c384], %67 {strides = array<i32>} : memref<16x3136xbf16, #tpu.memory_space<vmem>>, vector<16x128xbf16>,
    %69 = vector.extract_strided_slice %44 {offsets = [1, 1, 0, 0], sizes = [1, 1, 16, 64], strides = [1, 1, 1, 1]} : vector<7x7x16x64xbf16> to vector<1x1x16x64xbf16>
    %70 = vector.shape_cast %69 : vector<1x1x16x64xbf16> to vector<16x64xbf16>
    %71 = vector.extract_strided_slice %44 {offsets = [1, 2, 0, 0], sizes = [1, 1, 16, 64], strides = [1, 1, 1, 1]} : vector<7x7x16x64xbf16> to vector<1x1x16x64xbf16>
    %72 = vector.shape_cast %71 : vector<1x1x16x64xbf16> to vector<16x64xbf16>
    %73 = tpu.concatenate %70, %72 in 1 : vector<16x64xbf16>, vector<16x64xbf16> -> vector<16x128xbf16>
    %c0_31 = arith.constant 0 : index
    %c512 = arith.constant 512 : index
    %74 = vector.load %arg12[%c0_31, %c512] : memref<16x3136xbf16, #tpu.memory_space<vmem>>, vector<16x128xbf16>
    tpu.vector_store %arg12[%c0_31, %c512], %73 {strides = array<i32>} : memref<16x3136xbf16, #tpu.memory_space<vmem>>, vector<16x128xbf16>,
    %75 = vector.extract_strided_slice %44 {offsets = [1, 3, 0, 0], sizes = [1, 1, 16, 64], strides = [1, 1, 1, 1]} : vector<7x7x16x64xbf16> to vector<1x1x16x64xbf16>
    %76 = vector.shape_cast %75 : vector<1x1x16x64xbf16> to vector<16x64xbf16>
    %77 = vector.extract_strided_slice %44 {offsets = [1, 4, 0, 0], sizes = [1, 1, 16, 64], strides = [1, 1, 1, 1]} : vector<7x7x16x64xbf16> to vector<1x1x16x64xbf16>
    %78 = vector.shape_cast %77 : vector<1x1x16x64xbf16> to vector<16x64xbf16>
    %79 = tpu.concatenate %76, %78 in 1 : vector<16x64xbf16>, vector<16x64xbf16> -> vector<16x128xbf16>
    %c0_32 = arith.constant 0 : index
    %c640 = arith.constant 640 : index
    %80 = vector.load %arg12[%c0_32, %c640] : memref<16x3136xbf16, #tpu.memory_space<vmem>>, vector<16x128xbf16>
    tpu.vector_store %arg12[%c0_32, %c640], %79 {strides = array<i32>} : memref<16x3136xbf16, #tpu.memory_space<vmem>>, vector<16x128xbf16>,
    %81 = vector.extract_strided_slice %44 {offsets = [1, 5, 0, 0], sizes = [1, 1, 16, 64], strides = [1, 1, 1, 1]} : vector<7x7x16x64xbf16> to vector<1x1x16x64xbf16>
    %82 = vector.shape_cast %81 : vector<1x1x16x64xbf16> to vector<16x64xbf16>
    %83 = vector.extract_strided_slice %44 {offsets = [1, 6, 0, 0], sizes = [1, 1, 16, 64], strides = [1, 1, 1, 1]} : vector<7x7x16x64xbf16> to vector<1x1x16x64xbf16>
    %84 = vector.shape_cast %83 : vector<1x1x16x64xbf16> to vector<16x64xbf16>
    %85 = tpu.concatenate %82, %84 in 1 : vector<16x64xbf16>, vector<16x64xbf16> -> vector<16x128xbf16>
    %c0_33 = arith.constant 0 : index
    %c768 = arith.constant 768 : index
    %86 = vector.load %arg12[%c0_33, %c768] : memref<16x3136xbf16, #tpu.memory_space<vmem>>, vector<16x128xbf16>
    tpu.vector_store %arg12[%c0_33, %c768], %85 {strides = array<i32>} : memref<16x3136xbf16, #tpu.memory_space<vmem>>, vector<16x128xbf16>,
    %87 = vector.extract_strided_slice %44 {offsets = [2, 0, 0, 0], sizes = [1, 1, 16, 64], strides = [1, 1, 1, 1]} : vector<7x7x16x64xbf16> to vector<1x1x16x64xbf16>
    %88 = vector.shape_cast %87 : vector<1x1x16x64xbf16> to vector<16x64xbf16>
    %89 = vector.extract_strided_slice %44 {offsets = [2, 1, 0, 0], sizes = [1, 1, 16, 64], strides = [1, 1, 1, 1]} : vector<7x7x16x64xbf16> to vector<1x1x16x64xbf16>
    %90 = vector.shape_cast %89 : vector<1x1x16x64xbf16> to vector<16x64xbf16>
    %91 = tpu.concatenate %88, %90 in 1 : vector<16x64xbf16>, vector<16x64xbf16> -> vector<16x128xbf16>
    %c0_34 = arith.constant 0 : index
    %c896 = arith.constant 896 : index
    %92 = vector.load %arg12[%c0_34, %c896] : memref<16x3136xbf16, #tpu.memory_space<vmem>>, vector<16x128xbf16>
    tpu.vector_store %arg12[%c0_34, %c896], %91 {strides = array<i32>} : memref<16x3136xbf16, #tpu.memory_space<vmem>>, vector<16x128xbf16>,
    %93 = vector.extract_strided_slice %44 {offsets = [2, 2, 0, 0], sizes = [1, 1, 16, 64], strides = [1, 1, 1, 1]} : vector<7x7x16x64xbf16> to vector<1x1x16x64xbf16>
    %94 = vector.shape_cast %93 : vector<1x1x16x64xbf16> to vector<16x64xbf16>
    %95 = vector.extract_strided_slice %44 {offsets = [2, 3, 0, 0], sizes = [1, 1, 16, 64], strides = [1, 1, 1, 1]} : vector<7x7x16x64xbf16> to vector<1x1x16x64xbf16>
    %96 = vector.shape_cast %95 : vector<1x1x16x64xbf16> to vector<16x64xbf16>
    %97 = tpu.concatenate %94, %96 in 1 : vector<16x64xbf16>, vector<16x64xbf16> -> vector<16x128xbf16>
    %c0_35 = arith.constant 0 : index
    %c1024 = arith.constant 1024 : index
    %98 = vector.load %arg12[%c0_35, %c1024] : memref<16x3136xbf16, #tpu.memory_space<vmem>>, vector<16x128xbf16>
    tpu.vector_store %arg12[%c0_35, %c1024], %97 {strides = array<i32>} : memref<16x3136xbf16, #tpu.memory_space<vmem>>, vector<16x128xbf16>,
    %99 = vector.extract_strided_slice %44 {offsets = [2, 4, 0, 0], sizes = [1, 1, 16, 64], strides = [1, 1, 1, 1]} : vector<7x7x16x64xbf16> to vector<1x1x16x64xbf16>
    %100 = vector.shape_cast %99 : vector<1x1x16x64xbf16> to vector<16x64xbf16>
    %101 = vector.extract_strided_slice %44 {offsets = [2, 5, 0, 0], sizes = [1, 1, 16, 64], strides = [1, 1, 1, 1]} : vector<7x7x16x64xbf16> to vector<1x1x16x64xbf16>
    %102 = vector.shape_cast %101 : vector<1x1x16x64xbf16> to vector<16x64xbf16>
    %103 = tpu.concatenate %100, %102 in 1 : vector<16x64xbf16>, vector<16x64xbf16> -> vector<16x128xbf16>
    %c0_36 = arith.constant 0 : index
    %c1152 = arith.constant 1152 : index
    %104 = vector.load %arg12[%c0_36, %c1152] : memref<16x3136xbf16, #tpu.memory_space<vmem>>, vector<16x128xbf16>
    tpu.vector_store %arg12[%c0_36, %c1152], %103 {strides = array<i32>} : memref<16x3136xbf16, #tpu.memory_space<vmem>>, vector<16x128xbf16>,
    %105 = vector.extract_strided_slice %44 {offsets = [2, 6, 0, 0], sizes = [1, 1, 16, 64], strides = [1, 1, 1, 1]} : vector<7x7x16x64xbf16> to vector<1x1x16x64xbf16>
    %106 = vector.shape_cast %105 : vector<1x1x16x64xbf16> to vector<16x64xbf16>
    %107 = vector.extract_strided_slice %44 {offsets = [3, 0, 0, 0], sizes = [1, 1, 16, 64], strides = [1, 1, 1, 1]} : vector<7x7x16x64xbf16> to vector<1x1x16x64xbf16>
    %108 = vector.shape_cast %107 : vector<1x1x16x64xbf16> to vector<16x64xbf16>
    %109 = tpu.concatenate %106, %108 in 1 : vector<16x64xbf16>, vector<16x64xbf16> -> vector<16x128xbf16>
    %c0_37 = arith.constant 0 : index
    %c1280 = arith.constant 1280 : index
    %110 = vector.load %arg12[%c0_37, %c1280] : memref<16x3136xbf16, #tpu.memory_space<vmem>>, vector<16x128xbf16>
    tpu.vector_store %arg12[%c0_37, %c1280], %109 {strides = array<i32>} : memref<16x3136xbf16, #tpu.memory_space<vmem>>, vector<16x128xbf16>,
    %111 = vector.extract_strided_slice %44 {offsets = [3, 1, 0, 0], sizes = [1, 1, 16, 64], strides = [1, 1, 1, 1]} : vector<7x7x16x64xbf16> to vector<1x1x16x64xbf16>
    %112 = vector.shape_cast %111 : vector<1x1x16x64xbf16> to vector<16x64xbf16>
    %113 = vector.extract_strided_slice %44 {offsets = [3, 2, 0, 0], sizes = [1, 1, 16, 64], strides = [1, 1, 1, 1]} : vector<7x7x16x64xbf16> to vector<1x1x16x64xbf16>
    %114 = vector.shape_cast %113 : vector<1x1x16x64xbf16> to vector<16x64xbf16>
    %115 = tpu.concatenate %112, %114 in 1 : vector<16x64xbf16>, vector<16x64xbf16> -> vector<16x128xbf16>
    %c0_38 = arith.constant 0 : index
    %c1408 = arith.constant 1408 : index
    %116 = vector.load %arg12[%c0_38, %c1408] : memref<16x3136xbf16, #tpu.memory_space<vmem>>, vector<16x128xbf16>
    tpu.vector_store %arg12[%c0_38, %c1408], %115 {strides = array<i32>} : memref<16x3136xbf16, #tpu.memory_space<vmem>>, vector<16x128xbf16>,
    %117 = vector.extract_strided_slice %44 {offsets = [3, 3, 0, 0], sizes = [1, 1, 16, 64], strides = [1, 1, 1, 1]} : vector<7x7x16x64xbf16> to vector<1x1x16x64xbf16>
    %118 = vector.shape_cast %117 : vector<1x1x16x64xbf16> to vector<16x64xbf16>
    %119 = vector.extract_strided_slice %44 {offsets = [3, 4, 0, 0], sizes = [1, 1, 16, 64], strides = [1, 1, 1, 1]} : vector<7x7x16x64xbf16> to vector<1x1x16x64xbf16>
    %120 = vector.shape_cast %119 : vector<1x1x16x64xbf16> to vector<16x64xbf16>
    %121 = tpu.concatenate %118, %120 in 1 : vector<16x64xbf16>, vector<16x64xbf16> -> vector<16x128xbf16>
    %c0_39 = arith.constant 0 : index
    %c1536 = arith.constant 1536 : index
    %122 = vector.load %arg12[%c0_39, %c1536] : memref<16x3136xbf16, #tpu.memory_space<vmem>>, vector<16x128xbf16>
    tpu.vector_store %arg12[%c0_39, %c1536], %121 {strides = array<i32>} : memref<16x3136xbf16, #tpu.memory_space<vmem>>, vector<16x128xbf16>,
    %123 = vector.extract_strided_slice %44 {offsets = [3, 5, 0, 0], sizes = [1, 1, 16, 64], strides = [1, 1, 1, 1]} : vector<7x7x16x64xbf16> to vector<1x1x16x64xbf16>
    %124 = vector.shape_cast %123 : vector<1x1x16x64xbf16> to vector<16x64xbf16>
    %125 = vector.extract_strided_slice %44 {offsets = [3, 6, 0, 0], sizes = [1, 1, 16, 64], strides = [1, 1, 1, 1]} : vector<7x7x16x64xbf16> to vector<1x1x16x64xbf16>
    %126 = vector.shape_cast %125 : vector<1x1x16x64xbf16> to vector<16x64xbf16>
    %127 = tpu.concatenate %124, %126 in 1 : vector<16x64xbf16>, vector<16x64xbf16> -> vector<16x128xbf16>
    %c0_40 = arith.constant 0 : index
    %c1664 = arith.constant 1664 : index
    %128 = vector.load %arg12[%c0_40, %c1664] : memref<16x3136xbf16, #tpu.memory_space<vmem>>, vector<16x128xbf16>
    tpu.vector_store %arg12[%c0_40, %c1664], %127 {strides = array<i32>} : memref<16x3136xbf16, #tpu.memory_space<vmem>>, vector<16x128xbf16>,
    %129 = vector.extract_strided_slice %44 {offsets = [4, 0, 0, 0], sizes = [1, 1, 16, 64], strides = [1, 1, 1, 1]} : vector<7x7x16x64xbf16> to vector<1x1x16x64xbf16>
    %130 = vector.shape_cast %129 : vector<1x1x16x64xbf16> to vector<16x64xbf16>
    %131 = vector.extract_strided_slice %44 {offsets = [4, 1, 0, 0], sizes = [1, 1, 16, 64], strides = [1, 1, 1, 1]} : vector<7x7x16x64xbf16> to vector<1x1x16x64xbf16>
    %132 = vector.shape_cast %131 : vector<1x1x16x64xbf16> to vector<16x64xbf16>
    %133 = tpu.concatenate %130, %132 in 1 : vector<16x64xbf16>, vector<16x64xbf16> -> vector<16x128xbf16>
    %c0_41 = arith.constant 0 : index
    %c1792 = arith.constant 1792 : index
    %134 = vector.load %arg12[%c0_41, %c1792] : memref<16x3136xbf16, #tpu.memory_space<vmem>>, vector<16x128xbf16>
    tpu.vector_store %arg12[%c0_41, %c1792], %133 {strides = array<i32>} : memref<16x3136xbf16, #tpu.memory_space<vmem>>, vector<16x128xbf16>,
    %135 = vector.extract_strided_slice %44 {offsets = [4, 2, 0, 0], sizes = [1, 1, 16, 64], strides = [1, 1, 1, 1]} : vector<7x7x16x64xbf16> to vector<1x1x16x64xbf16>
    %136 = vector.shape_cast %135 : vector<1x1x16x64xbf16> to vector<16x64xbf16>
    %137 = vector.extract_strided_slice %44 {offsets = [4, 3, 0, 0], sizes = [1, 1, 16, 64], strides = [1, 1, 1, 1]} : vector<7x7x16x64xbf16> to vector<1x1x16x64xbf16>
    %138 = vector.shape_cast %137 : vector<1x1x16x64xbf16> to vector<16x64xbf16>
    %139 = tpu.concatenate %136, %138 in 1 : vector<16x64xbf16>, vector<16x64xbf16> -> vector<16x128xbf16>
    %c0_42 = arith.constant 0 : index
    %c1920 = arith.constant 1920 : index
    %140 = vector.load %arg12[%c0_42, %c1920] : memref<16x3136xbf16, #tpu.memory_space<vmem>>, vector<16x128xbf16>
    tpu.vector_store %arg12[%c0_42, %c1920], %139 {strides = array<i32>} : memref<16x3136xbf16, #tpu.memory_space<vmem>>, vector<16x128xbf16>,
    %141 = vector.extract_strided_slice %44 {offsets = [4, 4, 0, 0], sizes = [1, 1, 16, 64], strides = [1, 1, 1, 1]} : vector<7x7x16x64xbf16> to vector<1x1x16x64xbf16>
    %142 = vector.shape_cast %141 : vector<1x1x16x64xbf16> to vector<16x64xbf16>
    %143 = vector.extract_strided_slice %44 {offsets = [4, 5, 0, 0], sizes = [1, 1, 16, 64], strides = [1, 1, 1, 1]} : vector<7x7x16x64xbf16> to vector<1x1x16x64xbf16>
    %144 = vector.shape_cast %143 : vector<1x1x16x64xbf16> to vector<16x64xbf16>
    %145 = tpu.concatenate %142, %144 in 1 : vector<16x64xbf16>, vector<16x64xbf16> -> vector<16x128xbf16>
    %c0_43 = arith.constant 0 : index
    %c2048 = arith.constant 2048 : index
    %146 = vector.load %arg12[%c0_43, %c2048] : memref<16x3136xbf16, #tpu.memory_space<vmem>>, vector<16x128xbf16>
    tpu.vector_store %arg12[%c0_43, %c2048], %145 {strides = array<i32>} : memref<16x3136xbf16, #tpu.memory_space<vmem>>, vector<16x128xbf16>,
    %147 = vector.extract_strided_slice %44 {offsets = [4, 6, 0, 0], sizes = [1, 1, 16, 64], strides = [1, 1, 1, 1]} : vector<7x7x16x64xbf16> to vector<1x1x16x64xbf16>
    %148 = vector.shape_cast %147 : vector<1x1x16x64xbf16> to vector<16x64xbf16>
    %149 = vector.extract_strided_slice %44 {offsets = [5, 0, 0, 0], sizes = [1, 1, 16, 64], strides = [1, 1, 1, 1]} : vector<7x7x16x64xbf16> to vector<1x1x16x64xbf16>
    %150 = vector.shape_cast %149 : vector<1x1x16x64xbf16> to vector<16x64xbf16>
    %151 = tpu.concatenate %148, %150 in 1 : vector<16x64xbf16>, vector<16x64xbf16> -> vector<16x128xbf16>
    %c0_44 = arith.constant 0 : index
    %c2176 = arith.constant 2176 : index
    %152 = vector.load %arg12[%c0_44, %c2176] : memref<16x3136xbf16, #tpu.memory_space<vmem>>, vector<16x128xbf16>
    tpu.vector_store %arg12[%c0_44, %c2176], %151 {strides = array<i32>} : memref<16x3136xbf16, #tpu.memory_space<vmem>>, vector<16x128xbf16>,
    %153 = vector.extract_strided_slice %44 {offsets = [5, 1, 0, 0], sizes = [1, 1, 16, 64], strides = [1, 1, 1, 1]} : vector<7x7x16x64xbf16> to vector<1x1x16x64xbf16>
    %154 = vector.shape_cast %153 : vector<1x1x16x64xbf16> to vector<16x64xbf16>
    %155 = vector.extract_strided_slice %44 {offsets = [5, 2, 0, 0], sizes = [1, 1, 16, 64], strides = [1, 1, 1, 1]} : vector<7x7x16x64xbf16> to vector<1x1x16x64xbf16>
    %156 = vector.shape_cast %155 : vector<1x1x16x64xbf16> to vector<16x64xbf16>
    %157 = tpu.concatenate %154, %156 in 1 : vector<16x64xbf16>, vector<16x64xbf16> -> vector<16x128xbf16>
    %c0_45 = arith.constant 0 : index
    %c2304 = arith.constant 2304 : index
    %158 = vector.load %arg12[%c0_45, %c2304] : memref<16x3136xbf16, #tpu.memory_space<vmem>>, vector<16x128xbf16>
    tpu.vector_store %arg12[%c0_45, %c2304], %157 {strides = array<i32>} : memref<16x3136xbf16, #tpu.memory_space<vmem>>, vector<16x128xbf16>,
    %159 = vector.extract_strided_slice %44 {offsets = [5, 3, 0, 0], sizes = [1, 1, 16, 64], strides = [1, 1, 1, 1]} : vector<7x7x16x64xbf16> to vector<1x1x16x64xbf16>
    %160 = vector.shape_cast %159 : vector<1x1x16x64xbf16> to vector<16x64xbf16>
    %161 = vector.extract_strided_slice %44 {offsets = [5, 4, 0, 0], sizes = [1, 1, 16, 64], strides = [1, 1, 1, 1]} : vector<7x7x16x64xbf16> to vector<1x1x16x64xbf16>
    %162 = vector.shape_cast %161 : vector<1x1x16x64xbf16> to vector<16x64xbf16>
    %163 = tpu.concatenate %160, %162 in 1 : vector<16x64xbf16>, vector<16x64xbf16> -> vector<16x128xbf16>
    %c0_46 = arith.constant 0 : index
    %c2432 = arith.constant 2432 : index
    %164 = vector.load %arg12[%c0_46, %c2432] : memref<16x3136xbf16, #tpu.memory_space<vmem>>, vector<16x128xbf16>
    tpu.vector_store %arg12[%c0_46, %c2432], %163 {strides = array<i32>} : memref<16x3136xbf16, #tpu.memory_space<vmem>>, vector<16x128xbf16>,
    %165 = vector.extract_strided_slice %44 {offsets = [5, 5, 0, 0], sizes = [1, 1, 16, 64], strides = [1, 1, 1, 1]} : vector<7x7x16x64xbf16> to vector<1x1x16x64xbf16>
    %166 = vector.shape_cast %165 : vector<1x1x16x64xbf16> to vector<16x64xbf16>
    %167 = vector.extract_strided_slice %44 {offsets = [5, 6, 0, 0], sizes = [1, 1, 16, 64], strides = [1, 1, 1, 1]} : vector<7x7x16x64xbf16> to vector<1x1x16x64xbf16>
    %168 = vector.shape_cast %167 : vector<1x1x16x64xbf16> to vector<16x64xbf16>
    %169 = tpu.concatenate %166, %168 in 1 : vector<16x64xbf16>, vector<16x64xbf16> -> vector<16x128xbf16>
    %c0_47 = arith.constant 0 : index
    %c2560 = arith.constant 2560 : index
    %170 = vector.load %arg12[%c0_47, %c2560] : memref<16x3136xbf16, #tpu.memory_space<vmem>>, vector<16x128xbf16>
    tpu.vector_store %arg12[%c0_47, %c2560], %169 {strides = array<i32>} : memref<16x3136xbf16, #tpu.memory_space<vmem>>, vector<16x128xbf16>,
    %171 = vector.extract_strided_slice %44 {offsets = [6, 0, 0, 0], sizes = [1, 1, 16, 64], strides = [1, 1, 1, 1]} : vector<7x7x16x64xbf16> to vector<1x1x16x64xbf16>
    %172 = vector.shape_cast %171 : vector<1x1x16x64xbf16> to vector<16x64xbf16>
    %173 = vector.extract_strided_slice %44 {offsets = [6, 1, 0, 0], sizes = [1, 1, 16, 64], strides = [1, 1, 1, 1]} : vector<7x7x16x64xbf16> to vector<1x1x16x64xbf16>
    %174 = vector.shape_cast %173 : vector<1x1x16x64xbf16> to vector<16x64xbf16>
    %175 = tpu.concatenate %172, %174 in 1 : vector<16x64xbf16>, vector<16x64xbf16> -> vector<16x128xbf16>
    %c0_48 = arith.constant 0 : index
    %c2688 = arith.constant 2688 : index
    %176 = vector.load %arg12[%c0_48, %c2688] : memref<16x3136xbf16, #tpu.memory_space<vmem>>, vector<16x128xbf16>
    tpu.vector_store %arg12[%c0_48, %c2688], %175 {strides = array<i32>} : memref<16x3136xbf16, #tpu.memory_space<vmem>>, vector<16x128xbf16>,
    %177 = vector.extract_strided_slice %44 {offsets = [6, 2, 0, 0], sizes = [1, 1, 16, 64], strides = [1, 1, 1, 1]} : vector<7x7x16x64xbf16> to vector<1x1x16x64xbf16>
    %178 = vector.shape_cast %177 : vector<1x1x16x64xbf16> to vector<16x64xbf16>
    %179 = vector.extract_strided_slice %44 {offsets = [6, 3, 0, 0], sizes = [1, 1, 16, 64], strides = [1, 1, 1, 1]} : vector<7x7x16x64xbf16> to vector<1x1x16x64xbf16>
    %180 = vector.shape_cast %179 : vector<1x1x16x64xbf16> to vector<16x64xbf16>
    %181 = tpu.concatenate %178, %180 in 1 : vector<16x64xbf16>, vector<16x64xbf16> -> vector<16x128xbf16>
    %c0_49 = arith.constant 0 : index
    %c2816 = arith.constant 2816 : index
    %182 = vector.load %arg12[%c0_49, %c2816] : memref<16x3136xbf16, #tpu.memory_space<vmem>>, vector<16x128xbf16>
    tpu.vector_store %arg12[%c0_49, %c2816], %181 {strides = array<i32>} : memref<16x3136xbf16, #tpu.memory_space<vmem>>, vector<16x128xbf16>,
    %183 = vector.extract_strided_slice %44 {offsets = [6, 4, 0, 0], sizes = [1, 1, 16, 64], strides = [1, 1, 1, 1]} : vector<7x7x16x64xbf16> to vector<1x1x16x64xbf16>
    %184 = vector.shape_cast %183 : vector<1x1x16x64xbf16> to vector<16x64xbf16>
    %185 = vector.extract_strided_slice %44 {offsets = [6, 5, 0, 0], sizes = [1, 1, 16, 64], strides = [1, 1, 1, 1]} : vector<7x7x16x64xbf16> to vector<1x1x16x64xbf16>
    %186 = vector.shape_cast %185 : vector<1x1x16x64xbf16> to vector<16x64xbf16>
    %187 = tpu.concatenate %184, %186 in 1 : vector<16x64xbf16>, vector<16x64xbf16> -> vector<16x128xbf16>
    %c0_50 = arith.constant 0 : index
    %c2944 = arith.constant 2944 : index
    %188 = vector.load %arg12[%c0_50, %c2944] : memref<16x3136xbf16, #tpu.memory_space<vmem>>, vector<16x128xbf16>
    tpu.vector_store %arg12[%c0_50, %c2944], %187 {strides = array<i32>} : memref<16x3136xbf16, #tpu.memory_space<vmem>>, vector<16x128xbf16>,
    %189 = vector.extract_strided_slice %44 {offsets = [6, 6, 0, 0], sizes = [1, 1, 16, 64], strides = [1, 1, 1, 1]} : vector<7x7x16x64xbf16> to vector<1x1x16x64xbf16>
    %190 = vector.shape_cast %189 : vector<1x1x16x64xbf16> to vector<16x64xbf16>
    %c0_51 = arith.constant 0 : index
    %c3072 = arith.constant 3072 : index
    %191 = vector.load %arg12[%c0_51, %c3072] : memref<16x3136xbf16, #tpu.memory_space<vmem>>, vector<16x64xbf16>
    tpu.vector_store %arg12[%c0_51, %c3072], %190 {strides = array<i32>} : memref<16x3136xbf16, #tpu.memory_space<vmem>>, vector<16x64xbf16>,
    %c0_52 = arith.constant 0 : index
    %c0_53 = arith.constant 0 : index
    %192 = vector.load %arg12[%c0_52, %c0_53] : memref<16x3136xbf16, #tpu.memory_space<vmem>>, vector<16x3136xbf16>
    %c0_54 = arith.constant 0 : index
    %c0_55 = arith.constant 0 : index
    %193 = vector.load %arg7[%c0_54, %c0_55] : memref<3136x128xbf16, #tpu.memory_space<vmem>>, vector<3136x128xbf16>
    %cst_56 = arith.constant dense<0.000000e+00> : vector<16x128xf32>
    %194 = tpu.matmul %192, %193, %cst_56 {dimension_numbers = #tpu.dot_dimension_numbers<[1], [0], [0], [1], [0, 0, 1, 1], [], []>} : vector<16x3136xbf16>, vector<3136x128xbf16>, vector<16x128xf32> -> vector<16x128xf32>
    %c0_57 = arith.constant 0 : index
    %c0_58 = arith.constant 0 : index
    %195 = vector.load %arg8[%c0_57, %c0_58] : memref<1x128xf32, #tpu.memory_space<vmem>>, vector<1x128xf32>
    %196 = vector.broadcast %195 : vector<1x128xf32> to vector<16x128xf32>
    %197 = arith.addf %194, %196 : vector<16x128xf32>
    %cst_59 = arith.constant 0.000000e+00 : f32
    %198 = vector.broadcast %cst_59 : f32 to vector<16x128xf32>
    %199 = arith.maximumf %197, %198 : vector<16x128xf32>
    %200 = arith.truncf %199 : vector<16x128xf32> to vector<16x128xbf16>
    %c0_60 = arith.constant 0 : index
    %c0_61 = arith.constant 0 : index
    %201 = vector.load %arg9[%c0_60, %c0_61] : memref<128x128xbf16, #tpu.memory_space<vmem>>, vector<128x128xbf16>
    %cst_62 = arith.constant dense<0.000000e+00> : vector<16x128xf32>
    %202 = tpu.matmul %200, %201, %cst_62 {dimension_numbers = #tpu.dot_dimension_numbers<[1], [0], [0], [1], [0, 0, 1, 1], [], []>} : vector<16x128xbf16>, vector<128x128xbf16>, vector<16x128xf32> -> vector<16x128xf32>
    %c0_63 = arith.constant 0 : index
    %c0_64 = arith.constant 0 : index
    %203 = vector.load %arg10[%c0_63, %c0_64] : memref<1x128xf32, #tpu.memory_space<vmem>>, vector<1x128xf32>
    %204 = vector.broadcast %203 : vector<1x128xf32> to vector<16x128xf32>
    %205 = arith.addf %202, %204 : vector<16x128xf32>
    %c0_65 = arith.constant 0 : index
    %c0_66 = arith.constant 0 : index
    %206 = vector.load %arg11[%c0_65, %c0_66] : memref<16x128xf32, #tpu.memory_space<vmem>>, vector<16x128xf32>
    tpu.vector_store %arg11[%c0_65, %c0_66], %205 {strides = array<i32>} : memref<16x128xf32, #tpu.memory_space<vmem>>, vector<16x128xf32>,
    return
  }
  func.func @transform_0(%arg0: i32) -> (i32, i32, i32) {
    %c0_i32 = arith.constant 0 : i32
    %c0_i32_0 = arith.constant 0 : i32
    %c0_i32_1 = arith.constant 0 : i32
    return %c0_i32, %arg0, %c0_i32_0 : i32, i32, i32
  }
  func.func @transform_1(%arg0: i32) -> (i32, i32) {
    %c0_i32 = arith.constant 0 : i32
    %c0_i32_0 = arith.constant 0 : i32
    %c0_i32_1 = arith.constant 0 : i32
    return %c0_i32, %c0_i32_0 : i32, i32
  }
  func.func @transform_2(%arg0: i32) -> (i32, i32) {
    %c0_i32 = arith.constant 0 : i32
    %c0_i32_0 = arith.constant 0 : i32
    %c0_i32_1 = arith.constant 0 : i32
    return %c0_i32, %c0_i32_0 : i32, i32
  }
  func.func @transform_3(%arg0: i32) -> (i32, i32, i32) {
    %c0_i32 = arith.constant 0 : i32
    %c0_i32_0 = arith.constant 0 : i32
    %c0_i32_1 = arith.constant 0 : i32
    %c0_i32_2 = arith.constant 0 : i32
    return %c0_i32, %c0_i32_0, %c0_i32_1 : i32, i32, i32
  }
  func.func @transform_4(%arg0: i32) -> (i32, i32, i32) {
    %c0_i32 = arith.constant 0 : i32
    %c0_i32_0 = arith.constant 0 : i32
    %c0_i32_1 = arith.constant 0 : i32
    %c0_i32_2 = arith.constant 0 : i32
    return %c0_i32, %c0_i32_0, %c0_i32_1 : i32, i32, i32
  }
  func.func @transform_5(%arg0: i32) -> (i32, i32) {
    %c0_i32 = arith.constant 0 : i32
    %c0_i32_0 = arith.constant 0 : i32
    %c0_i32_1 = arith.constant 0 : i32
    return %c0_i32, %c0_i32_0 : i32, i32
  }
  func.func @transform_6(%arg0: i32) -> (i32, i32) {
    %c0_i32 = arith.constant 0 : i32
    %c0_i32_0 = arith.constant 0 : i32
    %c0_i32_1 = arith.constant 0 : i32
    return %c0_i32, %c0_i32_0 : i32, i32
  }
  func.func @transform_7(%arg0: i32) -> (i32, i32) {
    %c0_i32 = arith.constant 0 : i32
    %c0_i32_0 = arith.constant 0 : i32
    %c0_i32_1 = arith.constant 0 : i32
    return %c0_i32, %c0_i32_0 : i32, i32
  }
  func.func @transform_8(%arg0: i32) -> (i32, i32) {
    %c0_i32 = arith.constant 0 : i32
    %c0_i32_0 = arith.constant 0 : i32
    %c0_i32_1 = arith.constant 0 : i32
    return %c0_i32, %c0_i32_0 : i32, i32
  }
  func.func @transform_9(%arg0: i32) -> (i32, i32) {
    %c0_i32 = arith.constant 0 : i32
    %c0_i32_0 = arith.constant 0 : i32
    %c0_i32_1 = arith.constant 0 : i32
    return %c0_i32, %c0_i32_0 : i32, i32
  }
  func.func @transform_10(%arg0: i32) -> (i32, i32) {
    %c0_i32 = arith.constant 0 : i32
    %c0_i32_0 = arith.constant 0 : i32
    return %arg0, %c0_i32 : i32, i32
  }
}

</mosaic_0001>

<bundles_post_ra>
// kernel: tile.8
= control target key start
LH: loop header
LB: loop body
LE: loop exit
PB: predicated region body
PF: predicated region fallthrough
CT: control target
= control target key end

     0   :  { %s22_s0 = inlined_call_operand.vmem [shape: f32[32], index: 0, kind: input, shape index: {}]   ;;  %s23_s1 = inlined_call_operand.vmem [shape: f32[4,32], index: 1, kind: output, shape index: {}]  }
   0x1   :  { %v4_v0 = vld [vmem:[%s22_s0] ss:$0 sm:$0xff] }
   0x2   :  { %5 = vst [vmem:[%s23_s1] sm:$0xf] %v4_v0 }

// kernel: tile.9
= control target key start
LH: loop header
LB: loop body
LE: loop exit
PB: predicated region body
PF: predicated region fallthrough
CT: control target
= control target key end

     0   :  { %vm7_vm0 = vcmask 261120   ;;  %s37_s8 = smov 32   ;;  %s38_s9 = smov 64   ;;  %vm13_vm1 = vcmask 1048320   ;;  %vm19_vm2 = vcmask 785920   ;;  %vm25_vm3 = vcmask 523520   ;;  %s55_s0 = inlined_call_operand.vmem [shape: f32[4,32], index: 0, kind: input, shape index: {}]   ;;  %s56_s1 = inlined_call_operand.vmem [shape: f32[1,128], index: 1, kind: output, shape index: {}]  }
   0x1   :  { %v4_v0 = vld [vmem:[%s55_s0] sm:$0xf]  ;;  %s36_s0 = smov 96  }
   0x2   :  { %5 = vst [vmem:[#allocation1] sm:$0xf] %v4_v0 }
   0x9   :  { %v10_v1 = vld [vmem:[#allocation1 + $0x3] sm:$0x1]   ;;  %v22_v2 = vld [vmem:[#allocation1 + $0x1] sm:$0x1]   ;;  %v6_v3 = vld [vmem:[#allocation1] sm:$0x1]  }
   0xa   :  { %11 = vrot.lane.b32.xlu0 %v10_v1, %s36_s0  ;;  %23 = vrot.lane.b32.xlu1 %v22_v2, %s37_s8  ;;  %v16_v4 = vld [vmem:[#allocation1 + $0x2] sm:$0x1]   ;;  %8 = vst.msk [vmem:[#allocation0] sm:$0x1] %vm7_vm0, %v6_v3  }
   0xe   :  { %17 = vrot.lane.b32.xlu0 %v16_v4, %s38_s9 }
  0x7c   :  { %v12_v5 = vpop.permute.xlu0 %11   ;;  %v24_v6 = vpop.permute.xlu1 %23  }
  0x7d   :  { %14 = vst.msk [vmem:[#allocation0] sm:$0x1] %vm13_vm1, %v12_v5  }
  0x80   :  { %v18_v7 = vpop.permute.xlu0 %17  }
  0x81   :  { %20 = vst.msk [vmem:[#allocation0] sm:$0x1] %vm19_vm2, %v18_v7  }
  0x82   :  { %26 = vst.msk [vmem:[#allocation0] sm:$0x1] %vm25_vm3, %v24_v6  }
  0x89   :  { %v30_v8 = vld [vmem:[#allocation0] sm:$0x1] }
  0x8a   :  { %32 = vst [vmem:[%s56_s1] sm:$0x1] %v30_v8 }

// kernel: lvae_encoder_forward.1
= control target key start
LH: loop header
LB: loop body
LE: loop exit
PB: predicated region body
PF: predicated region fallthrough
CT: control target
= control target key end

     0   :  { %vm511_vm0 = vcmask 293888   ;;  %vm704_vm1 = vcmask 1041408   ;;  %vm4889_vm2 = vcmask 523264   ;;  %vm9507_vm3 = vmmov 0   ;;  %s12425_s1 = inlined_call_operand.vmem [shape: bf16[36,128], index: 1, kind: input, shape index: {}]   ;;  %s12426_s0 = inlined_call_operand.vmem [shape: bf16[64,16,36], index: 0, kind: input, shape index: {}]   ;;  %s12427_s4 = inlined_call_operand.vmem [shape: bf16[4,128,64], index: 4, kind: input, shape index: {}]   ;;  %s12428_s2 = inlined_call_operand.vmem [shape: f32[1,128], index: 2, kind: input, shape index: {}]   ;;  %s12429_s3 = inlined_call_operand.vmem [shape: f32[64,1,128], index: 3, kind: input, shape index: {}]   ;;  %s12430_s6 = inlined_call_operand.vmem [shape: bf16[3136,128], index: 6, kind: input, shape index: {}]   ;;  %s12431_s5 = inlined_call_operand.vmem [shape: f32[1,64], index: 5, kind: input, shape index: {}]   ;;  %s12432_s7 = inlined_call_operand.vmem [shape: f32[1,128], index: 7, kind: input, shape index: {}]   ;;  %s12433_s8 = inlined_call_operand.vmem [shape: bf16[128,128], index: 8, kind: input, shape index: {}]   ;;  %s12434_s9 = inlined_call_operand.vmem [shape: f32[1,128], index: 9, kind: input, shape index: {}]   ;;  %s12435_s10 = inlined_call_operand.vmem [shape: f32[16,128], index: 10, kind: output, shape index: {}]  }
   0x1   :  { %v9200_v0 = vld [vmem:[%s12425_s1] sm:$0xff]   ;;  %v9201_v1 = vld [vmem:[%s12425_s1 + $0x8] sm:$0xff]   ;;  %v9202_v2 = vld [vmem:[%s12425_s1 + $0x10] ss:$0 sps:$4 sm:$0x33]   ;;  %s9505_s1 = smov 64  }
   0x2   :  { %8454 = vmatprep.subr.bf16.mxu0 %v9200_v0  ;;  %v9203_v3 = vld [vmem:[%s12426_s0] sm:$0xff]   ;;  %v706_v4 = vsel %vm704_vm1, %v9202_v2, 0  ;;  %v9204_v6 = vld [vmem:[%s12426_s0 + $0x8] sm:$0xff]   ;;  %v9206_v7 = vld [vmem:[%s12426_s0 + $0x10] sm:$0xff]  }
   0x3   :  { %8455 = vmatpush3.bf16.msra.mxu0 %v9200_v0  ;;  %8460 = vmatprep.mubr.msk.bf16.mxu0 %vm511_vm0, %v9203_v3  ;;  %v9205_v5 = vld [vmem:[%s12427_s4 + $0x40] sm:$0xff]   ;;  %v9214_v8 = vld [vmem:[%s12427_s4 + $0x48] sm:$0xff]   ;;  %v9207_v9 = vld [vmem:[%s12426_s0 + $0x18] sm:$0xff]  }
   0x4   :  { %8456 = vmatprep.subr.bf16.mxu0 %v9201_v1  ;;  %v9208_v10 = vld [vmem:[%s12426_s0 + $0x20] sm:$0xff]   ;;  %v9223_v11 = vld [vmem:[%s12427_s4 + $0x50] sm:$0xff]   ;;  %v9209_v12 = vld [vmem:[%s12426_s0 + $0x28] sm:$0xff]  }
   0x5   :  { %v9210_v13 = vld [vmem:[%s12426_s0 + $0x30] sm:$0xff]   ;;  %v9232_v14 = vld [vmem:[%s12427_s4 + $0x58] sm:$0xff]   ;;  %v9212_v16 = vld [vmem:[%s12426_s0 + $0x40] sm:$0xff]  }
   0x6   :  { %v9211_v15 = vld [vmem:[%s12426_s0 + $0x38] sm:$0xff]   ;;  %v9241_v17 = vld [vmem:[%s12427_s4 + $0x60] sm:$0xff]   ;;  %v9213_v18 = vld [vmem:[%s12426_s0 + $0x48] sm:$0xff]  }
   0x7   :  { %8457 = vmatpush3.bf16.msra.mxu0 %v9201_v1  ;;  %v9215_v19 = vld [vmem:[%s12426_s0 + $0x50] sm:$0xff]   ;;  %v9216_v20 = vld [vmem:[%s12426_s0 + $0x58] sm:$0xff]   ;;  %v9250_v21 = vld [vmem:[%s12427_s4 + $0x68] sm:$0xff]  }
   0x8   :  { %9196 = vmatprep.subr.msk.bf16.mxu0 %vm704_vm1, %v9202_v2  ;;  %v9217_v22 = vld [vmem:[%s12426_s0 + $0x60] sm:$0xff]   ;;  %v9218_v23 = vld [vmem:[%s12426_s0 + $0x68] sm:$0xff]   ;;  %v9219_v24 = vld [vmem:[%s12426_s0 + $0x70] sm:$0xff]  }
   0x9   :  { %v9220_v25 = vld [vmem:[%s12426_s0 + $0x78] sm:$0xff]   ;;  %v9221_v26 = vld [vmem:[%s12426_s0 + $0x80] sm:$0xff]   ;;  %v9222_v27 = vld [vmem:[%s12426_s0 + $0x88] sm:$0xff]  }
   0xa   :  { %v9224_v28 = vld [vmem:[%s12426_s0 + $0x90] sm:$0xff]   ;;  %v9259_v29 = vld [vmem:[%s12427_s4] sm:$0xff]   ;;  %v9261_v31 = vld [vmem:[%s12427_s4 + $0x8] sm:$0xff]  }
   0xb   :  { %8459 = vmatpush3.bf16.msra.mxu0 %v706_v4  ;;  %8588 = vmatprep.subr.bf16.mxu1 %v9259_v29  ;;  %v9260_v30 = vld [vmem:[%s12427_s4 + $0x70] sm:$0xff]   ;;  %v9225_v32 = vld [vmem:[%s12426_s0 + $0x98] sm:$0xff]   ;;  %v9226_v33 = vld [vmem:[%s12426_s0 + $0xa0] sm:$0xff]  }
   0xc   :  { %8732 = vmatprep.subr.bf16.mxu0 %v9205_v5  ;;  %8589 = vmatpush3.bf16.msra.mxu1 %v9259_v29  ;;  %v9264_v34 = vld [vmem:[%s12427_s4 + $0x10] sm:$0xff]   ;;  %v9265_v35 = vld [vmem:[%s12427_s4 + $0x18] sm:$0xff]   ;;  %v9227_v36 = vld [vmem:[%s12426_s0 + $0xa8] sm:$0xff]  }
   0xd   :  { %8590 = vmatprep.subr.bf16.mxu1 %v9261_v31  ;;  %v9228_v37 = vld [vmem:[%s12426_s0 + $0xb0] sm:$0xff]   ;;  %v9268_v38 = vld [vmem:[%s12427_s4 + $0x20] sm:$0xff]   ;;  %v9269_v39 = vld [vmem:[%s12427_s4 + $0x28] sm:$0xff]  }
   0xe   :  { %8461 = vmatmul.mubr.msk.bf16.vlgmr.msra.gmra.mrb[0].mxu0 %vm511_vm0, %v9204_v6  ;;  %v9229_v40 = vld [vmem:[%s12426_s0 + $0xb8] sm:$0xff]   ;;  %v9230_v41 = vld [vmem:[%s12426_s0 + $0xc0] sm:$0xff]   ;;  %v9272_v42 = vld [vmem:[%s12427_s4 + $0x30] sm:$0xff]  }
   0xf   :  { %8733 = vmatpush3.bf16.msra.mxu0 %v9205_v5  ;;  %8464 = vmatprep.mubr.msk.bf16.mxu0 %vm511_vm0, %v9206_v7  ;;  %v9273_v43 = vld [vmem:[%s12427_s4 + $0x38] sm:$0xff]   ;;  %v9231_v44 = vld [vmem:[%s12426_s0 + $0xc8] sm:$0xff]   ;;  %v9233_v45 = vld [vmem:[%s12426_s0 + $0xd0] sm:$0xff]  }
  0x10   :  { %8734 = vmatprep.subr.bf16.mxu0 %v9214_v8  ;;  %8591 = vmatpush3.bf16.msra.mxu1 %v9261_v31  ;;  %v9276_v46 = vld [vmem:[%s12427_s4 + $0x78] sm:$0xff]   ;;  %v9235_v48 = vld [vmem:[%s12426_s0 + $0xe0] sm:$0xff]   ;;  %v9236_v49 = vld [vmem:[%s12426_s0 + $0xe8] sm:$0xff]  }
  0x11   :  { %8592 = vmatprep.subr.bf16.mxu1 %v9264_v34  ;;  %v9234_v47 = vld [vmem:[%s12426_s0 + $0xd8] sm:$0xff]   ;;  %v9237_v50 = vld [vmem:[%s12426_s0 + $0xf0] sm:$0xff]   ;;  %v9239_v52 = vld [vmem:[%s12426_s0 + $0x100] sm:$0xff]  }
  0x12   :  { %v9238_v51 = vld [vmem:[%s12426_s0 + $0xf8] sm:$0xff]   ;;  %v9240_v53 = vld [vmem:[%s12426_s0 + $0x108] sm:$0xff]   ;;  %v9242_v54 = vld [vmem:[%s12426_s0 + $0x110] sm:$0xff]  }
  0x13   :  { %8735 = vmatpush3.bf16.msra.mxu0 %v9214_v8  ;;  %v9763_v55 = vld [vmem:[%s12427_s4 + $0xc0] sm:$0xff]   ;;  %v9243_v56 = vld [vmem:[%s12426_s0 + $0x118] sm:$0xff]   ;;  %v9245_v59 = vld [vmem:[%s12426_s0 + $0x128] sm:$0xff]  }
  0x14   :  { %8736 = vmatprep.subr.bf16.mxu0 %v9223_v11  ;;  %8593 = vmatpush3.bf16.msra.mxu1 %v9264_v34  ;;  %v9244_v57 = vld [vmem:[%s12426_s0 + $0x120] sm:$0xff]   ;;  %v9246_v60 = vld [vmem:[%s12426_s0 + $0x130] sm:$0xff]   ;;  %v9247_v61 = vld [vmem:[%s12426_s0 + $0x138] sm:$0xff]  }
  0x15   :  { %8594 = vmatprep.subr.bf16.mxu1 %v9265_v35  ;;  %v9777_v58 = vld [vmem:[%s12427_s4 + $0x80] sm:$0xff]   ;;  %v9249_v63 = vld [vmem:[%s12426_s0 + $0x148] sm:$0xff]   ;;  %v9251_v0 = vld [vmem:[%s12426_s0 + $0x150] sm:$0xff]  }
  0x16   :  { %8465 = vmatmul.mubr.msk.bf16.gmra.mrb[4].mxu0 %vm511_vm0, %v9207_v9  ;;  %v9248_v62 = vld [vmem:[%s12426_s0 + $0x140] sm:$0xff]   ;;  %v9252_v1 = vld [vmem:[%s12426_s0 + $0x158] sm:$0xff]   ;;  %v9254_v3 = vld [vmem:[%s12426_s0 + $0x168] sm:$0xff]  }
  0x17   :  { %8468 = vmatprep.mubr.msk.bf16.mxu0 %vm511_vm0, %v9208_v10  ;;  %8737 = vmatpush3.bf16.msra.mxu0 %v9223_v11  ;;  %v9253_v2 = vld [vmem:[%s12426_s0 + $0x160] sm:$0xff]   ;;  %v9255_v4 = vld [vmem:[%s12426_s0 + $0x170] sm:$0xff]   ;;  %v9256_v5 = vld [vmem:[%s12426_s0 + $0x178] sm:$0xff]  }
  0x18   :  { %8738 = vmatprep.subr.bf16.mxu0 %v9232_v14  ;;  %8595 = vmatpush3.bf16.msra.mxu1 %v9265_v35  ;;  %v9257_v6 = vld [vmem:[%s12426_s0 + $0x180] sm:$0xff]   ;;  %v9258_v7 = vld [vmem:[%s12426_s0 + $0x188] sm:$0xff]   ;;  %v9262_v8 = vld [vmem:[%s12426_s0 + $0x190] sm:$0xff]  }
  0x19   :  { %8596 = vmatprep.subr.bf16.mxu1 %v9268_v38  ;;  %v9263_v9 = vld [vmem:[%s12426_s0 + $0x198] sm:$0xff]   ;;  %v9266_v10 = vld [vmem:[%s12426_s0 + $0x1a0] sm:$0xff]   ;;  %v9267_v11 = vld [vmem:[%s12426_s0 + $0x1a8] sm:$0xff]  }
  0x1b   :  { %8739 = vmatpush3.bf16.msra.mxu0 %v9232_v14 }
  0x1c   :  { %8740 = vmatprep.subr.bf16.mxu0 %v9241_v17  ;;  %8597 = vmatpush3.bf16.msra.mxu1 %v9268_v38 }
  0x1d   :  { %8598 = vmatprep.subr.bf16.mxu1 %v9269_v39 }
  0x1e   :  { %8469 = vmatmul.mubr.msk.bf16.gmra.mrb[8].mxu0 %vm511_vm0, %v9209_v12  ;;  %v9270_v12 = vld [vmem:[%s12426_s0 + $0x1b0] sm:$0xff]  }
  0x1f   :  { %8472 = vmatprep.mubr.msk.bf16.mxu0 %vm511_vm0, %v9210_v13  ;;  %8741 = vmatpush3.bf16.msra.mxu0 %v9241_v17  ;;  %v9854_v13 = vld [vmem:[%s12428_s2] ss:$0 sm:$0xff]  ;;  %v9271_v17 = vld [vmem:[%s12426_s0 + $0x1b8] sm:$0xff]  }
  0x20   :  { %8742 = vmatprep.subr.bf16.mxu0 %v9250_v21  ;;  %8599 = vmatpush3.bf16.msra.mxu1 %v9269_v39 }
  0x21   :  { %8600 = vmatprep.subr.bf16.mxu1 %v9272_v42 }
  0x23   :  { %8743 = vmatpush3.bf16.msra.mxu0 %v9250_v21 }
  0x24   :  { %8744 = vmatprep.subr.bf16.mxu0 %v9260_v30  ;;  %8601 = vmatpush3.bf16.msra.mxu1 %v9272_v42  ;;  %v9277_v42 = vld [vmem:[%s12426_s0 + $0x1d0] sm:$0xff]  }
  0x25   :  { %8602 = vmatprep.subr.bf16.mxu1 %v9273_v43 }
  0x26   :  { %8473 = vmatmul.mubr.msk.bf16.gmra.mrb[12].mxu0 %vm511_vm0, %v9211_v15 }
  0x27   :  { %8476 = vmatprep.mubr.msk.bf16.mxu0 %vm511_vm0, %v9212_v16  ;;  %8745 = vmatpush3.bf16.msra.mxu0 %v9260_v30 }
  0x28   :  { %8603 = vmatpush3.bf16.msra.mxu1 %v9273_v43  ;;  %8746 = vmatprep.subr.bf16.mxu0 %v9276_v46 }
  0x29   :  { %8876 = vmatprep.subr.bf16.mxu1 %v9777_v58 }
  0x2b   :  { %8747 = vmatpush3.bf16.msra.mxu0 %v9276_v46  ;;  %v9286_v46 = vld [vmem:[%s12427_s4 + $0x88] sm:$0xff]  }
  0x2c   :  { %9020 = vmatprep.subr.bf16.mxu0 %v9763_v55 }
  0x2e   :  { %8477 = vmatmul.mubr.msk.bf16.gmra.mrb[16].mxu0 %vm511_vm0, %v9213_v18 }
  0x2f   :  { %8480 = vmatprep.mubr.msk.bf16.mxu0 %vm511_vm0, %v9215_v19 }
  0x36   :  { %8481 = vmatmul.mubr.msk.bf16.gmra.mrb[20].mxu0 %vm511_vm0, %v9216_v20  ;;  %v9274_v20 = vld [vmem:[%s12426_s0 + $0x1c0] sm:$0xff]  }
  0x37   :  { %8484 = vmatprep.mubr.msk.bf16.mxu0 %vm511_vm0, %v9217_v22 }
  0x3e   :  { %8485 = vmatmul.mubr.msk.bf16.gmra.mrb[24].mxu0 %vm511_vm0, %v9218_v23 }
  0x3f   :  { %8488 = vmatprep.mubr.msk.bf16.mxu0 %vm511_vm0, %v9219_v24  ;;  %v7470_v24 = vld [vmem:[%s12429_s3 + $0x1] ss:$0 sm:$0xff] }
  0x46   :  { %8489 = vmatmul.mubr.msk.bf16.gmra.mrb[28].mxu0 %vm511_vm0, %v9220_v25 }
  0x47   :  { %8492 = vmatprep.mubr.msk.bf16.mxu0 %vm511_vm0, %v9221_v26 }
  0x4e   :  { %8493 = vmatmul.mubr.msk.bf16.gmra.mrb[32].mxu0 %vm511_vm0, %v9222_v27  ;;  %v7469_v27 = vld [vmem:[%s12429_s3] ss:$0 sm:$0xff] }
  0x4f   :  { %8496 = vmatprep.mubr.msk.bf16.mxu0 %vm511_vm0, %v9224_v28 }
  0x56   :  { %8497 = vmatmul.mubr.msk.bf16.gmra.mrb[36].mxu0 %vm511_vm0, %v9225_v32 }
  0x57   :  { %8500 = vmatprep.mubr.msk.bf16.mxu0 %vm511_vm0, %v9226_v33 }
  0x5e   :  { %8501 = vmatmul.mubr.msk.bf16.gmra.mrb[40].mxu0 %vm511_vm0, %v9227_v36 }
  0x5f   :  { %8504 = vmatprep.mubr.msk.bf16.mxu0 %vm511_vm0, %v9228_v37  ;;  %v9275_v37 = vld [vmem:[%s12426_s0 + $0x1c8] sm:$0xff]  }
  0x66   :  { %8505 = vmatmul.mubr.msk.bf16.gmra.mrb[44].mxu0 %vm511_vm0, %v9229_v40 }
  0x67   :  { %8508 = vmatprep.mubr.msk.bf16.mxu0 %vm511_vm0, %v9230_v41 }
  0x6e   :  { %8509 = vmatmul.mubr.msk.bf16.gmra.mrb[48].mxu0 %vm511_vm0, %v9231_v44 }
  0x6f   :  { %8512 = vmatprep.mubr.msk.bf16.mxu0 %vm511_vm0, %v9233_v45 }
  0x76   :  { %8513 = vmatmul.mubr.msk.bf16.gmra.mrb[52].mxu0 %vm511_vm0, %v9234_v47  ;;  %v7472_v47 = vld [vmem:[%s12429_s3 + $0x3] ss:$0 sm:$0xff] }
  0x77   :  { %8516 = vmatprep.mubr.msk.bf16.mxu0 %vm511_vm0, %v9235_v48 }
  0x7e   :  { %8517 = vmatmul.mubr.msk.bf16.gmra.mrb[56].mxu0 %vm511_vm0, %v9236_v49 }
  0x7f   :  { %8520 = vmatprep.mubr.msk.bf16.mxu0 %vm511_vm0, %v9237_v50  ;;  %v7471_v50 = vld [vmem:[%s12429_s3 + $0x2] ss:$0 sm:$0xff] }
  0x86   :  { %8521 = vmatmul.mubr.msk.bf16.gmra.mrb[60].mxu0 %vm511_vm0, %v9238_v51 }
  0x87   :  { %8524 = vmatprep.mubr.msk.bf16.mxu0 %vm511_vm0, %v9239_v52 }
  0x8e   :  { %8525 = vmatmul.mubr.msk.bf16.gmra.mrb[64].mxu0 %vm511_vm0, %v9240_v53 }
  0x8f   :  { %8528 = vmatprep.mubr.msk.bf16.mxu0 %vm511_vm0, %v9242_v54 }
  0x96   :  { %8529 = vmatmul.mubr.msk.bf16.gmra.mrb[68].mxu0 %vm511_vm0, %v9243_v56  ;;  %v9288_v56 = vld [vmem:[%s12427_s4 + $0x90] sm:$0xff]  }
  0x97   :  { %8532 = vmatprep.mubr.msk.bf16.mxu0 %vm511_vm0, %v9244_v57 }
  0x9e   :  { %8533 = vmatmul.mubr.msk.bf16.gmra.mrb[72].mxu0 %vm511_vm0, %v9245_v59 }
  0x9f   :  { %8536 = vmatprep.mubr.msk.bf16.mxu0 %vm511_vm0, %v9246_v60 }
  0xa6   :  { %8537 = vmatmul.mubr.msk.bf16.gmra.mrb[76].mxu0 %vm511_vm0, %v9247_v61 }
  0xa7   :  { %8540 = vmatprep.mubr.msk.bf16.mxu0 %vm511_vm0, %v9248_v62 }
  0xae   :  { %8541 = vmatmul.mubr.msk.bf16.gmra.mrb[80].mxu0 %vm511_vm0, %v9249_v63  ;;  %v9278_v63 = vld [vmem:[%s12426_s0 + $0x1d8] sm:$0xff]  }
  0xaf   :  { %8544 = vmatprep.mubr.msk.bf16.mxu0 %vm511_vm0, %v9251_v0 }
  0xb6   :  { %8545 = vmatmul.mubr.msk.bf16.gmra.mrb[84].mxu0 %vm511_vm0, %v9252_v1 }
  0xb7   :  { %8548 = vmatprep.mubr.msk.bf16.mxu0 %vm511_vm0, %v9253_v2 }
  0xbe   :  { %8549 = vmatmul.mubr.msk.bf16.gmra.mrb[88].mxu0 %vm511_vm0, %v9254_v3  ;;  %v9279_v3 = vld [vmem:[%s12426_s0 + $0x1e0] sm:$0xff]  }
  0xbf   :  { %8552 = vmatprep.mubr.msk.bf16.mxu0 %vm511_vm0, %v9255_v4 }
  0xc6   :  { %8553 = vmatmul.mubr.msk.bf16.gmra.mrb[92].mxu0 %vm511_vm0, %v9256_v5 }
  0xc7   :  { %8556 = vmatprep.mubr.msk.bf16.mxu0 %vm511_vm0, %v9257_v6 }
  0xce   :  { %8557 = vmatmul.mubr.msk.bf16.gmra.mrb[96].mxu0 %vm511_vm0, %v9258_v7  ;;  %v7474_v7 = vld [vmem:[%s12429_s3 + $0x5] ss:$0 sm:$0xff] }
  0xcf   :  { %8560 = vmatprep.mubr.msk.bf16.mxu0 %vm511_vm0, %v9262_v8 }
  0xd6   :  { %8561 = vmatmul.mubr.msk.bf16.gmra.mrb[100].mxu0 %vm511_vm0, %v9263_v9 }
  0xd7   :  { %8564 = vmatprep.mubr.msk.bf16.mxu0 %vm511_vm0, %v9266_v10  ;;  %v7473_v10 = vld [vmem:[%s12429_s3 + $0x4] ss:$0 sm:$0xff] }
  0xde   :  { %8565 = vmatmul.mubr.msk.bf16.gmra.mrb[104].mxu0 %vm511_vm0, %v9267_v11 }
  0xdf   :  { %8568 = vmatprep.mubr.msk.bf16.mxu0 %vm511_vm0, %v9270_v12 }
  0xe1   :  { %v8462_v14 = vpop.f32.mrb[0].mxu0 }
  0xe2   :  { %v751_v15 = vadd.f32 %v8462_v14, %v9854_v13  ;;  %v742_v16 = vpop.f32.mrb[1].mxu0 }
  0xe3   :  { %v743_v18 = vadd.f32 %v9854_v13, %v742_v16  ;;  %v8463_v19 = vpop.f32.mrb[2].mxu0 }
  0xe4   :  { %v1255_v21 = vmax.f32 %v751_v15, 0.0  ;;  %v754_v22 = vadd.f32 %v8463_v19, %v9854_v13  ;;  %v745_v23 = vpop.f32.mrb[3].mxu0  ;;  %v9290_v19 = vld [vmem:[%s12427_s4 + $0x98] sm:$0xff]  }
  0xe5   :  { %v1253_v25 = vmax.f32 %v743_v18, 0.0  ;;  %v746_v26 = vadd.f32 %v9854_v13, %v745_v23 }
  0xe6   :  { %v1256_v28 = vmax.f32 %v754_v22, 0.0  ;;  %8569 = vmatmul.mubr.msk.bf16.gmra.mrb[108].mxu0 %vm511_vm0, %v9271_v17  ;;  %v1831_v30 = vmul.f32 %v7470_v24, %v1255_v21  ;;  %v9280_v22 = vld [vmem:[%s12426_s0 + $0x1e8] sm:$0xff]  }
  0xe7   :  { %v1254_v29 = vmax.f32 %v746_v26, 0.0  ;;  %8572 = vmatprep.mubr.msk.bf16.mxu0 %vm511_vm0, %v9274_v20  ;;  %v1829_v32 = vmul.f32 %v7469_v27, %v1253_v25 }
  0xe8   :  { %v1832_v31 = vmul.f32 %v7470_v24, %v1256_v28 }
  0xe9   :  { %v1830_v33 = vmul.f32 %v7469_v27, %v1254_v29  ;;  %v8466_v34 = vpop.f32.mrb[4].mxu0  ;;  %v9281_v27 = vld [vmem:[%s12426_s0 + $0x1f0] sm:$0xff]  }
  0xea   :  { %v767_v35 = vadd.f32 %v8466_v34, %v9854_v13  ;;  %v758_v36 = vpop.f32.mrb[5].mxu0  ;;  %v9879_v38 = vpack.c.bf16 %v1832_v31, %v1831_v30  ;;  %v7476_v31 = vld [vmem:[%s12429_s3 + $0x7] ss:$0 sm:$0xff]  ;;  %v7475_v34 = vld [vmem:[%s12429_s3 + $0x6] ss:$0 sm:$0xff] }
  0xeb   :  { %v759_v39 = vadd.f32 %v9854_v13, %v758_v36  ;;  %v8467_v40 = vpop.f32.mrb[6].mxu0  ;;  %v9882_v41 = vpack.c.bf16 %v1830_v33, %v1829_v32 }
  0xec   :  { %v1259_v43 = vmax.f32 %v767_v35, 0.0  ;;  %v770_v44 = vadd.f32 %v8467_v40, %v9854_v13  ;;  %v761_v45 = vpop.f32.mrb[7].mxu0 }
  0xed   :  { %v1257_v48 = vmax.f32 %v759_v39, 0.0  ;;  %v762_v49 = vadd.f32 %v9854_v13, %v761_v45  ;;  %8604 = vmatprep.mubr.bf16.mxu1 %v9882_v41 }
  0xee   :  { %v1260_v51 = vmax.f32 %v770_v44, 0.0  ;;  %8573 = vmatmul.mubr.msk.bf16.gmra.mrb[112].mxu0 %vm511_vm0, %v9275_v37  ;;  %8605 = vmatmul.mubr.bf16.vlgmr.msra.gmra.mrb[0].mxu1 %v9879_v38  ;;  %v1835_v53 = vmul.f32 %v7472_v47, %v1259_v43 }
  0xef   :  { %v1258_v52 = vmax.f32 %v762_v49, 0.0  ;;  %8576 = vmatprep.mubr.msk.bf16.mxu0 %vm511_vm0, %v9277_v42  ;;  %8877 = vmatpush3.bf16.msra.mxu1 %v9777_v58  ;;  %v1833_v57 = vmul.f32 %v7471_v50, %v1257_v48 }
  0xf0   :  { %v1836_v54 = vmul.f32 %v7472_v47, %v1260_v51  ;;  %8878 = vmatprep.subr.bf16.mxu1 %v9286_v46 }
  0xf1   :  { %v1834_v59 = vmul.f32 %v7471_v50, %v1258_v52  ;;  %v8470_v60 = vpop.f32.mrb[8].mxu0 }
  0xf2   :  { %v783_v61 = vadd.f32 %v8470_v60, %v9854_v13  ;;  %v774_v62 = vpop.f32.mrb[9].mxu0  ;;  %v9910_v0 = vpack.c.bf16 %v1836_v54, %v1835_v53  ;;  %v7478_v54 = vld [vmem:[%s12429_s3 + $0x9] ss:$0 sm:$0xff] }
  0xf3   :  { %v775_v58 = vadd.f32 %v9854_v13, %v774_v62  ;;  %v8471_v1 = vpop.f32.mrb[10].mxu0  ;;  %v9913_v2 = vpack.c.bf16 %v1834_v59, %v1833_v57  ;;  %8879 = vmatpush3.bf16.msra.mxu1 %v9286_v46  ;;  %v9282_v46 = vld [vmem:[%s12426_s0 + $0x1f8] sm:$0xff]   ;;  %v7477_v59 = vld [vmem:[%s12429_s3 + $0x8] ss:$0 sm:$0xff] }
  0xf4   :  { %v1263_v4 = vmax.f32 %v783_v61, 0.0  ;;  %v786_v5 = vadd.f32 %v8471_v1, %v9854_v13  ;;  %v777_v6 = vpop.f32.mrb[11].mxu0  ;;  %8880 = vmatprep.subr.bf16.mxu1 %v9288_v56 }
  0xf5   :  { %v1261_v8 = vmax.f32 %v775_v58, 0.0  ;;  %v778_v9 = vadd.f32 %v9854_v13, %v777_v6  ;;  %8608 = vmatprep.mubr.bf16.mxu1 %v9913_v2 }
  0xf6   :  { %v1264_v11 = vmax.f32 %v786_v5, 0.0  ;;  %8577 = vmatmul.mubr.msk.bf16.gmra.mrb[116].mxu0 %vm511_vm0, %v9278_v63  ;;  %8609 = vmatmul.mubr.bf16.gmra.mrb[4].mxu1 %v9910_v0  ;;  %v1839_v14 = vmul.f32 %v7474_v7, %v1263_v4 }
  0xf7   :  { %v1262_v12 = vmax.f32 %v778_v9, 0.0  ;;  %8580 = vmatprep.mubr.msk.bf16.mxu0 %vm511_vm0, %v9279_v3  ;;  %8881 = vmatpush3.bf16.msra.mxu1 %v9288_v56  ;;  %v1837_v16 = vmul.f32 %v7473_v10, %v1261_v8 }
  0xf8   :  { %v1840_v15 = vmul.f32 %v7474_v7, %v1264_v11  ;;  %8882 = vmatprep.subr.bf16.mxu1 %v9290_v19 }
  0xf9   :  { %v1838_v17 = vmul.f32 %v7473_v10, %v1262_v12  ;;  %v8474_v18 = vpop.f32.mrb[12].mxu0 }
  0xfa   :  { %v799_v20 = vadd.f32 %v8474_v18, %v9854_v13  ;;  %v790_v21 = vpop.f32.mrb[13].mxu0  ;;  %v9937_v23 = vpack.c.bf16 %v1840_v15, %v1839_v14  ;;  %v9285_v14 = vld [vmem:[%s12427_s4 + $0xc8] sm:$0xff]  }
  0xfb   :  { %v791_v24 = vadd.f32 %v9854_v13, %v790_v21  ;;  %v8475_v25 = vpop.f32.mrb[14].mxu0  ;;  %v9940_v26 = vpack.c.bf16 %v1838_v17, %v1837_v16  ;;  %8883 = vmatpush3.bf16.msra.mxu1 %v9290_v19  ;;  %v7480_v15 = vld [vmem:[%s12429_s3 + $0xb] ss:$0 sm:$0xff]  ;;  %v7479_v18 = vld [vmem:[%s12429_s3 + $0xa] ss:$0 sm:$0xff] }
  0xfc   :  { %v1267_v28 = vmax.f32 %v799_v20, 0.0  ;;  %v802_v29 = vadd.f32 %v8475_v25, %v9854_v13  ;;  %v793_v30 = vpop.f32.mrb[15].mxu0 }
  0xfd   :  { %v1265_v32 = vmax.f32 %v791_v24, 0.0  ;;  %v794_v33 = vadd.f32 %v9854_v13, %v793_v30  ;;  %8612 = vmatprep.mubr.bf16.mxu1 %v9940_v26  ;;  %v9287_v24 = vld [vmem:[%s12427_s4 + $0xd0] sm:$0xff]  }
  0xfe   :  { %v1268_v35 = vmax.f32 %v802_v29, 0.0  ;;  %8581 = vmatmul.mubr.msk.bf16.gmra.mrb[120].mxu0 %vm511_vm0, %v9280_v22  ;;  %8613 = vmatmul.mubr.bf16.gmra.mrb[8].mxu1 %v9937_v23  ;;  %v1843_v37 = vmul.f32 %v7476_v31, %v1267_v28 }
  0xff   :  { %v1266_v36 = vmax.f32 %v794_v33, 0.0  ;;  %8584 = vmatprep.mubr.msk.bf16.mxu0 %vm511_vm0, %v9281_v27  ;;  %v1841_v40 = vmul.f32 %v7475_v34, %v1265_v32 }
 0x100   :  { %v1844_v39 = vmul.f32 %v7476_v31, %v1268_v35 }
 0x101   :  { %v1842_v42 = vmul.f32 %v7475_v34, %v1266_v36  ;;  %v8478_v43 = vpop.f32.mrb[16].mxu0 }
 0x102   :  { %v815_v44 = vadd.f32 %v8478_v43, %v9854_v13  ;;  %v806_v45 = vpop.f32.mrb[17].mxu0  ;;  %v9961_v47 = vpack.c.bf16 %v1844_v39, %v1843_v37  ;;  %v9289_v37 = vld [vmem:[%s12427_s4 + $0xd8] sm:$0xff]   ;;  %v7482_v39 = vld [vmem:[%s12429_s3 + $0xd] ss:$0 sm:$0xff]  ;;  %v7481_v43 = vld [vmem:[%s12429_s3 + $0xc] ss:$0 sm:$0xff] }
 0x103   :  { %v807_v48 = vadd.f32 %v9854_v13, %v806_v45  ;;  %v8479_v49 = vpop.f32.mrb[18].mxu0  ;;  %v9964_v50 = vpack.c.bf16 %v1842_v42, %v1841_v40 }
 0x104   :  { %v1271_v51 = vmax.f32 %v815_v44, 0.0  ;;  %v818_v52 = vadd.f32 %v8479_v49, %v9854_v13  ;;  %v809_v53 = vpop.f32.mrb[19].mxu0  ;;  %v9291_v49 = vld [vmem:[%s12427_s4 + $0xe0] sm:$0xff]  }
 0x105   :  { %v1269_v56 = vmax.f32 %v807_v48, 0.0  ;;  %v810_v57 = vadd.f32 %v9854_v13, %v809_v53  ;;  %8616 = vmatprep.mubr.bf16.mxu1 %v9964_v50 }
 0x106   :  { %v1272_v60 = vmax.f32 %v818_v52, 0.0  ;;  %8585 = vmatmul.mubr.msk.bf16.gmra.mrb[124].mxu0 %vm511_vm0, %v9282_v46  ;;  %8617 = vmatmul.mubr.bf16.gmra.mrb[12].mxu1 %v9961_v47  ;;  %v1847_v62 = vmul.f32 %v7478_v54, %v1271_v51 }
 0x107   :  { %v1270_v61 = vmax.f32 %v810_v57, 0.0  ;;  %8748 = vmatprep.mubr.bf16.mxu0 %v9882_v41  ;;  %v1845_v58 = vmul.f32 %v7477_v59, %v1269_v56 }
 0x108   :  { %v1848_v63 = vmul.f32 %v7478_v54, %v1272_v60  ;;  %v9292_v54 = vld [vmem:[%s12427_s4 + $0xa0] sm:$0xff]  }
 0x109   :  { %v1846_v1 = vmul.f32 %v7477_v59, %v1270_v61  ;;  %v8482_v3 = vpop.f32.mrb[20].mxu0  ;;  %8884 = vmatprep.subr.bf16.mxu1 %v9292_v54 }
 0x10a   :  { %v831_v4 = vadd.f32 %v8482_v3, %v9854_v13  ;;  %v822_v5 = vpop.f32.mrb[21].mxu0  ;;  %v9979_v6 = vpack.c.bf16 %v1848_v63, %v1847_v62  ;;  %8885 = vmatpush3.bf16.msra.mxu1 %v9292_v54  ;;  %v7484_v3 = vld [vmem:[%s12429_s3 + $0xf] ss:$0 sm:$0xff] }
 0x10b   :  { %v823_v7 = vadd.f32 %v9854_v13, %v822_v5  ;;  %v8483_v8 = vpop.f32.mrb[22].mxu0  ;;  %v9982_v9 = vpack.c.bf16 %v1846_v1, %v1845_v58 }
 0x10c   :  { %v1275_v10 = vmax.f32 %v831_v4, 0.0  ;;  %v834_v11 = vadd.f32 %v8483_v8, %v9854_v13  ;;  %v825_v12 = vpop.f32.mrb[23].mxu0 }
 0x10d   :  { %v1273_v16 = vmax.f32 %v823_v7, 0.0  ;;  %v826_v17 = vadd.f32 %v9854_v13, %v825_v12  ;;  %8620 = vmatprep.mubr.bf16.mxu1 %v9982_v9  ;;  %v7483_v7 = vld [vmem:[%s12429_s3 + $0xe] ss:$0 sm:$0xff] }
 0x10e   :  { %v1276_v19 = vmax.f32 %v834_v11, 0.0  ;;  %8621 = vmatmul.mubr.bf16.gmra.mrb[16].mxu1 %v9979_v6  ;;  %8749 = vmatmul.mubr.bf16.vlgmr.msra.gmra.mrb[128].mxu0 %v9879_v38  ;;  %v1851_v21 = vmul.f32 %v7480_v15, %v1275_v10 }
 0x10f   :  { %v1274_v20 = vmax.f32 %v826_v17, 0.0  ;;  %8752 = vmatprep.mubr.bf16.mxu0 %v9913_v2  ;;  %9021 = vmatpush3.bf16.msra.mxu0 %v9763_v55  ;;  %v1849_v25 = vmul.f32 %v7479_v18, %v1273_v16 }
 0x110   :  { %v1852_v22 = vmul.f32 %v7480_v15, %v1276_v19  ;;  %9022 = vmatprep.subr.bf16.mxu0 %v9285_v14 }
 0x111   :  { %v1850_v27 = vmul.f32 %v7479_v18, %v1274_v20  ;;  %v8486_v28 = vpop.f32.mrb[24].mxu0 }
 0x112   :  { %v847_v29 = vadd.f32 %v8486_v28, %v9854_v13  ;;  %v838_v30 = vpop.f32.mrb[25].mxu0  ;;  %v10004_v31 = vpack.c.bf16 %v1852_v22, %v1851_v21  ;;  %v7486_v28 = vld [vmem:[%s12429_s3 + $0x11] ss:$0 sm:$0xff] }
 0x113   :  { %v839_v32 = vadd.f32 %v9854_v13, %v838_v30  ;;  %v8487_v33 = vpop.f32.mrb[26].mxu0  ;;  %v10007_v34 = vpack.c.bf16 %v1850_v27, %v1849_v25  ;;  %9023 = vmatpush3.bf16.msra.mxu0 %v9285_v14 }
 0x114   :  { %v1279_v55 = vmax.f32 %v847_v29, 0.0  ;;  %v850_v35 = vadd.f32 %v8487_v33, %v9854_v13  ;;  %v841_v36 = vpop.f32.mrb[27].mxu0  ;;  %9024 = vmatprep.subr.bf16.mxu0 %v9287_v24 }
 0x115   :  { %v1277_v40 = vmax.f32 %v839_v32, 0.0  ;;  %v842_v42 = vadd.f32 %v9854_v13, %v841_v36  ;;  %8624 = vmatprep.mubr.bf16.mxu1 %v10007_v34  ;;  %v7485_v32 = vld [vmem:[%s12429_s3 + $0x10] ss:$0 sm:$0xff] }
 0x116   :  { %v1280_v44 = vmax.f32 %v850_v35, 0.0  ;;  %8625 = vmatmul.mubr.bf16.gmra.mrb[20].mxu1 %v10004_v31  ;;  %8753 = vmatmul.mubr.bf16.gmra.mrb[132].mxu0 %v9910_v0  ;;  %v1855_v46 = vmul.f32 %v7482_v39, %v1279_v55 }
 0x117   :  { %v1278_v45 = vmax.f32 %v842_v42, 0.0  ;;  %8756 = vmatprep.mubr.bf16.mxu0 %v9940_v26  ;;  %9025 = vmatpush3.bf16.msra.mxu0 %v9287_v24  ;;  %v1853_v51 = vmul.f32 %v7481_v43, %v1277_v40 }
 0x118   :  { %v1856_v48 = vmul.f32 %v7482_v39, %v1280_v44  ;;  %9026 = vmatprep.subr.bf16.mxu0 %v9289_v37 }
 0x119   :  { %v1854_v52 = vmul.f32 %v7481_v43, %v1278_v45  ;;  %v8490_v53 = vpop.f32.mrb[28].mxu0 }
 0x11a   :  { %v863_v56 = vadd.f32 %v8490_v53, %v9854_v13  ;;  %v854_v57 = vpop.f32.mrb[29].mxu0  ;;  %v10031_v59 = vpack.c.bf16 %v1856_v48, %v1855_v46  ;;  %v7488_v53 = vld [vmem:[%s12429_s3 + $0x13] ss:$0 sm:$0xff] }
 0x11b   :  { %v855_v60 = vadd.f32 %v9854_v13, %v854_v57  ;;  %v8491_v61 = vpop.f32.mrb[30].mxu0  ;;  %v10034_v62 = vpack.c.bf16 %v1854_v52, %v1853_v51  ;;  %9027 = vmatpush3.bf16.msra.mxu0 %v9289_v37  ;;  %v7487_v57 = vld [vmem:[%s12429_s3 + $0x12] ss:$0 sm:$0xff] }
 0x11c   :  { %v1283_v63 = vmax.f32 %v863_v56, 0.0  ;;  %v866_v58 = vadd.f32 %v8491_v61, %v9854_v13  ;;  %v857_v1 = vpop.f32.mrb[31].mxu0  ;;  %9028 = vmatprep.subr.bf16.mxu0 %v9291_v49 }
 0x11d   :  { %v1281_v4 = vmax.f32 %v855_v60, 0.0  ;;  %v858_v5 = vadd.f32 %v9854_v13, %v857_v1  ;;  %8628 = vmatprep.mubr.bf16.mxu1 %v10034_v62 }
 0x11e   :  { %v1284_v8 = vmax.f32 %v866_v58, 0.0  ;;  %8629 = vmatmul.mubr.bf16.gmra.mrb[24].mxu1 %v10031_v59  ;;  %8757 = vmatmul.mubr.bf16.gmra.mrb[136].mxu0 %v9937_v23  ;;  %v1859_v11 = vmul.f32 %v7484_v3, %v1283_v63 }
 0x11f   :  { %v1282_v10 = vmax.f32 %v858_v5, 0.0  ;;  %8760 = vmatprep.mubr.bf16.mxu0 %v9964_v50  ;;  %9029 = vmatpush3.bf16.msra.mxu0 %v9291_v49  ;;  %v1857_v14 = vmul.f32 %v7483_v7, %v1281_v4  ;;  %v9293_v5 = vld [vmem:[%s12427_s4 + $0xe8] sm:$0xff]  }
 0x120   :  { %v1860_v12 = vmul.f32 %v7484_v3, %v1284_v8  ;;  %9030 = vmatprep.subr.bf16.mxu0 %v9293_v5 }
 0x121   :  { %v1858_v15 = vmul.f32 %v7483_v7, %v1282_v10  ;;  %v8494_v16 = vpop.f32.mrb[32].mxu0 }
 0x122   :  { %v879_v17 = vadd.f32 %v8494_v16, %v9854_v13  ;;  %v870_v18 = vpop.f32.mrb[33].mxu0  ;;  %v10049_v19 = vpack.c.bf16 %v1860_v12, %v1859_v11 }
 0x123   :  { %v871_v20 = vadd.f32 %v9854_v13, %v870_v18  ;;  %v8495_v21 = vpop.f32.mrb[34].mxu0  ;;  %v10052_v22 = vpack.c.bf16 %v1858_v15, %v1857_v14  ;;  %9031 = vmatpush3.bf16.msra.mxu0 %v9293_v5  ;;  %v7490_v18 = vld [vmem:[%s12429_s3 + $0x15] ss:$0 sm:$0xff] }
 0x124   :  { %v1287_v24 = vmax.f32 %v879_v17, 0.0  ;;  %v882_v25 = vadd.f32 %v8495_v21, %v9854_v13  ;;  %v873_v27 = vpop.f32.mrb[35].mxu0 }
 0x125   :  { %v1285_v29 = vmax.f32 %v871_v20, 0.0  ;;  %v874_v30 = vadd.f32 %v9854_v13, %v873_v27  ;;  %8632 = vmatprep.mubr.bf16.mxu1 %v10052_v22 }
 0x126   :  { %v1288_v33 = vmax.f32 %v882_v25, 0.0  ;;  %8633 = vmatmul.mubr.bf16.gmra.mrb[28].mxu1 %v10049_v19  ;;  %8761 = vmatmul.mubr.bf16.gmra.mrb[140].mxu0 %v9961_v47  ;;  %v1863_v35 = vmul.f32 %v7486_v28, %v1287_v24  ;;  %v7489_v24 = vld [vmem:[%s12429_s3 + $0x14] ss:$0 sm:$0xff] }
 0x127   :  { %v1286_v55 = vmax.f32 %v874_v30, 0.0  ;;  %8764 = vmatprep.mubr.bf16.mxu0 %v9982_v9  ;;  %v1861_v37 = vmul.f32 %v7485_v32, %v1285_v29 }
 0x128   :  { %v1864_v36 = vmul.f32 %v7486_v28, %v1288_v33 }
 0x129   :  { %v1862_v39 = vmul.f32 %v7485_v32, %v1286_v55  ;;  %v8498_v40 = vpop.f32.mrb[36].mxu0  ;;  %v9294_v55 = vld [vmem:[%s12427_s4 + $0xa8] sm:$0xff]  }
 0x12a   :  { %v895_v42 = vadd.f32 %v8498_v40, %v9854_v13  ;;  %v886_v43 = vpop.f32.mrb[37].mxu0  ;;  %v10067_v44 = vpack.c.bf16 %v1864_v36, %v1863_v35  ;;  %8886 = vmatprep.subr.bf16.mxu1 %v9294_v55 }
 0x12b   :  { %v887_v45 = vadd.f32 %v9854_v13, %v886_v43  ;;  %v8499_v46 = vpop.f32.mrb[38].mxu0  ;;  %v10070_v48 = vpack.c.bf16 %v1862_v39, %v1861_v37  ;;  %8887 = vmatpush3.bf16.msra.mxu1 %v9294_v55 }
 0x12c   :  { %v1291_v49 = vmax.f32 %v895_v42, 0.0  ;;  %v898_v51 = vadd.f32 %v8499_v46, %v9854_v13  ;;  %v889_v52 = vpop.f32.mrb[39].mxu0 }
 0x12d   :  { %v1289_v54 = vmax.f32 %v887_v45, 0.0  ;;  %v890_v56 = vadd.f32 %v9854_v13, %v889_v52  ;;  %8636 = vmatprep.mubr.bf16.mxu1 %v10070_v48 }
 0x12e   :  { %v1292_v60 = vmax.f32 %v898_v51, 0.0  ;;  %8637 = vmatmul.mubr.bf16.gmra.mrb[32].mxu1 %v10067_v44  ;;  %8765 = vmatmul.mubr.bf16.gmra.mrb[144].mxu0 %v9979_v6  ;;  %v1867_v63 = vmul.f32 %v7488_v53, %v1291_v49  ;;  %v7492_v49 = vld [vmem:[%s12429_s3 + $0x17] ss:$0 sm:$0xff] }
 0x12f   :  { %v1290_v61 = vmax.f32 %v890_v56, 0.0  ;;  %8768 = vmatprep.mubr.bf16.mxu0 %v10007_v34  ;;  %v1865_v1 = vmul.f32 %v7487_v57, %v1289_v54 }
 0x130   :  { %v1868_v58 = vmul.f32 %v7488_v53, %v1292_v60  ;;  %v7491_v53 = vld [vmem:[%s12429_s3 + $0x16] ss:$0 sm:$0xff] }
 0x131   :  { %v1866_v3 = vmul.f32 %v7487_v57, %v1290_v61  ;;  %v8502_v4 = vpop.f32.mrb[40].mxu0 }
 0x132   :  { %v911_v7 = vadd.f32 %v8502_v4, %v9854_v13  ;;  %v902_v8 = vpop.f32.mrb[41].mxu0  ;;  %v10088_v10 = vpack.c.bf16 %v1868_v58, %v1867_v63 }
 0x133   :  { %v903_v11 = vadd.f32 %v9854_v13, %v902_v8  ;;  %v8503_v12 = vpop.f32.mrb[42].mxu0  ;;  %v10091_v14 = vpack.c.bf16 %v1866_v3, %v1865_v1 }
 0x134   :  { %v1295_v15 = vmax.f32 %v911_v7, 0.0  ;;  %v914_v16 = vadd.f32 %v8503_v12, %v9854_v13  ;;  %v905_v17 = vpop.f32.mrb[43].mxu0 }
 0x135   :  { %v1293_v20 = vmax.f32 %v903_v11, 0.0  ;;  %v906_v21 = vadd.f32 %v9854_v13, %v905_v17  ;;  %8640 = vmatprep.mubr.bf16.mxu1 %v10091_v14 }
 0x136   :  { %v1296_v25 = vmax.f32 %v914_v16, 0.0  ;;  %8641 = vmatmul.mubr.bf16.gmra.mrb[36].mxu1 %v10088_v10  ;;  %8769 = vmatmul.mubr.bf16.gmra.mrb[148].mxu0 %v10004_v31  ;;  %v1871_v28 = vmul.f32 %v7490_v18, %v1295_v15  ;;  %v7494_v16 = vld [vmem:[%s12429_s3 + $0x19] ss:$0 sm:$0xff] }
 0x137   :  { %v1294_v27 = vmax.f32 %v906_v21, 0.0  ;;  %8772 = vmatprep.mubr.bf16.mxu0 %v10034_v62  ;;  %v1869_v30 = vmul.f32 %v7489_v24, %v1293_v20  ;;  %v7493_v20 = vld [vmem:[%s12429_s3 + $0x18] ss:$0 sm:$0xff] }
 0x138   :  { %v1872_v29 = vmul.f32 %v7490_v18, %v1296_v25 }
 0x139   :  { %v1870_v32 = vmul.f32 %v7489_v24, %v1294_v27  ;;  %v8506_v33 = vpop.f32.mrb[44].mxu0 }
 0x13a   :  { %v927_v35 = vadd.f32 %v8506_v33, %v9854_v13  ;;  %v918_v36 = vpop.f32.mrb[45].mxu0  ;;  %v10109_v37 = vpack.c.bf16 %v1872_v29, %v1871_v28 }
 0x13b   :  { %v919_v39 = vadd.f32 %v9854_v13, %v918_v36  ;;  %v8507_v40 = vpop.f32.mrb[46].mxu0  ;;  %v10112_v42 = vpack.c.bf16 %v1870_v32, %v1869_v30 }
 0x13c   :  { %v1299_v43 = vmax.f32 %v927_v35, 0.0  ;;  %v930_v45 = vadd.f32 %v8507_v40, %v9854_v13  ;;  %v921_v46 = vpop.f32.mrb[47].mxu0 }
 0x13d   :  { %v1297_v51 = vmax.f32 %v919_v39, 0.0  ;;  %v922_v52 = vadd.f32 %v9854_v13, %v921_v46  ;;  %8644 = vmatprep.mubr.bf16.mxu1 %v10112_v42  ;;  %v7496_v46 = vld [vmem:[%s12429_s3 + $0x1b] ss:$0 sm:$0xff] }
 0x13e   :  { %v1300_v54 = vmax.f32 %v930_v45, 0.0  ;;  %8645 = vmatmul.mubr.bf16.gmra.mrb[40].mxu1 %v10109_v37  ;;  %8773 = vmatmul.mubr.bf16.gmra.mrb[152].mxu0 %v10031_v59  ;;  %v1875_v57 = vmul.f32 %v7492_v49, %v1299_v43 }
 0x13f   :  { %v1298_v56 = vmax.f32 %v922_v52, 0.0  ;;  %8776 = vmatprep.mubr.bf16.mxu0 %v10052_v22  ;;  %v1873_v61 = vmul.f32 %v7491_v53, %v1297_v51  ;;  %v7495_v52 = vld [vmem:[%s12429_s3 + $0x1a] ss:$0 sm:$0xff] }
 0x140   :  { %v1876_v60 = vmul.f32 %v7492_v49, %v1300_v54 }
 0x141   :  { %v1874_v63 = vmul.f32 %v7491_v53, %v1298_v56  ;;  %v8510_v58 = vpop.f32.mrb[48].mxu0 }
 0x142   :  { %v943_v1 = vadd.f32 %v8510_v58, %v9854_v13  ;;  %v934_v3 = vpop.f32.mrb[49].mxu0  ;;  %v10127_v4 = vpack.c.bf16 %v1876_v60, %v1875_v57  ;;  %v9295_v58 = vld [vmem:[%s12427_s4 + $0xf0] sm:$0xff]  }
 0x143   :  { %v935_v5 = vadd.f32 %v9854_v13, %v934_v3  ;;  %v8511_v7 = vpop.f32.mrb[50].mxu0  ;;  %v10130_v8 = vpack.c.bf16 %v1874_v63, %v1873_v61  ;;  %9032 = vmatprep.subr.bf16.mxu0 %v9295_v58 }
 0x144   :  { %12498 = vst [vmem:[#allocation3_spill] sm:$0xff] %v10127_v4  ;;  %v1303_v11 = vmax.f32 %v943_v1, 0.0  ;;  %v946_v12 = vadd.f32 %v8511_v7, %v9854_v13  ;;  %v937_v15 = vpop.f32.mrb[51].mxu0  ;;  %9033 = vmatpush3.bf16.msra.mxu0 %v9295_v58 }
 0x145   :  { %v1301_v17 = vmax.f32 %v935_v5, 0.0  ;;  %v938_v18 = vadd.f32 %v9854_v13, %v937_v15  ;;  %8648 = vmatprep.mubr.bf16.mxu1 %v10130_v8 }
 0x146   :  { %v1304_v21 = vmax.f32 %v946_v12, 0.0  ;;  %8649 = vmatmul.mubr.bf16.gmra.mrb[44].mxu1 %v10127_v4  ;;  %8777 = vmatmul.mubr.bf16.gmra.mrb[156].mxu0 %v10049_v19  ;;  %v1879_v25 = vmul.f32 %v7494_v16, %v1303_v11 }
 0x147   :  { %v1302_v24 = vmax.f32 %v938_v18, 0.0  ;;  %8780 = vmatprep.mubr.bf16.mxu0 %v10070_v48  ;;  %v1877_v28 = vmul.f32 %v7493_v20, %v1301_v17  ;;  %v7498_v18 = vld [vmem:[%s12429_s3 + $0x1d] ss:$0 sm:$0xff] }
 0x148   :  { %v1880_v27 = vmul.f32 %v7494_v16, %v1304_v21 }
 0x149   :  { %v1878_v29 = vmul.f32 %v7493_v20, %v1302_v24  ;;  %v8514_v30 = vpop.f32.mrb[52].mxu0  ;;  %v7497_v24 = vld [vmem:[%s12429_s3 + $0x1c] ss:$0 sm:$0xff] }
 0x14a   :  { %v959_v32 = vadd.f32 %v8514_v30, %v9854_v13  ;;  %v950_v33 = vpop.f32.mrb[53].mxu0  ;;  %v10145_v55 = vpack.c.bf16 %v1880_v27, %v1879_v25 }
 0x14b   :  { %v951_v35 = vadd.f32 %v9854_v13, %v950_v33  ;;  %v8515_v36 = vpop.f32.mrb[54].mxu0  ;;  %v10148_v39 = vpack.c.bf16 %v1878_v29, %v1877_v28 }
 0x14c   :  { %12499 = vst [vmem:[#allocation4_spill] sm:$0xff] %v10145_v55  ;;  %v1307_v40 = vmax.f32 %v959_v32, 0.0  ;;  %v962_v43 = vadd.f32 %v8515_v36, %v9854_v13  ;;  %v953_v45 = vpop.f32.mrb[55].mxu0 }
 0x14d   :  { %12500 = vst [vmem:[#allocation5_spill] sm:$0xff] %v10148_v39  ;;  %v1305_v49 = vmax.f32 %v951_v35, 0.0  ;;  %v954_v51 = vadd.f32 %v9854_v13, %v953_v45  ;;  %8652 = vmatprep.mubr.bf16.mxu1 %v10148_v39  ;;  %v9296_v35 = vld [vmem:[%s12427_s4 + $0xb0] sm:$0xff]  }
 0x14e   :  { %v1308_v53 = vmax.f32 %v962_v43, 0.0  ;;  %8653 = vmatmul.mubr.bf16.gmra.mrb[48].mxu1 %v10145_v55  ;;  %8781 = vmatmul.mubr.bf16.gmra.mrb[160].mxu0 %v10067_v44  ;;  %v1883_v56 = vmul.f32 %v7496_v46, %v1307_v40 }
 0x14f   :  { %v1306_v54 = vmax.f32 %v954_v51, 0.0  ;;  %8784 = vmatprep.mubr.bf16.mxu0 %v10091_v14  ;;  %v1881_v60 = vmul.f32 %v7495_v52, %v1305_v49  ;;  %8888 = vmatprep.subr.bf16.mxu1 %v9296_v35 }
 0x150   :  { %v1884_v57 = vmul.f32 %v7496_v46, %v1308_v53  ;;  %8889 = vmatpush3.bf16.msra.mxu1 %v9296_v35 }
 0x151   :  { %v1882_v61 = vmul.f32 %v7495_v52, %v1306_v54  ;;  %v8518_v63 = vpop.f32.mrb[56].mxu0  ;;  %v7500_v54 = vld [vmem:[%s12429_s3 + $0x1f] ss:$0 sm:$0xff] }
 0x152   :  { %v975_v1 = vadd.f32 %v8518_v63, %v9854_v13  ;;  %v966_v3 = vpop.f32.mrb[57].mxu0  ;;  %v10166_v5 = vpack.c.bf16 %v1884_v57, %v1883_v56 }
 0x153   :  { %v967_v7 = vadd.f32 %v9854_v13, %v966_v3  ;;  %v8519_v11 = vpop.f32.mrb[58].mxu0  ;;  %v10169_v12 = vpack.c.bf16 %v1882_v61, %v1881_v60  ;;  %v7499_v60 = vld [vmem:[%s12429_s3 + $0x1e] ss:$0 sm:$0xff] }
 0x154   :  { %12501 = vst [vmem:[#allocation6_spill] sm:$0xff] %v10166_v5  ;;  %v1311_v15 = vmax.f32 %v975_v1, 0.0  ;;  %v978_v16 = vadd.f32 %v8519_v11, %v9854_v13  ;;  %v969_v17 = vpop.f32.mrb[59].mxu0 }
 0x155   :  { %12502 = vst [vmem:[#allocation7_spill] sm:$0xff] %v10169_v12  ;;  %v1309_v20 = vmax.f32 %v967_v7, 0.0  ;;  %v970_v21 = vadd.f32 %v9854_v13, %v969_v17  ;;  %8656 = vmatprep.mubr.bf16.mxu1 %v10169_v12 }
 0x156   :  { %v1312_v25 = vmax.f32 %v978_v16, 0.0  ;;  %8657 = vmatmul.mubr.bf16.gmra.mrb[52].mxu1 %v10166_v5  ;;  %8785 = vmatmul.mubr.bf16.gmra.mrb[164].mxu0 %v10088_v10  ;;  %v1887_v28 = vmul.f32 %v7498_v18, %v1311_v15 }
 0x157   :  { %v1310_v27 = vmax.f32 %v970_v21, 0.0  ;;  %8788 = vmatprep.mubr.bf16.mxu0 %v10112_v42  ;;  %v1885_v30 = vmul.f32 %v7497_v24, %v1309_v20 }
 0x158   :  { %v1888_v29 = vmul.f32 %v7498_v18, %v1312_v25 }
 0x159   :  { %v1886_v32 = vmul.f32 %v7497_v24, %v1310_v27  ;;  %v8522_v33 = vpop.f32.mrb[60].mxu0 }
 0x15a   :  { %v991_v36 = vadd.f32 %v8522_v33, %v9854_v13  ;;  %v982_v40 = vpop.f32.mrb[61].mxu0  ;;  %v10187_v43 = vpack.c.bf16 %v1888_v29, %v1887_v28  ;;  %v7502_v28 = vld [vmem:[%s12429_s3 + $0x21] ss:$0 sm:$0xff] }
 0x15b   :  { %v983_v45 = vadd.f32 %v9854_v13, %v982_v40  ;;  %v8523_v46 = vpop.f32.mrb[62].mxu0  ;;  %v10190_v49 = vpack.c.bf16 %v1886_v32, %v1885_v30  ;;  %v7501_v32 = vld [vmem:[%s12429_s3 + $0x20] ss:$0 sm:$0xff] }
 0x15c   :  { %12503 = vst [vmem:[#allocation8_spill] sm:$0xff] %v10187_v43  ;;  %v1315_v51 = vmax.f32 %v991_v36, 0.0  ;;  %v994_v52 = vadd.f32 %v8523_v46, %v9854_v13  ;;  %v985_v53 = vpop.f32.mrb[63].mxu0 }
 0x15d   :  { %12504 = vst [vmem:[#allocation9_spill] sm:$0xff] %v10190_v49  ;;  %v1313_v56 = vmax.f32 %v983_v45, 0.0  ;;  %v986_v57 = vadd.f32 %v9854_v13, %v985_v53  ;;  %8660 = vmatprep.mubr.bf16.mxu1 %v10190_v49  ;;  %v9297_v45 = vld [vmem:[%s12427_s4 + $0xb8] sm:$0xff]  }
 0x15e   :  { %v1316_v61 = vmax.f32 %v994_v52, 0.0  ;;  %8661 = vmatmul.mubr.bf16.gmra.mrb[56].mxu1 %v10187_v43  ;;  %8789 = vmatmul.mubr.bf16.gmra.mrb[168].mxu0 %v10109_v37  ;;  %v1891_v58 = vmul.f32 %v7500_v54, %v1315_v51 }
 0x15f   :  { %v1314_v63 = vmax.f32 %v986_v57, 0.0  ;;  %8792 = vmatprep.mubr.bf16.mxu0 %v10130_v8  ;;  %v1889_v3 = vmul.f32 %v7499_v60, %v1313_v56  ;;  %8890 = vmatprep.subr.bf16.mxu1 %v9297_v45 }
 0x160   :  { %v1892_v1 = vmul.f32 %v7500_v54, %v1316_v61  ;;  %8891 = vmatpush3.bf16.msra.mxu1 %v9297_v45 }
 0x161   :  { %v1890_v7 = vmul.f32 %v7499_v60, %v1314_v63  ;;  %v8526_v11 = vpop.f32.mrb[64].mxu0 }
 0x162   :  { %v1007_v15 = vadd.f32 %v8526_v11, %v9854_v13  ;;  %v998_v16 = vpop.f32.mrb[65].mxu0  ;;  %v10205_v17 = vpack.c.bf16 %v1892_v1, %v1891_v58 }
 0x163   :  { %v999_v18 = vadd.f32 %v9854_v13, %v998_v16  ;;  %v8527_v20 = vpop.f32.mrb[66].mxu0  ;;  %v10208_v21 = vpack.c.bf16 %v1890_v7, %v1889_v3  ;;  %v7504_v3 = vld [vmem:[%s12429_s3 + $0x23] ss:$0 sm:$0xff] }
 0x164   :  { %12505 = vst [vmem:[#allocation10_spill] sm:$0xff] %v10205_v17  ;;  %v1319_v24 = vmax.f32 %v1007_v15, 0.0  ;;  %v1010_v25 = vadd.f32 %v8527_v20, %v9854_v13  ;;  %v1001_v27 = vpop.f32.mrb[67].mxu0  ;;  %v7503_v15 = vld [vmem:[%s12429_s3 + $0x22] ss:$0 sm:$0xff] }
 0x165   :  { %12506 = vst [vmem:[#allocation11_spill] sm:$0xff] %v10208_v21  ;;  %v1317_v29 = vmax.f32 %v999_v18, 0.0  ;;  %v1002_v30 = vadd.f32 %v9854_v13, %v1001_v27  ;;  %8664 = vmatprep.mubr.bf16.mxu1 %v10208_v21  ;;  %v9298_v18 = vld [vmem:[%s12427_s4 + $0xf8] sm:$0xff]  }
 0x166   :  { %v1320_v33 = vmax.f32 %v1010_v25, 0.0  ;;  %8665 = vmatmul.mubr.bf16.gmra.mrb[60].mxu1 %v10205_v17  ;;  %8793 = vmatmul.mubr.bf16.gmra.mrb[172].mxu0 %v10127_v4  ;;  %v1895_v36 = vmul.f32 %v7502_v28, %v1319_v24 }
 0x167   :  { %v1318_v35 = vmax.f32 %v1002_v30, 0.0  ;;  %8796 = vmatprep.mubr.bf16.mxu0 %v10148_v39  ;;  %v1893_v46 = vmul.f32 %v7501_v32, %v1317_v29  ;;  %9034 = vmatprep.subr.bf16.mxu0 %v9298_v18 }
 0x168   :  { %v1896_v40 = vmul.f32 %v7502_v28, %v1320_v33  ;;  %9035 = vmatpush3.bf16.msra.mxu0 %v9298_v18 }
 0x169   :  { %v1894_v51 = vmul.f32 %v7501_v32, %v1318_v35  ;;  %v8530_v52 = vpop.f32.mrb[68].mxu0 }
 0x16a   :  { %v1023_v53 = vadd.f32 %v8530_v52, %v9854_v13  ;;  %v1014_v54 = vpop.f32.mrb[69].mxu0  ;;  %v10226_v56 = vpack.c.bf16 %v1896_v40, %v1895_v36  ;;  %v7506_v52 = vld [vmem:[%s12429_s3 + $0x25] ss:$0 sm:$0xff] }
 0x16b   :  { %v1015_v57 = vadd.f32 %v9854_v13, %v1014_v54  ;;  %v8531_v60 = vpop.f32.mrb[70].mxu0  ;;  %v10229_v61 = vpack.c.bf16 %v1894_v51, %v1893_v46 }
 0x16c   :  { %12507 = vst [vmem:[#allocation12_spill] sm:$0xff] %v10226_v56  ;;  %v1323_v63 = vmax.f32 %v1023_v53, 0.0  ;;  %v1026_v58 = vadd.f32 %v8531_v60, %v9854_v13  ;;  %v1017_v1 = vpop.f32.mrb[71].mxu0 }
 0x16d   :  { %12508 = vst [vmem:[#allocation13_spill] sm:$0xff] %v10229_v61  ;;  %v1321_v7 = vmax.f32 %v1015_v57, 0.0  ;;  %v1018_v11 = vadd.f32 %v9854_v13, %v1017_v1  ;;  %8668 = vmatprep.mubr.bf16.mxu1 %v10229_v61  ;;  %v7505_v57 = vld [vmem:[%s12429_s3 + $0x24] ss:$0 sm:$0xff] }
 0x16e   :  { %v1324_v16 = vmax.f32 %v1026_v58, 0.0  ;;  %8669 = vmatmul.mubr.bf16.gmra.mrb[64].mxu1 %v10226_v56  ;;  %8797 = vmatmul.mubr.bf16.gmra.mrb[176].mxu0 %v10145_v55  ;;  %v1899_v24 = vmul.f32 %v7504_v3, %v1323_v63 }
 0x16f   :  { %v1322_v20 = vmax.f32 %v1018_v11, 0.0  ;;  %8800 = vmatprep.mubr.bf16.mxu0 %v10169_v12  ;;  %v1897_v27 = vmul.f32 %v7503_v15, %v1321_v7 }
 0x170   :  { %v1900_v25 = vmul.f32 %v7504_v3, %v1324_v16 }
 0x171   :  { %v1898_v28 = vmul.f32 %v7503_v15, %v1322_v20  ;;  %v8534_v29 = vpop.f32.mrb[72].mxu0  ;;  %v10270_v20 = vld [vmem:[%s12428_s2] ss:$0 sm:$0xff] }
 0x172   :  { %v1039_v30 = vadd.f32 %v8534_v29, %v9854_v13  ;;  %v1030_v32 = vpop.f32.mrb[73].mxu0  ;;  %v10247_v33 = vpack.c.bf16 %v1900_v25, %v1899_v24 }
 0x173   :  { %v1031_v35 = vadd.f32 %v9854_v13, %v1030_v32  ;;  %v8535_v36 = vpop.f32.mrb[74].mxu0  ;;  %v10250_v40 = vpack.c.bf16 %v1898_v28, %v1897_v27 }
 0x174   :  { %12509 = vst [vmem:[#allocation14_spill] sm:$0xff] %v10247_v33  ;;  %v1327_v45 = vmax.f32 %v1039_v30, 0.0  ;;  %v1042_v46 = vadd.f32 %v8535_v36, %v9854_v13  ;;  %v1033_v51 = vpop.f32.mrb[75].mxu0  ;;  %v7507_v36 = vld [vmem:[%s12429_s3 + $0x26] ss:$0 sm:$0xff] }
 0x175   :  { %12510 = vst [vmem:[#allocation15_spill] sm:$0xff] %v10250_v40  ;;  %v1325_v53 = vmax.f32 %v1031_v35, 0.0  ;;  %v1034_v54 = vadd.f32 %v9854_v13, %v1033_v51  ;;  %8672 = vmatprep.mubr.bf16.mxu1 %v10250_v40 }
 0x176   :  { %v1328_v60 = vmax.f32 %v1042_v46, 0.0  ;;  %8673 = vmatmul.mubr.bf16.gmra.mrb[68].mxu1 %v10247_v33  ;;  %8801 = vmatmul.mubr.bf16.gmra.mrb[180].mxu0 %v10166_v5  ;;  %v1903_v58 = vmul.f32 %v7506_v52, %v1327_v45 }
 0x177   :  { %v1326_v63 = vmax.f32 %v1034_v54, 0.0  ;;  %8804 = vmatprep.mubr.bf16.mxu0 %v10190_v49  ;;  %v1901_v3 = vmul.f32 %v7505_v57, %v1325_v53 }
 0x178   :  { %v1904_v1 = vmul.f32 %v7506_v52, %v1328_v60 }
 0x179   :  { %v1902_v7 = vmul.f32 %v7505_v57, %v1326_v63  ;;  %v8538_v11 = vpop.f32.mrb[76].mxu0 }
 0x17a   :  { %v1055_v15 = vadd.f32 %v8538_v11, %v9854_v13  ;;  %v1046_v16 = vpop.f32.mrb[77].mxu0  ;;  %v10265_v18 = vpack.c.bf16 %v1904_v1, %v1903_v58  ;;  %v7508_v13 = vld [vmem:[%s12429_s3 + $0x27] ss:$0 sm:$0xff] }
 0x17b   :  { %v1047_v24 = vadd.f32 %v10270_v20, %v1046_v16  ;;  %v8539_v25 = vpop.f32.mrb[78].mxu0  ;;  %v10273_v27 = vpack.c.bf16 %v1902_v7, %v1901_v3 }
 0x17c   :  { %12511 = vst [vmem:[#allocation16_spill] sm:$0xff] %v10265_v18  ;;  %v1331_v28 = vmax.f32 %v1055_v15, 0.0  ;;  %v1058_v29 = vadd.f32 %v10270_v20, %v8539_v25  ;;  %v1049_v30 = vpop.f32.mrb[79].mxu0 }
 0x17d   :  { %12512 = vst [vmem:[#allocation17_spill] sm:$0xff] %v10273_v27  ;;  %v1329_v32 = vmax.f32 %v1047_v24, 0.0  ;;  %v1050_v35 = vadd.f32 %v10270_v20, %v1049_v30  ;;  %8676 = vmatprep.mubr.bf16.mxu1 %v10273_v27  ;;  %v7510_v24 = vld [vmem:[%s12429_s3 + $0x29] ss:$0 sm:$0xff] }
 0x17e   :  { %v1332_v45 = vmax.f32 %v1058_v29, 0.0  ;;  %8677 = vmatmul.mubr.bf16.gmra.mrb[72].mxu1 %v10265_v18  ;;  %8805 = vmatmul.mubr.bf16.gmra.mrb[184].mxu0 %v10187_v43  ;;  %v1907_v51 = vmul.f32 %v7508_v13, %v1331_v28  ;;  %v7509_v29 = vld [vmem:[%s12429_s3 + $0x28] ss:$0 sm:$0xff] }
 0x17f   :  { %v1330_v46 = vmax.f32 %v1050_v35, 0.0  ;;  %8808 = vmatprep.mubr.bf16.mxu0 %v10208_v21  ;;  %v1905_v53 = vmul.f32 %v7507_v36, %v1329_v32 }
 0x180   :  { %v1908_v52 = vmul.f32 %v7508_v13, %v1332_v45 }
 0x181   :  { %v1906_v54 = vmul.f32 %v7507_v36, %v1330_v46  ;;  %v8542_v57 = vpop.f32.mrb[80].mxu0 }
 0x182   :  { %v1071_v60 = vadd.f32 %v10270_v20, %v8542_v57  ;;  %v1062_v63 = vpop.f32.mrb[81].mxu0  ;;  %v10288_v58 = vpack.c.bf16 %v1908_v52, %v1907_v51 }
 0x183   :  { %v1063_v1 = vadd.f32 %v10270_v20, %v1062_v63  ;;  %v8543_v3 = vpop.f32.mrb[82].mxu0  ;;  %v10291_v7 = vpack.c.bf16 %v1906_v54, %v1905_v53 }
 0x184   :  { %12513 = vst [vmem:[#allocation18_spill] sm:$0xff] %v10288_v58  ;;  %v1335_v11 = vmax.f32 %v1071_v60, 0.0  ;;  %v1074_v15 = vadd.f32 %v10270_v20, %v8543_v3  ;;  %v1065_v16 = vpop.f32.mrb[83].mxu0 }
 0x185   :  { %12514 = vst [vmem:[#allocation19_spill] sm:$0xff] %v10291_v7  ;;  %v1333_v25 = vmax.f32 %v1063_v1, 0.0  ;;  %v1066_v28 = vadd.f32 %v10270_v20, %v1065_v16  ;;  %8680 = vmatprep.mubr.bf16.mxu1 %v10291_v7 }
 0x186   :  { %v1336_v30 = vmax.f32 %v1074_v15, 0.0  ;;  %8681 = vmatmul.mubr.bf16.gmra.mrb[76].mxu1 %v10288_v58  ;;  %8809 = vmatmul.mubr.bf16.gmra.mrb[188].mxu0 %v10205_v17  ;;  %v1911_v32 = vmul.f32 %v7510_v24, %v1335_v11  ;;  %v7512_v11 = vld [vmem:[%s12429_s3 + $0x2b] ss:$0 sm:$0xff] }
 0x187   :  { %v1334_v13 = vmax.f32 %v1066_v28, 0.0  ;;  %8812 = vmatprep.mubr.bf16.mxu0 %v10229_v61  ;;  %v1909_v36 = vmul.f32 %v7509_v29, %v1333_v25 }
 0x188   :  { %v1912_v35 = vmul.f32 %v7510_v24, %v1336_v30  ;;  %v7511_v24 = vld [vmem:[%s12429_s3 + $0x2a] ss:$0 sm:$0xff] }
 0x189   :  { %v1910_v45 = vmul.f32 %v7509_v29, %v1334_v13  ;;  %v8546_v46 = vpop.f32.mrb[84].mxu0 }
 0x18a   :  { %v1087_v51 = vadd.f32 %v10270_v20, %v8546_v46  ;;  %v1078_v52 = vpop.f32.mrb[85].mxu0  ;;  %v10306_v53 = vpack.c.bf16 %v1912_v35, %v1911_v32 }
 0x18b   :  { %v1079_v54 = vadd.f32 %v10270_v20, %v1078_v52  ;;  %v8547_v57 = vpop.f32.mrb[86].mxu0  ;;  %v10309_v60 = vpack.c.bf16 %v1910_v45, %v1909_v36 }
 0x18c   :  { %12515 = vst [vmem:[#allocation20_spill] sm:$0xff] %v10306_v53  ;;  %v1339_v63 = vmax.f32 %v1087_v51, 0.0  ;;  %v1090_v1 = vadd.f32 %v10270_v20, %v8547_v57  ;;  %v1081_v3 = vpop.f32.mrb[87].mxu0 }
 0x18d   :  { %12516 = vst [vmem:[#allocation21_spill] sm:$0xff] %v10309_v60  ;;  %v1337_v15 = vmax.f32 %v1079_v54, 0.0  ;;  %v1082_v16 = vadd.f32 %v10270_v20, %v1081_v3  ;;  %8684 = vmatprep.mubr.bf16.mxu1 %v10309_v60 }
 0x18e   :  { %v1340_v25 = vmax.f32 %v1090_v1, 0.0  ;;  %8685 = vmatmul.mubr.bf16.gmra.mrb[80].mxu1 %v10306_v53  ;;  %8813 = vmatmul.mubr.bf16.gmra.mrb[192].mxu0 %v10226_v56  ;;  %v1915_v29 = vmul.f32 %v7512_v11, %v1339_v63  ;;  %v7514_v63 = vld [vmem:[%s12429_s3 + $0x2d] ss:$0 sm:$0xff] }
 0x18f   :  { %v1338_v28 = vmax.f32 %v1082_v16, 0.0  ;;  %8816 = vmatprep.mubr.bf16.mxu0 %v10250_v40  ;;  %v1913_v13 = vmul.f32 %v7511_v24, %v1337_v15  ;;  %v7513_v16 = vld [vmem:[%s12429_s3 + $0x2c] ss:$0 sm:$0xff] }
 0x190   :  { %v1916_v30 = vmul.f32 %v7512_v11, %v1340_v25 }
 0x191   :  { %v1914_v32 = vmul.f32 %v7511_v24, %v1338_v28  ;;  %v8550_v35 = vpop.f32.mrb[88].mxu0 }
 0x192   :  { %v1103_v36 = vadd.f32 %v10270_v20, %v8550_v35  ;;  %v1094_v45 = vpop.f32.mrb[89].mxu0  ;;  %v10324_v46 = vpack.c.bf16 %v1916_v30, %v1915_v29 }
 0x193   :  { %v1095_v51 = vadd.f32 %v10270_v20, %v1094_v45  ;;  %v8551_v52 = vpop.f32.mrb[90].mxu0  ;;  %v10327_v54 = vpack.c.bf16 %v1914_v32, %v1913_v13 }
 0x194   :  { %12517 = vst [vmem:[#allocation22_spill] sm:$0xff] %v10324_v46  ;;  %v1343_v57 = vmax.f32 %v1103_v36, 0.0  ;;  %v1106_v1 = vadd.f32 %v10270_v20, %v8551_v52  ;;  %v1097_v3 = vpop.f32.mrb[91].mxu0 }
 0x195   :  { %12518 = vst [vmem:[#allocation23_spill] sm:$0xff] %v10327_v54  ;;  %v1341_v11 = vmax.f32 %v1095_v51, 0.0  ;;  %v1098_v15 = vadd.f32 %v10270_v20, %v1097_v3  ;;  %8688 = vmatprep.mubr.bf16.mxu1 %v10327_v54 }
 0x196   :  { %v1344_v24 = vmax.f32 %v1106_v1, 0.0  ;;  %8689 = vmatmul.mubr.bf16.gmra.mrb[84].mxu1 %v10324_v46  ;;  %8817 = vmatmul.mubr.bf16.gmra.mrb[196].mxu0 %v10247_v33  ;;  %v1919_v28 = vmul.f32 %v7514_v63, %v1343_v57  ;;  %v7516_v57 = vld [vmem:[%s12429_s3 + $0x2f] ss:$0 sm:$0xff] }
 0x197   :  { %v1342_v25 = vmax.f32 %v1098_v15, 0.0  ;;  %8820 = vmatprep.mubr.bf16.mxu0 %v10273_v27  ;;  %v1917_v30 = vmul.f32 %v7513_v16, %v1341_v11 }
 0x198   :  { %v1920_v29 = vmul.f32 %v7514_v63, %v1344_v24 }
 0x199   :  { %v1918_v13 = vmul.f32 %v7513_v16, %v1342_v25  ;;  %v8554_v32 = vpop.f32.mrb[92].mxu0  ;;  %v7515_v16 = vld [vmem:[%s12429_s3 + $0x2e] ss:$0 sm:$0xff] }
 0x19a   :  { %v1119_v35 = vadd.f32 %v10270_v20, %v8554_v32  ;;  %v1110_v36 = vpop.f32.mrb[93].mxu0  ;;  %v10342_v45 = vpack.c.bf16 %v1920_v29, %v1919_v28 }
 0x19b   :  { %v1111_v51 = vadd.f32 %v10270_v20, %v1110_v36  ;;  %v8555_v52 = vpop.f32.mrb[94].mxu0  ;;  %v10345_v1 = vpack.c.bf16 %v1918_v13, %v1917_v30 }
 0x19c   :  { %12519 = vst [vmem:[#allocation24_spill] sm:$0xff] %v10342_v45  ;;  %v1347_v3 = vmax.f32 %v1119_v35, 0.0  ;;  %v1122_v15 = vadd.f32 %v10270_v20, %v8555_v52  ;;  %v1113_v33 = vpop.f32.mrb[95].mxu0 }
 0x19d   :  { %12520 = vst [vmem:[#allocation25_spill] sm:$0xff] %v10345_v1  ;;  %v1345_v63 = vmax.f32 %v1111_v51, 0.0  ;;  %v1114_v11 = vadd.f32 %v10270_v20, %v1113_v33  ;;  %8692 = vmatprep.mubr.bf16.mxu1 %v10345_v1 }
 0x19e   :  { %v1348_v24 = vmax.f32 %v1122_v15, 0.0  ;;  %8693 = vmatmul.mubr.bf16.gmra.mrb[88].mxu1 %v10342_v45  ;;  %8821 = vmatmul.mubr.bf16.gmra.mrb[200].mxu0 %v10265_v18  ;;  %v1923_v28 = vmul.f32 %v7516_v57, %v1347_v3  ;;  %v7518_v3 = vld [vmem:[%s12429_s3 + $0x31] ss:$0 sm:$0xff] }
 0x19f   :  { %v1346_v25 = vmax.f32 %v1114_v11, 0.0  ;;  %8824 = vmatprep.mubr.bf16.mxu0 %v10291_v7  ;;  %v1921_v30 = vmul.f32 %v7515_v16, %v1345_v63 }
 0x1a0   :  { %v1924_v29 = vmul.f32 %v7516_v57, %v1348_v24 }
 0x1a1   :  { %v1922_v13 = vmul.f32 %v7515_v16, %v1346_v25  ;;  %v8558_v32 = vpop.f32.mrb[96].mxu0  ;;  %v7517_v16 = vld [vmem:[%s12429_s3 + $0x30] ss:$0 sm:$0xff] }
 0x1a2   :  { %v1135_v33 = vadd.f32 %v10270_v20, %v8558_v32  ;;  %v1126_v35 = vpop.f32.mrb[97].mxu0  ;;  %v10360_v36 = vpack.c.bf16 %v1924_v29, %v1923_v28 }
 0x1a3   :  { %v1127_v51 = vadd.f32 %v10270_v20, %v1126_v35  ;;  %v8559_v52 = vpop.f32.mrb[98].mxu0  ;;  %v10363_v15 = vpack.c.bf16 %v1922_v13, %v1921_v30 }
 0x1a4   :  { %12521 = vst [vmem:[#allocation26_spill] sm:$0xff] %v10360_v36  ;;  %v1351_v27 = vmax.f32 %v1135_v33, 0.0  ;;  %v1138_v11 = vadd.f32 %v10270_v20, %v8559_v52  ;;  %v1129_v18 = vpop.f32.mrb[99].mxu0 }
 0x1a5   :  { %12522 = vst [vmem:[#allocation27_spill] sm:$0xff] %v10363_v15  ;;  %v1349_v57 = vmax.f32 %v1127_v51, 0.0  ;;  %v1130_v63 = vadd.f32 %v10270_v20, %v1129_v18  ;;  %8696 = vmatprep.mubr.bf16.mxu1 %v10363_v15 }
 0x1a6   :  { %v1352_v24 = vmax.f32 %v1138_v11, 0.0  ;;  %8697 = vmatmul.mubr.bf16.gmra.mrb[92].mxu1 %v10360_v36  ;;  %8825 = vmatmul.mubr.bf16.gmra.mrb[204].mxu0 %v10288_v58  ;;  %v1927_v28 = vmul.f32 %v7518_v3, %v1351_v27  ;;  %v7520_v27 = vld [vmem:[%s12429_s3 + $0x33] ss:$0 sm:$0xff] }
 0x1a7   :  { %v1350_v25 = vmax.f32 %v1130_v63, 0.0  ;;  %8828 = vmatprep.mubr.bf16.mxu0 %v10309_v60  ;;  %v1925_v30 = vmul.f32 %v7517_v16, %v1349_v57 }
 0x1a8   :  { %v1928_v29 = vmul.f32 %v7518_v3, %v1352_v24 }
 0x1a9   :  { %v1926_v13 = vmul.f32 %v7517_v16, %v1350_v25  ;;  %v8562_v32 = vpop.f32.mrb[100].mxu0  ;;  %v7519_v16 = vld [vmem:[%s12429_s3 + $0x32] ss:$0 sm:$0xff] }
 0x1aa   :  { %v1151_v18 = vadd.f32 %v10270_v20, %v8562_v32  ;;  %v1142_v33 = vpop.f32.mrb[101].mxu0  ;;  %v10378_v35 = vpack.c.bf16 %v1928_v29, %v1927_v28 }
 0x1ab   :  { %v1143_v51 = vadd.f32 %v10270_v20, %v1142_v33  ;;  %v8563_v52 = vpop.f32.mrb[102].mxu0  ;;  %v10381_v11 = vpack.c.bf16 %v1926_v13, %v1925_v30 }
 0x1ac   :  { %12523 = vst [vmem:[#allocation28_spill] sm:$0xff] %v10378_v35  ;;  %v1355_v7 = vmax.f32 %v1151_v18, 0.0  ;;  %v1154_v63 = vadd.f32 %v10270_v20, %v8563_v52  ;;  %v1145_v58 = vpop.f32.mrb[103].mxu0 }
 0x1ad   :  { %12524 = vst [vmem:[#allocation29_spill] sm:$0xff] %v10381_v11  ;;  %v1353_v3 = vmax.f32 %v1143_v51, 0.0  ;;  %v1146_v57 = vadd.f32 %v10270_v20, %v1145_v58  ;;  %8700 = vmatprep.mubr.bf16.mxu1 %v10381_v11 }
 0x1ae   :  { %v1356_v24 = vmax.f32 %v1154_v63, 0.0  ;;  %8701 = vmatmul.mubr.bf16.gmra.mrb[96].mxu1 %v10378_v35  ;;  %8829 = vmatmul.mubr.bf16.gmra.mrb[208].mxu0 %v10306_v53  ;;  %v1931_v28 = vmul.f32 %v7520_v27, %v1355_v7  ;;  %v7522_v7 = vld [vmem:[%s12429_s3 + $0x35] ss:$0 sm:$0xff] }
 0x1af   :  { %v1354_v25 = vmax.f32 %v1146_v57, 0.0  ;;  %8832 = vmatprep.mubr.bf16.mxu0 %v10327_v54  ;;  %v1929_v30 = vmul.f32 %v7519_v16, %v1353_v3 }
 0x1b0   :  { %v1932_v29 = vmul.f32 %v7520_v27, %v1356_v24 }
 0x1b1   :  { %v1930_v13 = vmul.f32 %v7519_v16, %v1354_v25  ;;  %v8566_v32 = vpop.f32.mrb[104].mxu0  ;;  %v7521_v16 = vld [vmem:[%s12429_s3 + $0x34] ss:$0 sm:$0xff] }
 0x1b2   :  { %v1167_v58 = vadd.f32 %v10270_v20, %v8566_v32  ;;  %v1158_v18 = vpop.f32.mrb[105].mxu0  ;;  %v10396_v33 = vpack.c.bf16 %v1932_v29, %v1931_v28 }
 0x1b3   :  { %v1159_v51 = vadd.f32 %v10270_v20, %v1158_v18  ;;  %v8567_v52 = vpop.f32.mrb[106].mxu0  ;;  %v10399_v63 = vpack.c.bf16 %v1930_v13, %v1929_v30 }
 0x1b4   :  { %12525 = vst [vmem:[#allocation30_spill] sm:$0xff] %v10396_v33  ;;  %v1359_v60 = vmax.f32 %v1167_v58, 0.0  ;;  %v1170_v57 = vadd.f32 %v10270_v20, %v8567_v52  ;;  %v1161_v53 = vpop.f32.mrb[107].mxu0 }
 0x1b5   :  { %12526 = vst [vmem:[#allocation31_spill] sm:$0xff] %v10399_v63  ;;  %v1357_v27 = vmax.f32 %v1159_v51, 0.0  ;;  %v1162_v3 = vadd.f32 %v10270_v20, %v1161_v53  ;;  %8704 = vmatprep.mubr.bf16.mxu1 %v10399_v63 }
 0x1b6   :  { %v1360_v24 = vmax.f32 %v1170_v57, 0.0  ;;  %8705 = vmatmul.mubr.bf16.gmra.mrb[100].mxu1 %v10396_v33  ;;  %8833 = vmatmul.mubr.bf16.gmra.mrb[212].mxu0 %v10324_v46  ;;  %v1935_v28 = vmul.f32 %v7522_v7, %v1359_v60  ;;  %v7524_v60 = vld [vmem:[%s12429_s3 + $0x37] ss:$0 sm:$0xff] }
 0x1b7   :  { %v1358_v25 = vmax.f32 %v1162_v3, 0.0  ;;  %8836 = vmatprep.mubr.bf16.mxu0 %v10345_v1  ;;  %v1933_v30 = vmul.f32 %v7521_v16, %v1357_v27 }
 0x1b8   :  { %v1936_v29 = vmul.f32 %v7522_v7, %v1360_v24 }
 0x1b9   :  { %v1934_v13 = vmul.f32 %v7521_v16, %v1358_v25  ;;  %v8570_v32 = vpop.f32.mrb[108].mxu0  ;;  %v7523_v16 = vld [vmem:[%s12429_s3 + $0x36] ss:$0 sm:$0xff] }
 0x1ba   :  { %v1183_v53 = vadd.f32 %v10270_v20, %v8570_v32  ;;  %v1174_v58 = vpop.f32.mrb[109].mxu0  ;;  %v10414_v18 = vpack.c.bf16 %v1936_v29, %v1935_v28 }
 0x1bb   :  { %v1175_v51 = vadd.f32 %v10270_v20, %v1174_v58  ;;  %v8571_v52 = vpop.f32.mrb[110].mxu0  ;;  %v10417_v57 = vpack.c.bf16 %v1934_v13, %v1933_v30 }
 0x1bc   :  { %12527 = vst [vmem:[#allocation32_spill] sm:$0xff] %v10414_v18  ;;  %v1363_v54 = vmax.f32 %v1183_v53, 0.0  ;;  %v1186_v3 = vadd.f32 %v10270_v20, %v8571_v52  ;;  %v1177_v46 = vpop.f32.mrb[111].mxu0 }
 0x1bd   :  { %12528 = vst [vmem:[#allocation33_spill] sm:$0xff] %v10417_v57  ;;  %v1361_v7 = vmax.f32 %v1175_v51, 0.0  ;;  %v1178_v27 = vadd.f32 %v10270_v20, %v1177_v46  ;;  %8708 = vmatprep.mubr.bf16.mxu1 %v10417_v57 }
 0x1be   :  { %v1364_v24 = vmax.f32 %v1186_v3, 0.0  ;;  %8709 = vmatmul.mubr.bf16.gmra.mrb[104].mxu1 %v10414_v18  ;;  %8837 = vmatmul.mubr.bf16.gmra.mrb[216].mxu0 %v10342_v45  ;;  %v1939_v28 = vmul.f32 %v7524_v60, %v1363_v54 }
 0x1bf   :  { %v1362_v25 = vmax.f32 %v1178_v27, 0.0  ;;  %8840 = vmatprep.mubr.bf16.mxu0 %v10363_v15  ;;  %v1937_v30 = vmul.f32 %v7523_v16, %v1361_v7 }
 0x1c0   :  { %v1940_v29 = vmul.f32 %v7524_v60, %v1364_v24  ;;  %v7526_v24 = vld [vmem:[%s12429_s3 + $0x39] ss:$0 sm:$0xff] }
 0x1c1   :  { %v1938_v13 = vmul.f32 %v7523_v16, %v1362_v25  ;;  %v8574_v32 = vpop.f32.mrb[112].mxu0  ;;  %v10431_v46 = vpop.f32.mrb[0].mxu1 }
 0x1c2   :  { %v1199_v53 = vadd.f32 %v10270_v20, %v8574_v32  ;;  %v1190_v58 = vpop.f32.mrb[113].mxu0  ;;  %v10434_v51 = vpop.f32.mrb[1].mxu1  ;;  %v10436_v52 = vpack.c.bf16 %v1940_v29, %v1939_v28  ;;  %v7525_v29 = vld [vmem:[%s12429_s3 + $0x38] ss:$0 sm:$0xff] }
 0x1c3   :  { %v1191_v3 = vadd.f32 %v10270_v20, %v1190_v58  ;;  %v8575_v45 = vpop.f32.mrb[114].mxu0  ;;  %v10439_v27 = vpop.f32.mrb[2].mxu1  ;;  %v10441_v15 = vpack.c.bf16 %v1938_v13, %v1937_v30 }
 0x1c4   :  { %v1367_v54 = vmax.f32 %v1199_v53, 0.0  ;;  %v1202_v60 = vadd.f32 %v10270_v20, %v8575_v45  ;;  %v1193_v7 = vpop.f32.mrb[115].mxu0  ;;  %v10444_v16 = vpop.f32.mrb[3].mxu1 }
 0x1c5   :  { %v1365_v25 = vmax.f32 %v1191_v3, 0.0  ;;  %v1194_v28 = vadd.f32 %v10270_v20, %v1193_v7  ;;  %8712 = vmatprep.mubr.bf16.mxu1 %v10441_v15 }
 0x1c6   :  { %v1368_v30 = vmax.f32 %v1202_v60, 0.0  ;;  %8713 = vmatmul.mubr.bf16.gmra.mrb[108].mxu1 %v10436_v52  ;;  %8841 = vmatmul.mubr.bf16.gmra.mrb[220].mxu0 %v10360_v36  ;;  %v1943_v13 = vmul.f32 %v7526_v24, %v1367_v54 }
 0x1c7   :  { %v1366_v45 = vmax.f32 %v1194_v28, 0.0  ;;  %8844 = vmatprep.mubr.bf16.mxu0 %v10381_v11  ;;  %v1941_v53 = vmul.f32 %v7525_v29, %v1365_v25 }
 0x1c8   :  { %v1944_v32 = vmul.f32 %v7526_v24, %v1368_v30  ;;  %v7528_v30 = vld [vmem:[%s12429_s3 + $0x3b] ss:$0 sm:$0xff] }
 0x1c9   :  { %v1942_v58 = vmul.f32 %v7525_v29, %v1366_v45  ;;  %v8578_v3 = vpop.f32.mrb[116].mxu0  ;;  %v10457_v7 = vpop.f32.mrb[4].mxu1 }
 0x1ca   :  { %v1215_v1 = vadd.f32 %v10270_v20, %v8578_v3  ;;  %v1206_v40 = vpop.f32.mrb[117].mxu0  ;;  %v10460_v56 = vpop.f32.mrb[5].mxu1  ;;  %v10462_v60 = vpack.c.bf16 %v1944_v32, %v1943_v13 }
 0x1cb   :  { %v1207_v61 = vadd.f32 %v10270_v20, %v1206_v40  ;;  %v8579_v36 = vpop.f32.mrb[118].mxu0  ;;  %v10465_v28 = vpop.f32.mrb[6].mxu1  ;;  %v10467_v11 = vpack.c.bf16 %v1942_v58, %v1941_v53  ;;  %v7527_v40 = vld [vmem:[%s12429_s3 + $0x3a] ss:$0 sm:$0xff] }
 0x1cc   :  { %v1371_v54 = vmax.f32 %v1215_v1, 0.0  ;;  %v1218_v24 = vadd.f32 %v10270_v20, %v8579_v36  ;;  %v1209_v25 = vpop.f32.mrb[119].mxu0  ;;  %v10470_v29 = vpop.f32.mrb[7].mxu1 }
 0x1cd   :  { %v1369_v45 = vmax.f32 %v1207_v61, 0.0  ;;  %v1210_v13 = vadd.f32 %v10270_v20, %v1209_v25  ;;  %8716 = vmatprep.mubr.bf16.mxu1 %v10467_v11 }
 0x1ce   :  { %v1372_v32 = vmax.f32 %v1218_v24, 0.0  ;;  %8717 = vmatmul.mubr.bf16.gmra.mrb[112].mxu1 %v10462_v60  ;;  %8845 = vmatmul.mubr.bf16.gmra.mrb[224].mxu0 %v10378_v35  ;;  %v1947_v36 = vmul.f32 %v7528_v30, %v1371_v54 }
 0x1cf   :  { %v1370_v1 = vmax.f32 %v1210_v13, 0.0  ;;  %8848 = vmatprep.mubr.bf16.mxu0 %v10399_v63  ;;  %v1945_v58 = vmul.f32 %v7527_v40, %v1369_v45 }
 0x1d0   :  { %v1948_v53 = vmul.f32 %v7528_v30, %v1372_v32  ;;  %v7530_v32 = vld [vmem:[%s12429_s3 + $0x3d] ss:$0 sm:$0xff] }
 0x1d1   :  { %v1946_v61 = vmul.f32 %v7527_v40, %v1370_v1  ;;  %v8582_v3 = vpop.f32.mrb[120].mxu0  ;;  %v10483_v25 = vpop.f32.mrb[8].mxu1 }
 0x1d2   :  { %v1231_v17 = vadd.f32 %v10270_v20, %v8582_v3  ;;  %v1222_v21 = vpop.f32.mrb[121].mxu0  ;;  %v10486_v43 = vpop.f32.mrb[9].mxu1  ;;  %v10488_v24 = vpack.c.bf16 %v1948_v53, %v1947_v36 }
 0x1d3   :  { %v1223_v49 = vadd.f32 %v10270_v20, %v1222_v21  ;;  %v8583_v35 = vpop.f32.mrb[122].mxu0  ;;  %v10491_v13 = vpop.f32.mrb[10].mxu1  ;;  %v10493_v63 = vpack.c.bf16 %v1946_v61, %v1945_v58  ;;  %v7529_v21 = vld [vmem:[%s12429_s3 + $0x3c] ss:$0 sm:$0xff] }
 0x1d4   :  { %v1375_v54 = vmax.f32 %v1231_v17, 0.0  ;;  %v1234_v30 = vadd.f32 %v10270_v20, %v8583_v35  ;;  %v1225_v45 = vpop.f32.mrb[123].mxu0  ;;  %v10496_v40 = vpop.f32.mrb[11].mxu1 }
 0x1d5   :  { %v1373_v1 = vmax.f32 %v1223_v49, 0.0  ;;  %v1226_v36 = vadd.f32 %v10270_v20, %v1225_v45  ;;  %8720 = vmatprep.mubr.bf16.mxu1 %v10493_v63 }
 0x1d6   :  { %v1376_v53 = vmax.f32 %v1234_v30, 0.0  ;;  %8721 = vmatmul.mubr.bf16.gmra.mrb[116].mxu1 %v10488_v24  ;;  %8849 = vmatmul.mubr.bf16.gmra.mrb[228].mxu0 %v10396_v33  ;;  %v1951_v35 = vmul.f32 %v7530_v32, %v1375_v54 }
 0x1d7   :  { %v1374_v17 = vmax.f32 %v1226_v36, 0.0  ;;  %8852 = vmatprep.mubr.bf16.mxu0 %v10417_v57  ;;  %v1949_v61 = vmul.f32 %v7529_v21, %v1373_v1 }
 0x1d8   :  { %v1952_v58 = vmul.f32 %v7530_v32, %v1376_v53 }
 0x1d9   :  { %v1950_v49 = vmul.f32 %v7529_v21, %v1374_v17  ;;  %v8586_v3 = vpop.f32.mrb[124].mxu0  ;;  %v8618_v45 = vpop.f32.mrb[12].mxu1  ;;  %v7532_v21 = vld [vmem:[%s12429_s3 + $0x3f] ss:$0 sm:$0xff] }
 0x1da   :  { %v1247_v5 = vadd.f32 %v10270_v20, %v8586_v3  ;;  %v1238_v12 = vpop.f32.mrb[125].mxu0  ;;  %v10510_v55 = vpop.f32.mrb[13].mxu1  ;;  %v10512_v39 = vpack.c.bf16 %v1952_v58, %v1951_v35 }
 0x1db   :  { %v1239_v30 = vadd.f32 %v10270_v20, %v1238_v12  ;;  %v8587_v4 = vpop.f32.mrb[126].mxu0  ;;  %v8619_v33 = vpop.f32.mrb[14].mxu1  ;;  %v10515_v36 = vpack.c.bf16 %v1950_v49, %v1949_v61  ;;  %v7531_v12 = vld [vmem:[%s12429_s3 + $0x3e] ss:$0 sm:$0xff] }
 0x1dc   :  { %v1379_v57 = vmax.f32 %v1247_v5, 0.0  ;;  %v1250_v54 = vadd.f32 %v10270_v20, %v8587_v4  ;;  %v1241_v32 = vpop.f32.mrb[127].mxu0  ;;  %v10518_v1 = vpop.f32.mrb[15].mxu1 }
 0x1dd   :  { %v1377_v53 = vmax.f32 %v1239_v30, 0.0  ;;  %v1242_v17 = vadd.f32 %v10270_v20, %v1241_v32  ;;  %8724 = vmatprep.mubr.bf16.mxu1 %v10515_v36 }
 0x1de   :  { %v1380_v33 = vmax.f32 %v1250_v54, 0.0  ;;  %8725 = vmatmul.mubr.bf16.gmra.mrb[120].mxu1 %v10512_v39  ;;  %8853 = vmatmul.mubr.bf16.gmra.mrb[232].mxu0 %v10414_v18  ;;  %v1955_v5 = vmul.f32 %v7532_v21, %v1379_v57 }
 0x1df   :  { %v1378_v4 = vmax.f32 %v1242_v17, 0.0  ;;  %8856 = vmatprep.mubr.bf16.mxu0 %v10441_v15  ;;  %v1953_v58 = vmul.f32 %v7531_v12, %v1377_v53 }
 0x1e0   :  { %v1956_v35 = vmul.f32 %v7532_v21, %v1380_v33 }
 0x1e1   :  { %v1954_v61 = vmul.f32 %v7531_v12, %v1378_v4  ;;  %v10531_v49 = vpop.f32.mrb[16].mxu1  ;;  %v8750_v20 = vpop.f32.mrb[128].mxu0 }
 0x1e2   :  { %v10533_v3 = vpop.f32.mrb[17].mxu1  ;;  %v2699_v45 = vpop.f32.mrb[129].mxu0  ;;  %v10535_v30 = vpack.c.bf16 %v1956_v35, %v1955_v5  ;;  %v10538_v54 = vadd.f32 %v8750_v20, %v10434_v51 }
 0x1e3   :  { %v10540_v32 = vpop.f32.mrb[18].mxu1  ;;  %v8751_v17 = vpop.f32.mrb[130].mxu0  ;;  %v10542_v18 = vpack.c.bf16 %v1954_v61, %v1953_v58 }
 0x1e4   :  { %v10544_v57 = vpop.f32.mrb[19].mxu1  ;;  %v2701_v21 = vpop.f32.mrb[131].mxu0  ;;  %v10547_v53 = vadd.f32 %v8751_v17, %v10444_v16 }
 0x1e5   :  { %8728 = vmatprep.mubr.bf16.mxu1 %v10542_v18 }
 0x1e6   :  { %12529 = vst [vmem:[#allocation34_spill] sm:$0xff] %v10547_v53  ;;  %8729 = vmatmul.mubr.bf16.gmra.mrb[124].mxu1 %v10535_v30  ;;  %8857 = vmatmul.mubr.bf16.gmra.mrb[236].mxu0 %v10436_v52 }
 0x1e7   :  { %8860 = vmatprep.mubr.bf16.mxu0 %v10467_v11  ;;  %8892 = vmatprep.mubr.bf16.mxu1 %v9882_v41 }
 0x1e9   :  { %v10554_v51 = vpop.f32.mrb[20].mxu1  ;;  %v8754_v12 = vpop.f32.mrb[132].mxu0 }
 0x1ea   :  { %v2197_v33 = vpop.f32.mrb[21].mxu1  ;;  %v2713_v4 = vpop.f32.mrb[133].mxu0  ;;  %v10557_v5 = vadd.f32 %v8754_v12, %v10460_v56 }
 0x1eb   :  { %v10559_v16 = vpop.f32.mrb[22].mxu1  ;;  %v8755_v35 = vpop.f32.mrb[134].mxu0  ;;  %v10562_v58 = vadd.f32 %v10431_v46, %v2713_v4 }
 0x1ec   :  { %12530 = vst [vmem:[#allocation35_spill] sm:$0xff] %v10557_v5  ;;  %v2200_v61 = vpop.f32.mrb[23].mxu1  ;;  %v2716_v20 = vpop.f32.mrb[135].mxu0  ;;  %v10565_v45 = vadd.f32 %v8755_v35, %v10470_v29 }
 0x1ed   :  { %v10568_v17 = vadd.f32 %v10439_v27, %v2716_v20 }
 0x1ee   :  { %12531 = vst [vmem:[#allocation36_spill] sm:$0xff] %v10565_v45  ;;  %8861 = vmatmul.mubr.bf16.gmra.mrb[240].mxu0 %v10462_v60  ;;  %8893 = vmatmul.mubr.bf16.vlgmr.msra.gmra.mrb[128].mxu1 %v9879_v38 }
 0x1ef   :  { %8864 = vmatprep.mubr.bf16.mxu0 %v10493_v63  ;;  %8896 = vmatprep.mubr.bf16.mxu1 %v9913_v2 }
 0x1f1   :  { %v10574_v56 = vpop.f32.mrb[24].mxu1  ;;  %v8758_v46 = vpop.f32.mrb[136].mxu0 }
 0x1f2   :  { %v2213_v21 = vpop.f32.mrb[25].mxu1  ;;  %v2729_v12 = vpop.f32.mrb[137].mxu0  ;;  %v10577_v4 = vadd.f32 %v8758_v46, %v10486_v43 }
 0x1f3   :  { %v10579_v29 = vpop.f32.mrb[26].mxu1  ;;  %v8759_v27 = vpop.f32.mrb[138].mxu0  ;;  %v10582_v35 = vadd.f32 %v10457_v7, %v2729_v12 }
 0x1f4   :  { %12532 = vst [vmem:[#allocation37_spill] sm:$0xff] %v10577_v4  ;;  %v2216_v20 = vpop.f32.mrb[27].mxu1  ;;  %v2732_v45 = vpop.f32.mrb[139].mxu0  ;;  %v10585_v5 = vadd.f32 %v8759_v27, %v10496_v40 }
 0x1f5   :  { %12533 = vst [vmem:[#allocation38_spill] sm:$0xff] %v10582_v35  ;;  %v10588_v53 = vadd.f32 %v10465_v28, %v2732_v45 }
 0x1f6   :  { %12534 = vst [vmem:[#allocation39_spill] sm:$0xff] %v10585_v5  ;;  %8865 = vmatmul.mubr.bf16.gmra.mrb[244].mxu0 %v10488_v24  ;;  %8897 = vmatmul.mubr.bf16.gmra.mrb[132].mxu1 %v9910_v0 }
 0x1f7   :  { %12535 = vst [vmem:[#allocation40_spill] sm:$0xff] %v10588_v53  ;;  %8868 = vmatprep.mubr.bf16.mxu0 %v10515_v36  ;;  %8900 = vmatprep.mubr.bf16.mxu1 %v9940_v26 }
 0x1f9   :  { %v8634_v43 = vpop.f32.mrb[28].mxu1  ;;  %v8762_v46 = vpop.f32.mrb[140].mxu0 }
 0x1fa   :  { %v10595_v7 = vadd.f32 %v8762_v46, %v10510_v55  ;;  %v2229_v12 = vpop.f32.mrb[29].mxu1  ;;  %v2745_v4 = vpop.f32.mrb[141].mxu0 }
 0x1fb   :  { %v10598_v40 = vadd.f32 %v10483_v25, %v2745_v4  ;;  %v8635_v28 = vpop.f32.mrb[30].mxu1  ;;  %v8763_v45 = vpop.f32.mrb[142].mxu0 }
 0x1fc   :  { %12536 = vst [vmem:[#allocation41_spill] sm:$0xff] %v10595_v7  ;;  %v10601_v27 = vadd.f32 %v8763_v45, %v10518_v1  ;;  %v2232_v5 = vpop.f32.mrb[31].mxu1  ;;  %v2748_v53 = vpop.f32.mrb[143].mxu0 }
 0x1fd   :  { %v10604_v35 = vadd.f32 %v10491_v13, %v2748_v53 }
 0x1fe   :  { %12537 = vst [vmem:[#allocation42_spill] sm:$0xff] %v10601_v27  ;;  %8869 = vmatmul.mubr.bf16.gmra.mrb[248].mxu0 %v10512_v39  ;;  %8901 = vmatmul.mubr.bf16.gmra.mrb[136].mxu1 %v9937_v23 }
 0x1ff   :  { %12538 = vst [vmem:[#allocation43_spill] sm:$0xff] %v10604_v35  ;;  %8872 = vmatprep.mubr.bf16.mxu0 %v10542_v18  ;;  %8904 = vmatprep.mubr.bf16.mxu1 %v9964_v50 }
 0x201   :  { %v10610_v55 = vpop.f32.mrb[32].mxu1  ;;  %v8766_v25 = vpop.f32.mrb[144].mxu0 }
 0x202   :  { %v10613_v4 = vadd.f32 %v8766_v25, %v10533_v3  ;;  %v10615_v1 = vpop.f32.mrb[33].mxu1  ;;  %v2761_v43 = vpop.f32.mrb[145].mxu0 }
 0x203   :  { %v10617_v46 = vpop.f32.mrb[34].mxu1  ;;  %v8767_v13 = vpop.f32.mrb[146].mxu0 }
 0x204   :  { %12539 = vst [vmem:[#allocation44_spill] sm:$0xff] %v10613_v4  ;;  %v10620_v53 = vadd.f32 %v8767_v13, %v10544_v57  ;;  %v10622_v28 = vpop.f32.mrb[35].mxu1  ;;  %v2763_v45 = vpop.f32.mrb[147].mxu0 }
 0x206   :  { %12540 = vst [vmem:[#allocation45_spill] sm:$0xff] %v10620_v53  ;;  %8873 = vmatmul.mubr.bf16.gmra.mrb[252].mxu0 %v10535_v30  ;;  %8905 = vmatmul.mubr.bf16.gmra.mrb[140].mxu1 %v9961_v47 }
 0x207   :  { %8908 = vmatprep.mubr.bf16.mxu1 %v9982_v9  ;;  %9036 = vmatprep.mubr.bf16.mxu0 %v9882_v41 }
 0x209   :  { %v10628_v3 = vpop.f32.mrb[36].mxu1  ;;  %v8770_v25 = vpop.f32.mrb[148].mxu0 }
 0x20a   :  { %v10630_v43 = vadd.f32 %v8770_v25, %v2197_v33  ;;  %v10632_v4 = vpop.f32.mrb[37].mxu1  ;;  %v2775_v57 = vpop.f32.mrb[149].mxu0 }
 0x20b   :  { %v10635_v13 = vadd.f32 %v10531_v49, %v2775_v57  ;;  %v10637_v45 = vpop.f32.mrb[38].mxu1  ;;  %v8771_v53 = vpop.f32.mrb[150].mxu0 }
 0x20c   :  { %12541 = vst [vmem:[#allocation46_spill] sm:$0xff] %v10630_v43  ;;  %v10639_v27 = vadd.f32 %v8771_v53, %v2200_v61  ;;  %v10641_v7 = vpop.f32.mrb[39].mxu1  ;;  %v2778_v35 = vpop.f32.mrb[151].mxu0 }
 0x20d   :  { %v10644_v41 = vadd.f32 %v10540_v32, %v2778_v35 }
 0x20e   :  { %12542 = vst [vmem:[#allocation47_spill] sm:$0xff] %v10639_v27  ;;  %8909 = vmatmul.mubr.bf16.gmra.mrb[144].mxu1 %v9979_v6  ;;  %9037 = vmatmul.mubr.bf16.vlgmr.msra.gmra.mrb[0].mxu0 %v9879_v38 }
 0x20f   :  { %8912 = vmatprep.mubr.bf16.mxu1 %v10007_v34  ;;  %9040 = vmatprep.mubr.bf16.mxu0 %v9913_v2 }
 0x211   :  { %v10650_v49 = vpop.f32.mrb[40].mxu1  ;;  %v8774_v33 = vpop.f32.mrb[152].mxu0 }
 0x212   :  { %v10652_v25 = vadd.f32 %v8774_v33, %v2213_v21  ;;  %v10654_v61 = vpop.f32.mrb[41].mxu1  ;;  %v2791_v53 = vpop.f32.mrb[153].mxu0 }
 0x213   :  { %v10657_v57 = vadd.f32 %v10554_v51, %v2791_v53  ;;  %v10659_v32 = vpop.f32.mrb[42].mxu1  ;;  %v8775_v35 = vpop.f32.mrb[154].mxu0 }
 0x214   :  { %12543 = vst [vmem:[#allocation48_spill] sm:$0xff] %v10652_v25  ;;  %v10661_v27 = vadd.f32 %v8775_v35, %v2216_v20  ;;  %v10663_v38 = vpop.f32.mrb[43].mxu1  ;;  %v2794_v43 = vpop.f32.mrb[155].mxu0 }
 0x215   :  { %v10666_v2 = vadd.f32 %v10559_v16, %v2794_v43 }
 0x216   :  { %12544 = vst [vmem:[#allocation49_spill] sm:$0xff] %v10661_v27  ;;  %8913 = vmatmul.mubr.bf16.gmra.mrb[148].mxu1 %v10004_v31  ;;  %9041 = vmatmul.mubr.bf16.gmra.mrb[4].mxu0 %v9910_v0 }
 0x217   :  { %12545 = vst [vmem:[#allocation50_spill] sm:$0xff] %v10666_v2  ;;  %8916 = vmatprep.mubr.bf16.mxu1 %v10034_v62  ;;  %9044 = vmatprep.mubr.bf16.mxu0 %v9940_v26  ;;  %v9299_v26 = vld [vmem:[%s12430_s6 + $0x40] sm:$0xff]  }
 0x218   :  { %8176 = vmatprep.subr.bf16.mxu1 %v9299_v26 }
 0x219   :  { %v8650_v51 = vpop.f32.mrb[44].mxu1  ;;  %v8778_v21 = vpop.f32.mrb[156].mxu0 }
 0x21a   :  { %v10672_v33 = vadd.f32 %v8778_v21, %v2229_v12  ;;  %v10674_v20 = vpop.f32.mrb[45].mxu1  ;;  %v2807_v53 = vpop.f32.mrb[157].mxu0 }
 0x21b   :  { %v10677_v35 = vadd.f32 %v10574_v56, %v2807_v53  ;;  %v8651_v16 = vpop.f32.mrb[46].mxu1  ;;  %v8779_v43 = vpop.f32.mrb[158].mxu0 }
 0x21c   :  { %v10679_v27 = vadd.f32 %v8779_v43, %v2232_v5  ;;  %v10681_v25 = vpop.f32.mrb[47].mxu1  ;;  %v2810_v0 = vpop.f32.mrb[159].mxu0  ;;  %v9300_v5 = vld [vmem:[%s12430_s6] sm:$0xff]  }
 0x21d   :  { %v10684_v2 = vadd.f32 %v10579_v29, %v2810_v0  ;;  %8177 = vmatpush3.bf16.msra.mxu1 %v9300_v5 }
 0x21e   :  { %8917 = vmatmul.mubr.bf16.gmra.mrb[152].mxu1 %v10031_v59  ;;  %9045 = vmatmul.mubr.bf16.gmra.mrb[8].mxu0 %v9937_v23 }
 0x21f   :  { %8920 = vmatprep.mubr.bf16.mxu1 %v10052_v22  ;;  %9048 = vmatprep.mubr.bf16.mxu0 %v9964_v50 }
 0x221   :  { %v10696_v56 = vpop.f32.mrb[48].mxu1  ;;  %v8782_v29 = vpop.f32.mrb[160].mxu0 }
 0x222   :  { %v10699_v12 = vadd.f32 %v8782_v29, %v10615_v1  ;;  %v10701_v23 = vpop.f32.mrb[49].mxu1  ;;  %v2823_v51 = vpop.f32.mrb[161].mxu0 }
 0x223   :  { %v10703_v21 = vpop.f32.mrb[50].mxu1  ;;  %v8783_v53 = vpop.f32.mrb[162].mxu0 }
 0x224   :  { %v10706_v50 = vadd.f32 %v8783_v53, %v10622_v28  ;;  %v10708_v16 = vpop.f32.mrb[51].mxu1  ;;  %v2825_v43 = vpop.f32.mrb[163].mxu0 }
 0x226   :  { %12546 = vst [vmem:[#allocation51_spill] sm:$0xff] %v10706_v50  ;;  %8921 = vmatmul.mubr.bf16.gmra.mrb[156].mxu1 %v10049_v19  ;;  %9049 = vmatmul.mubr.bf16.gmra.mrb[12].mxu0 %v9961_v47 }
 0x227   :  { %8924 = vmatprep.mubr.bf16.mxu1 %v10070_v48  ;;  %9052 = vmatprep.mubr.bf16.mxu0 %v9982_v9 }
 0x229   :  { %v10714_v1 = vpop.f32.mrb[52].mxu1  ;;  %v8786_v0 = vpop.f32.mrb[164].mxu0 }
 0x22a   :  { %v10717_v26 = vadd.f32 %v8786_v0, %v10632_v4  ;;  %v10719_v5 = vpop.f32.mrb[53].mxu1  ;;  %v2837_v28 = vpop.f32.mrb[165].mxu0 }
 0x22b   :  { %v10722_v29 = vadd.f32 %v10610_v55, %v2837_v28  ;;  %v10724_v51 = vpop.f32.mrb[54].mxu1  ;;  %v8787_v53 = vpop.f32.mrb[166].mxu0 }
 0x22c   :  { %12547 = vst [vmem:[#allocation52_spill] sm:$0xff] %v10717_v26  ;;  %v10727_v47 = vadd.f32 %v8787_v53, %v10641_v7  ;;  %v10729_v43 = vpop.f32.mrb[55].mxu1  ;;  %v2840_v9 = vpop.f32.mrb[167].mxu0 }
 0x22d   :  { %v10732_v50 = vadd.f32 %v10617_v46, %v2840_v9 }
 0x22e   :  { %12548 = vst [vmem:[#allocation53_spill] sm:$0xff] %v10727_v47  ;;  %8925 = vmatmul.mubr.bf16.gmra.mrb[160].mxu1 %v10067_v44  ;;  %9053 = vmatmul.mubr.bf16.gmra.mrb[16].mxu0 %v9979_v6 }
 0x22f   :  { %8928 = vmatprep.mubr.bf16.mxu1 %v10091_v14  ;;  %9056 = vmatprep.mubr.bf16.mxu0 %v10007_v34 }
 0x231   :  { %v10738_v55 = vpop.f32.mrb[56].mxu1  ;;  %v8790_v4 = vpop.f32.mrb[168].mxu0 }
 0x232   :  { %v10741_v7 = vadd.f32 %v8790_v4, %v10654_v61  ;;  %v10743_v0 = vpop.f32.mrb[57].mxu1  ;;  %v2853_v28 = vpop.f32.mrb[169].mxu0 }
 0x233   :  { %v10746_v46 = vadd.f32 %v10628_v3, %v2853_v28  ;;  %v10748_v53 = vpop.f32.mrb[58].mxu1  ;;  %v8791_v9 = vpop.f32.mrb[170].mxu0 }
 0x234   :  { %12549 = vst [vmem:[#allocation54_spill] sm:$0xff] %v10741_v7  ;;  %v10751_v6 = vadd.f32 %v8791_v9, %v10663_v38  ;;  %v10753_v47 = vpop.f32.mrb[59].mxu1  ;;  %v2856_v34 = vpop.f32.mrb[171].mxu0 }
 0x235   :  { %v10756_v26 = vadd.f32 %v10637_v45, %v2856_v34 }
 0x236   :  { %12550 = vst [vmem:[#allocation55_spill] sm:$0xff] %v10751_v6  ;;  %8929 = vmatmul.mubr.bf16.gmra.mrb[164].mxu1 %v10088_v10  ;;  %9057 = vmatmul.mubr.bf16.gmra.mrb[20].mxu0 %v10004_v31 }
 0x237   :  { %8932 = vmatprep.mubr.bf16.mxu1 %v10112_v42  ;;  %9060 = vmatprep.mubr.bf16.mxu0 %v10034_v62 }
 0x239   :  { %v8666_v3 = vpop.f32.mrb[60].mxu1  ;;  %v8794_v61 = vpop.f32.mrb[172].mxu0 }
 0x23a   :  { %v10763_v4 = vadd.f32 %v8794_v61, %v10674_v20  ;;  %v10765_v38 = vpop.f32.mrb[61].mxu1  ;;  %v2869_v28 = vpop.f32.mrb[173].mxu0  ;;  %v9301_v20 = vld [vmem:[%s12430_s6 + $0x48] sm:$0xff]  }
 0x23b   :  { %v10768_v9 = vadd.f32 %v10650_v49, %v2869_v28  ;;  %v8667_v45 = vpop.f32.mrb[62].mxu1  ;;  %v8795_v34 = vpop.f32.mrb[174].mxu0  ;;  %v9302_v49 = vld [vmem:[%s12430_s6 + $0x8] sm:$0xff]   ;;  %8178 = vmatprep.subr.bf16.mxu1 %v9301_v20 }
 0x23c   :  { %12551 = vst [vmem:[#allocation56_spill] sm:$0xff] %v10763_v4  ;;  %v10771_v6 = vadd.f32 %v8795_v34, %v10681_v25  ;;  %v10773_v31 = vpop.f32.mrb[63].mxu1  ;;  %v2872_v7 = vpop.f32.mrb[175].mxu0  ;;  %8179 = vmatpush3.bf16.msra.mxu1 %v9302_v49  ;;  %v12555_v20 = vld [vmem:[#allocation3_spill] sm:$0xff]  ;;  %v12556_v49 = vld [vmem:[#allocation5_spill] sm:$0xff] }
 0x23d   :  { %v10776_v62 = vadd.f32 %v10659_v32, %v2872_v7 }
 0x23e   :  { %12552 = vst [vmem:[#allocation57_spill] sm:$0xff] %v10771_v6  ;;  %8933 = vmatmul.mubr.bf16.gmra.mrb[168].mxu1 %v10109_v37  ;;  %9061 = vmatmul.mubr.bf16.gmra.mrb[24].mxu0 %v10031_v59 }
 0x23f   :  { %8936 = vmatprep.mubr.bf16.mxu1 %v10130_v8  ;;  %9064 = vmatprep.mubr.bf16.mxu0 %v10052_v22 }
 0x241   :  { %v10788_v25 = vpop.f32.mrb[64].mxu1  ;;  %v8798_v32 = vpop.f32.mrb[176].mxu0 }
 0x242   :  { %v10791_v7 = vadd.f32 %v8798_v32, %v10701_v23  ;;  %v10793_v3 = vpop.f32.mrb[65].mxu1  ;;  %v2885_v61 = vpop.f32.mrb[177].mxu0 }
 0x243   :  { %v10795_v59 = vpop.f32.mrb[66].mxu1  ;;  %v8799_v28 = vpop.f32.mrb[178].mxu0 }
 0x244   :  { %12553 = vst [vmem:[#allocation58_spill] sm:$0xff] %v10791_v7  ;;  %v10798_v45 = vadd.f32 %v8799_v28, %v10708_v16  ;;  %v10800_v34 = vpop.f32.mrb[67].mxu1  ;;  %v2887_v22 = vpop.f32.mrb[179].mxu0 }
 0x246   :  { %12554 = vst [vmem:[#allocation59_spill] sm:$0xff] %v10798_v45  ;;  %8937 = vmatmul.mubr.bf16.gmra.mrb[172].mxu1 %v12555_v20  ;;  %9065 = vmatmul.mubr.bf16.gmra.mrb[28].mxu0 %v10049_v19 }
 0x247   :  { %8940 = vmatprep.mubr.bf16.mxu1 %v12556_v49  ;;  %9068 = vmatprep.mubr.bf16.mxu0 %v10070_v48 }
 0x249   :  { %v10806_v23 = vpop.f32.mrb[68].mxu1  ;;  %v8802_v32 = vpop.f32.mrb[180].mxu0 }
 0x24a   :  { %v10809_v61 = vadd.f32 %v8802_v32, %v10719_v5  ;;  %v10811_v7 = vpop.f32.mrb[69].mxu1  ;;  %v2899_v16 = vpop.f32.mrb[181].mxu0  ;;  %v12561_v5 = vld [vmem:[#allocation4_spill] sm:$0xff]  ;;  %v12562_v32 = vld [vmem:[#allocation7_spill] sm:$0xff] }
 0x24b   :  { %v10814_v28 = vadd.f32 %v10696_v56, %v2899_v16  ;;  %v10816_v22 = vpop.f32.mrb[70].mxu1  ;;  %v8803_v45 = vpop.f32.mrb[182].mxu0 }
 0x24c   :  { %12557 = vst [vmem:[#allocation3_spill] sm:$0xff] %v10809_v61  ;;  %v10819_v19 = vadd.f32 %v8803_v45, %v10729_v43  ;;  %v10821_v6 = vpop.f32.mrb[71].mxu1  ;;  %v2902_v48 = vpop.f32.mrb[183].mxu0 }
 0x24d   :  { %12558 = vst [vmem:[#allocation5_spill] sm:$0xff] %v10814_v28  ;;  %v10824_v4 = vadd.f32 %v10703_v21, %v2902_v48 }
 0x24e   :  { %12559 = vst [vmem:[#allocation60_spill] sm:$0xff] %v10819_v19  ;;  %8941 = vmatmul.mubr.bf16.gmra.mrb[176].mxu1 %v12561_v5  ;;  %9069 = vmatmul.mubr.bf16.gmra.mrb[32].mxu0 %v10067_v44 }
 0x24f   :  { %12560 = vst [vmem:[#allocation61_spill] sm:$0xff] %v10824_v4  ;;  %8944 = vmatprep.mubr.bf16.mxu1 %v12562_v32  ;;  %9072 = vmatprep.mubr.bf16.mxu0 %v10091_v14 }
 0x251   :  { %v10830_v56 = vpop.f32.mrb[72].mxu1  ;;  %v8806_v16 = vpop.f32.mrb[184].mxu0 }
 0x252   :  { %v10833_v43 = vadd.f32 %v8806_v16, %v10743_v0  ;;  %v10835_v45 = vpop.f32.mrb[73].mxu1  ;;  %v2915_v19 = vpop.f32.mrb[185].mxu0  ;;  %v12567_v0 = vld [vmem:[#allocation6_spill] sm:$0xff]  ;;  %v12568_v16 = vld [vmem:[#allocation9_spill] sm:$0xff] }
 0x253   :  { %v10838_v21 = vadd.f32 %v10714_v1, %v2915_v19  ;;  %v10840_v48 = vpop.f32.mrb[74].mxu1  ;;  %v8807_v61 = vpop.f32.mrb[186].mxu0 }
 0x254   :  { %12563 = vst [vmem:[#allocation4_spill] sm:$0xff] %v10833_v43  ;;  %v10843_v44 = vadd.f32 %v8807_v61, %v10753_v47  ;;  %v10845_v4 = vpop.f32.mrb[75].mxu1  ;;  %v2918_v14 = vpop.f32.mrb[187].mxu0 }
 0x255   :  { %12564 = vst [vmem:[#allocation7_spill] sm:$0xff] %v10838_v21  ;;  %v10848_v28 = vadd.f32 %v10724_v51, %v2918_v14 }
 0x256   :  { %12565 = vst [vmem:[#allocation62_spill] sm:$0xff] %v10843_v44  ;;  %8945 = vmatmul.mubr.bf16.gmra.mrb[180].mxu1 %v12567_v0  ;;  %9073 = vmatmul.mubr.bf16.gmra.mrb[36].mxu0 %v10088_v10 }
 0x257   :  { %12566 = vst [vmem:[#allocation63_spill] sm:$0xff] %v10848_v28  ;;  %8948 = vmatprep.mubr.bf16.mxu1 %v12568_v16  ;;  %9076 = vmatprep.mubr.bf16.mxu0 %v10112_v42  ;;  %v9303_v42 = vld [vmem:[%s12430_s6 + $0x50] sm:$0xff]  }
 0x258   :  { %8180 = vmatprep.subr.bf16.mxu1 %v9303_v42  ;;  %v12577_v42 = vld [vmem:[#allocation10_spill] sm:$0xff] }
 0x259   :  { %v8682_v1 = vpop.f32.mrb[76].mxu1  ;;  %v8810_v19 = vpop.f32.mrb[188].mxu0 }
 0x25a   :  { %v10855_v43 = vadd.f32 %v8810_v19, %v10765_v38  ;;  %v10857_v47 = vpop.f32.mrb[77].mxu1  ;;  %v2931_v61 = vpop.f32.mrb[189].mxu0  ;;  %v12573_v1 = vld [vmem:[#allocation8_spill] sm:$0xff] }
 0x25b   :  { %v10860_v44 = vadd.f32 %v10738_v55, %v2931_v61  ;;  %v8683_v51 = vpop.f32.mrb[78].mxu1  ;;  %v8811_v14 = vpop.f32.mrb[190].mxu0  ;;  %v9304_v55 = vld [vmem:[%s12430_s6 + $0x10] sm:$0xff]  }
 0x25c   :  { %12569 = vst [vmem:[#allocation6_spill] sm:$0xff] %v10855_v43  ;;  %v10863_v28 = vadd.f32 %v8811_v14, %v10773_v31  ;;  %v10865_v10 = vpop.f32.mrb[79].mxu1  ;;  %v2934_v21 = vpop.f32.mrb[191].mxu0  ;;  %v12574_v31 = vld [vmem:[#allocation11_spill] sm:$0xff]  ;;  %8181 = vmatpush3.bf16.msra.mxu1 %v9304_v55  ;;  %v12578_v55 = vld [vmem:[#allocation13_spill] sm:$0xff] }
 0x25d   :  { %12570 = vst [vmem:[#allocation9_spill] sm:$0xff] %v10860_v44  ;;  %v10871_v38 = vadd.f32 %v10748_v53, %v2934_v21 }
 0x25e   :  { %12571 = vst [vmem:[#allocation64_spill] sm:$0xff] %v10863_v28  ;;  %8949 = vmatmul.mubr.bf16.gmra.mrb[184].mxu1 %v12573_v1  ;;  %9077 = vmatmul.mubr.bf16.gmra.mrb[40].mxu0 %v10109_v37 }
 0x25f   :  { %12572 = vst [vmem:[#allocation65_spill] sm:$0xff] %v10871_v38  ;;  %8952 = vmatprep.mubr.bf16.mxu1 %v12574_v31  ;;  %9080 = vmatprep.mubr.bf16.mxu0 %v10130_v8 }
 0x261   :  { %v10880_v19 = vpop.f32.mrb[80].mxu1  ;;  %v8814_v61 = vpop.f32.mrb[192].mxu0 }
 0x262   :  { %v10883_v53 = vadd.f32 %v8814_v61, %v10793_v3  ;;  %v10885_v21 = vpop.f32.mrb[81].mxu1  ;;  %v2947_v51 = vpop.f32.mrb[193].mxu0 }
 0x263   :  { %v10887_v37 = vpop.f32.mrb[82].mxu1  ;;  %v8815_v14 = vpop.f32.mrb[194].mxu0 }
 0x264   :  { %12575 = vst [vmem:[#allocation8_spill] sm:$0xff] %v10883_v53  ;;  %v10890_v28 = vadd.f32 %v8815_v14, %v10800_v34  ;;  %v10892_v43 = vpop.f32.mrb[83].mxu1  ;;  %v2949_v8 = vpop.f32.mrb[195].mxu0 }
 0x266   :  { %12576 = vst [vmem:[#allocation11_spill] sm:$0xff] %v10890_v28  ;;  %8953 = vmatmul.mubr.bf16.gmra.mrb[188].mxu1 %v12577_v42  ;;  %9081 = vmatmul.mubr.bf16.gmra.mrb[44].mxu0 %v12555_v20 }
 0x267   :  { %8956 = vmatprep.mubr.bf16.mxu1 %v12578_v55  ;;  %9084 = vmatprep.mubr.bf16.mxu0 %v12556_v49 }
 0x269   :  { %v10898_v3 = vpop.f32.mrb[84].mxu1  ;;  %v8818_v61 = vpop.f32.mrb[196].mxu0 }
 0x26a   :  { %v10901_v51 = vadd.f32 %v8818_v61, %v10811_v7  ;;  %v10903_v53 = vpop.f32.mrb[85].mxu1  ;;  %v2961_v34 = vpop.f32.mrb[197].mxu0  ;;  %v12583_v7 = vld [vmem:[#allocation12_spill] sm:$0xff]  ;;  %v12584_v61 = vld [vmem:[#allocation15_spill] sm:$0xff] }
 0x26b   :  { %v10906_v14 = vadd.f32 %v10788_v25, %v2961_v34  ;;  %v10908_v8 = vpop.f32.mrb[86].mxu1  ;;  %v8819_v28 = vpop.f32.mrb[198].mxu0 }
 0x26c   :  { %12579 = vst [vmem:[#allocation10_spill] sm:$0xff] %v10901_v51  ;;  %v10911_v20 = vadd.f32 %v8819_v28, %v10821_v6  ;;  %v10913_v38 = vpop.f32.mrb[87].mxu1  ;;  %v2964_v49 = vpop.f32.mrb[199].mxu0 }
 0x26d   :  { %12580 = vst [vmem:[#allocation13_spill] sm:$0xff] %v10906_v14  ;;  %v10916_v44 = vadd.f32 %v10795_v59, %v2964_v49 }
 0x26e   :  { %12581 = vst [vmem:[#allocation66_spill] sm:$0xff] %v10911_v20  ;;  %8957 = vmatmul.mubr.bf16.gmra.mrb[192].mxu1 %v12583_v7  ;;  %9085 = vmatmul.mubr.bf16.gmra.mrb[48].mxu0 %v12561_v5 }
 0x26f   :  { %12582 = vst [vmem:[#allocation67_spill] sm:$0xff] %v10916_v44  ;;  %8960 = vmatprep.mubr.bf16.mxu1 %v12584_v61  ;;  %9088 = vmatprep.mubr.bf16.mxu0 %v12562_v32 }
 0x271   :  { %v10922_v25 = vpop.f32.mrb[88].mxu1  ;;  %v8822_v34 = vpop.f32.mrb[200].mxu0 }
 0x272   :  { %v10925_v6 = vadd.f32 %v8822_v34, %v10835_v45  ;;  %v10927_v28 = vpop.f32.mrb[89].mxu1  ;;  %v2977_v20 = vpop.f32.mrb[201].mxu0  ;;  %v12589_v45 = vld [vmem:[#allocation14_spill] sm:$0xff]  ;;  %v12590_v34 = vld [vmem:[#allocation17_spill] sm:$0xff] }
 0x273   :  { %v10930_v59 = vadd.f32 %v10806_v23, %v2977_v20  ;;  %v10932_v49 = vpop.f32.mrb[90].mxu1  ;;  %v8823_v51 = vpop.f32.mrb[202].mxu0 }
 0x274   :  { %12585 = vst [vmem:[#allocation12_spill] sm:$0xff] %v10925_v6  ;;  %v10935_v5 = vadd.f32 %v8823_v51, %v10845_v4  ;;  %v10937_v44 = vpop.f32.mrb[91].mxu1  ;;  %v2980_v32 = vpop.f32.mrb[203].mxu0 }
 0x275   :  { %12586 = vst [vmem:[#allocation15_spill] sm:$0xff] %v10930_v59  ;;  %v10940_v14 = vadd.f32 %v10816_v22, %v2980_v32 }
 0x276   :  { %12587 = vst [vmem:[#allocation68_spill] sm:$0xff] %v10935_v5  ;;  %8961 = vmatmul.mubr.bf16.gmra.mrb[196].mxu1 %v12589_v45  ;;  %9089 = vmatmul.mubr.bf16.gmra.mrb[52].mxu0 %v12567_v0 }
 0x277   :  { %12588 = vst [vmem:[#allocation69_spill] sm:$0xff] %v10940_v14  ;;  %8964 = vmatprep.mubr.bf16.mxu1 %v12590_v34  ;;  %9092 = vmatprep.mubr.bf16.mxu0 %v12568_v16 }
 0x279   :  { %v8698_v23 = vpop.f32.mrb[92].mxu1  ;;  %v8826_v20 = vpop.f32.mrb[204].mxu0 }
 0x27a   :  { %v10947_v6 = vadd.f32 %v8826_v20, %v10857_v47  ;;  %v10949_v4 = vpop.f32.mrb[93].mxu1  ;;  %v2993_v51 = vpop.f32.mrb[205].mxu0  ;;  %v9305_v47 = vld [vmem:[%s12430_s6 + $0x58] sm:$0xff]   ;;  %v12595_v23 = vld [vmem:[#allocation16_spill] sm:$0xff] }
 0x27b   :  { %v10952_v5 = vadd.f32 %v10830_v56, %v2993_v51  ;;  %v8699_v22 = vpop.f32.mrb[94].mxu1  ;;  %v8827_v32 = vpop.f32.mrb[206].mxu0  ;;  %v9306_v56 = vld [vmem:[%s12430_s6 + $0x18] sm:$0xff]   ;;  %8182 = vmatprep.subr.bf16.mxu1 %v9305_v47 }
 0x27c   :  { %12591 = vst [vmem:[#allocation14_spill] sm:$0xff] %v10947_v6  ;;  %v10955_v14 = vadd.f32 %v8827_v32, %v10865_v10  ;;  %v10957_v0 = vpop.f32.mrb[95].mxu1  ;;  %v2996_v59 = vpop.f32.mrb[207].mxu0  ;;  %v12596_v10 = vld [vmem:[#allocation19_spill] sm:$0xff]  ;;  %8183 = vmatpush3.bf16.msra.mxu1 %v9306_v56  ;;  %v12600_v47 = vld [vmem:[#allocation21_spill] sm:$0xff] }
 0x27d   :  { %12592 = vst [vmem:[#allocation17_spill] sm:$0xff] %v10952_v5  ;;  %v10960_v16 = vadd.f32 %v10840_v48, %v2996_v59 }
 0x27e   :  { %12593 = vst [vmem:[#allocation70_spill] sm:$0xff] %v10955_v14  ;;  %8965 = vmatmul.mubr.bf16.gmra.mrb[200].mxu1 %v12595_v23  ;;  %9093 = vmatmul.mubr.bf16.gmra.mrb[56].mxu0 %v12573_v1 }
 0x27f   :  { %12594 = vst [vmem:[#allocation71_spill] sm:$0xff] %v10960_v16  ;;  %8968 = vmatprep.mubr.bf16.mxu1 %v12596_v10  ;;  %9096 = vmatprep.mubr.bf16.mxu0 %v12574_v31  ;;  %v12599_v31 = vld [vmem:[#allocation18_spill] sm:$0xff] }
 0x281   :  { %v10972_v20 = vpop.f32.mrb[96].mxu1  ;;  %v8830_v48 = vpop.f32.mrb[208].mxu0 }
 0x282   :  { %v10975_v59 = vadd.f32 %v8830_v48, %v10885_v21  ;;  %v2491_v51 = vpop.f32.mrb[97].mxu1  ;;  %v3009_v22 = vpop.f32.mrb[209].mxu0 }
 0x283   :  { %v10977_v32 = vpop.f32.mrb[98].mxu1  ;;  %v8831_v1 = vpop.f32.mrb[210].mxu0 }
 0x284   :  { %12597 = vst [vmem:[#allocation16_spill] sm:$0xff] %v10975_v59  ;;  %v10980_v14 = vadd.f32 %v8831_v1, %v10892_v43  ;;  %v10982_v6 = vpop.f32.mrb[99].mxu1  ;;  %v3011_v16 = vpop.f32.mrb[211].mxu0 }
 0x286   :  { %12598 = vst [vmem:[#allocation19_spill] sm:$0xff] %v10980_v14  ;;  %8969 = vmatmul.mubr.bf16.gmra.mrb[204].mxu1 %v12599_v31  ;;  %9097 = vmatmul.mubr.bf16.gmra.mrb[60].mxu0 %v12577_v42 }
 0x287   :  { %8972 = vmatprep.mubr.bf16.mxu1 %v12600_v47  ;;  %9100 = vmatprep.mubr.bf16.mxu0 %v12578_v55 }
 0x289   :  { %v10988_v21 = vpop.f32.mrb[100].mxu1  ;;  %v8834_v56 = vpop.f32.mrb[212].mxu0 }
 0x28a   :  { %v10991_v48 = vadd.f32 %v8834_v56, %v10903_v53  ;;  %v10993_v22 = vpop.f32.mrb[101].mxu1  ;;  %v3023_v43 = vpop.f32.mrb[213].mxu0  ;;  %v12605_v53 = vld [vmem:[#allocation20_spill] sm:$0xff]  ;;  %v12606_v56 = vld [vmem:[#allocation23_spill] sm:$0xff] }
 0x28b   :  { %v10996_v1 = vadd.f32 %v10880_v19, %v3023_v43  ;;  %v10998_v16 = vpop.f32.mrb[102].mxu1  ;;  %v8835_v14 = vpop.f32.mrb[214].mxu0 }
 0x28c   :  { %12601 = vst [vmem:[#allocation18_spill] sm:$0xff] %v10991_v48  ;;  %v11001_v42 = vadd.f32 %v8835_v14, %v10913_v38  ;;  %v11003_v59 = vpop.f32.mrb[103].mxu1  ;;  %v3026_v55 = vpop.f32.mrb[215].mxu0 }
 0x28d   :  { %12602 = vst [vmem:[#allocation21_spill] sm:$0xff] %v10996_v1  ;;  %v11006_v5 = vadd.f32 %v10887_v37, %v3026_v55 }
 0x28e   :  { %12603 = vst [vmem:[#allocation72_spill] sm:$0xff] %v11001_v42  ;;  %8973 = vmatmul.mubr.bf16.gmra.mrb[208].mxu1 %v12605_v53  ;;  %9101 = vmatmul.mubr.bf16.gmra.mrb[64].mxu0 %v12583_v7 }
 0x28f   :  { %12604 = vst [vmem:[#allocation73_spill] sm:$0xff] %v11006_v5  ;;  %8976 = vmatprep.mubr.bf16.mxu1 %v12606_v56  ;;  %9104 = vmatprep.mubr.bf16.mxu0 %v12584_v61 }
 0x291   :  { %v11012_v19 = vpop.f32.mrb[104].mxu1  ;;  %v8838_v43 = vpop.f32.mrb[216].mxu0 }
 0x292   :  { %v11015_v38 = vadd.f32 %v8838_v43, %v10927_v28  ;;  %v11017_v14 = vpop.f32.mrb[105].mxu1  ;;  %v3039_v42 = vpop.f32.mrb[217].mxu0  ;;  %v12611_v28 = vld [vmem:[#allocation22_spill] sm:$0xff]  ;;  %v12612_v43 = vld [vmem:[#allocation25_spill] sm:$0xff] }
 0x293   :  { %v11020_v37 = vadd.f32 %v10898_v3, %v3039_v42  ;;  %v11022_v55 = vpop.f32.mrb[106].mxu1  ;;  %v8839_v48 = vpop.f32.mrb[218].mxu0 }
 0x294   :  { %12607 = vst [vmem:[#allocation20_spill] sm:$0xff] %v11015_v38  ;;  %v11025_v7 = vadd.f32 %v8839_v48, %v10937_v44  ;;  %v11027_v5 = vpop.f32.mrb[107].mxu1  ;;  %v3042_v61 = vpop.f32.mrb[219].mxu0 }
 0x295   :  { %12608 = vst [vmem:[#allocation23_spill] sm:$0xff] %v11020_v37  ;;  %v11030_v1 = vadd.f32 %v10908_v8, %v3042_v61 }
 0x296   :  { %12609 = vst [vmem:[#allocation74_spill] sm:$0xff] %v11025_v7  ;;  %8977 = vmatmul.mubr.bf16.gmra.mrb[212].mxu1 %v12611_v28  ;;  %9105 = vmatmul.mubr.bf16.gmra.mrb[68].mxu0 %v12589_v45 }
 0x297   :  { %12610 = vst [vmem:[#allocation75_spill] sm:$0xff] %v11030_v1  ;;  %8980 = vmatprep.mubr.bf16.mxu1 %v12612_v43  ;;  %9108 = vmatprep.mubr.bf16.mxu0 %v12590_v34 }
 0x299   :  { %v8714_v3 = vpop.f32.mrb[108].mxu1  ;;  %v8842_v42 = vpop.f32.mrb[220].mxu0 }
 0x29a   :  { %v11037_v38 = vadd.f32 %v8842_v42, %v10949_v4  ;;  %v11039_v44 = vpop.f32.mrb[109].mxu1  ;;  %v3055_v48 = vpop.f32.mrb[221].mxu0  ;;  %v12614_v3 = vld [vmem:[#allocation24_spill] sm:$0xff]  ;;  %v12615_v4 = vld [vmem:[#allocation27_spill] sm:$0xff] }
 0x29b   :  { %v11042_v7 = vadd.f32 %v10922_v25, %v3055_v48  ;;  %v8715_v8 = vpop.f32.mrb[110].mxu1  ;;  %v8843_v61 = vpop.f32.mrb[222].mxu0 }
 0x29c   :  { %v11045_v1 = vadd.f32 %v8843_v61, %v10957_v0  ;;  %v11047_v45 = vpop.f32.mrb[111].mxu1  ;;  %v3058_v37 = vpop.f32.mrb[223].mxu0  ;;  %v9307_v61 = vld [vmem:[%s12430_s6 + $0x60] sm:$0xff]  }
 0x29d   :  { %v11050_v34 = vadd.f32 %v10932_v49, %v3058_v37  ;;  %v9308_v49 = vld [vmem:[%s12430_s6 + $0x20] sm:$0xff]   ;;  %8184 = vmatprep.subr.bf16.mxu1 %v9307_v61 }
 0x29e   :  { %12613 = vst [vmem:[#allocation22_spill] sm:$0xff] %v11045_v1  ;;  %8981 = vmatmul.mubr.bf16.gmra.mrb[216].mxu1 %v12614_v3  ;;  %9109 = vmatmul.mubr.bf16.gmra.mrb[72].mxu0 %v12595_v23 }
 0x29f   :  { %8984 = vmatprep.mubr.bf16.mxu1 %v12615_v4  ;;  %9112 = vmatprep.mubr.bf16.mxu0 %v12596_v10 }
 0x2a0   :  { %8185 = vmatpush3.bf16.msra.mxu1 %v9308_v49 }
 0x2a1   :  { %v8718_v25 = vpop.f32.mrb[112].mxu1  ;;  %v8846_v42 = vpop.f32.mrb[224].mxu0 }
 0x2a2   :  { %v11056_v48 = vadd.f32 %v8846_v42, %v2491_v51  ;;  %v2553_v0 = vpop.f32.mrb[113].mxu1  ;;  %v3071_v8 = vpop.f32.mrb[225].mxu0  ;;  %v12618_v51 = vld [vmem:[#allocation26_spill] sm:$0xff]  ;;  %v12619_v42 = vld [vmem:[#allocation29_spill] sm:$0xff] }
 0x2a3   :  { %v8719_v37 = vpop.f32.mrb[114].mxu1  ;;  %v8847_v23 = vpop.f32.mrb[226].mxu0 }
 0x2a4   :  { %12616 = vst [vmem:[#allocation25_spill] sm:$0xff] %v11056_v48  ;;  %v11065_v1 = vadd.f32 %v8847_v23, %v10982_v6  ;;  %v2555_v10 = vpop.f32.mrb[115].mxu1  ;;  %v3073_v25 = vpop.f32.mrb[227].mxu0 }
 0x2a6   :  { %12617 = vst [vmem:[#allocation24_spill] sm:$0xff] %v11065_v1  ;;  %8985 = vmatmul.mubr.bf16.gmra.mrb[220].mxu1 %v12618_v51  ;;  %9113 = vmatmul.mubr.bf16.gmra.mrb[76].mxu0 %v12599_v31 }
 0x2a7   :  { %8988 = vmatprep.mubr.bf16.mxu1 %v12619_v42  ;;  %9116 = vmatprep.mubr.bf16.mxu0 %v12600_v47  ;;  %v12620_v47 = vld [vmem:[#allocation28_spill] sm:$0xff] }
 0x2a9   :  { %v8722_v0 = vpop.f32.mrb[116].mxu1  ;;  %v8850_v8 = vpop.f32.mrb[228].mxu0 }
 0x2aa   :  { %v11072_v37 = vadd.f32 %v8850_v8, %v10993_v22  ;;  %v2565_v48 = vpop.f32.mrb[117].mxu1  ;;  %v3085_v6 = vpop.f32.mrb[229].mxu0  ;;  %v12621_v22 = vld [vmem:[#allocation31_spill] sm:$0xff] }
 0x2ab   :  { %v11075_v23 = vadd.f32 %v10972_v20, %v3085_v6  ;;  %v8723_v61 = vpop.f32.mrb[118].mxu1  ;;  %v8851_v49 = vpop.f32.mrb[230].mxu0 }
 0x2ac   :  { %v11078_v10 = vadd.f32 %v8851_v49, %v11003_v59  ;;  %v2567_v31 = vpop.f32.mrb[119].mxu1  ;;  %v3088_v25 = vpop.f32.mrb[231].mxu0 }
 0x2ad   :  { %v11081_v1 = vadd.f32 %v10977_v32, %v3088_v25 }
 0x2ae   :  { %8989 = vmatmul.mubr.bf16.gmra.mrb[224].mxu1 %v12620_v47  ;;  %9117 = vmatmul.mubr.bf16.gmra.mrb[80].mxu0 %v12605_v53 }
 0x2af   :  { %8992 = vmatprep.mubr.bf16.mxu1 %v12621_v22  ;;  %9120 = vmatprep.mubr.bf16.mxu0 %v12606_v56  ;;  %v12622_v56 = vld [vmem:[#allocation30_spill] sm:$0xff] }
 0x2b1   :  { %v8726_v20 = vpop.f32.mrb[120].mxu1  ;;  %v8854_v48 = vpop.f32.mrb[232].mxu0 }
 0x2b2   :  { %v11088_v0 = vadd.f32 %v8854_v48, %v11017_v14  ;;  %v2577_v59 = vpop.f32.mrb[121].mxu1  ;;  %v3101_v8 = vpop.f32.mrb[233].mxu0  ;;  %v12623_v14 = vld [vmem:[#allocation33_spill] sm:$0xff] }
 0x2b3   :  { %v11091_v6 = vadd.f32 %v10988_v21, %v3101_v8  ;;  %v8727_v32 = vpop.f32.mrb[122].mxu1  ;;  %v8855_v61 = vpop.f32.mrb[234].mxu0 }
 0x2b4   :  { %v11094_v49 = vadd.f32 %v8855_v61, %v11027_v5  ;;  %v2579_v53 = vpop.f32.mrb[123].mxu1  ;;  %v3104_v31 = vpop.f32.mrb[235].mxu0 }
 0x2b5   :  { %v11097_v25 = vadd.f32 %v10998_v16, %v3104_v31 }
 0x2b6   :  { %8993 = vmatmul.mubr.bf16.gmra.mrb[228].mxu1 %v12622_v56  ;;  %9121 = vmatmul.mubr.bf16.gmra.mrb[84].mxu0 %v12611_v28 }
 0x2b7   :  { %8996 = vmatprep.mubr.bf16.mxu1 %v12623_v14  ;;  %9124 = vmatprep.mubr.bf16.mxu0 %v12612_v43  ;;  %v12624_v43 = vld [vmem:[#allocation32_spill] sm:$0xff] }
 0x2b9   :  { %v8730_v21 = vpop.f32.mrb[124].mxu1  ;;  %v8858_v20 = vpop.f32.mrb[236].mxu0 }
 0x2ba   :  { %v11104_v48 = vadd.f32 %v8858_v20, %v11039_v44  ;;  %v2589_v5 = vpop.f32.mrb[125].mxu1  ;;  %v3117_v59 = vpop.f32.mrb[237].mxu0 }
 0x2bb   :  { %v11107_v8 = vadd.f32 %v11012_v19, %v3117_v59  ;;  %v8731_v16 = vpop.f32.mrb[126].mxu1  ;;  %v8859_v32 = vpop.f32.mrb[238].mxu0  ;;  %v9309_v59 = vld [vmem:[%s12430_s6 + $0x68] sm:$0xff]  }
 0x2bc   :  { %v11110_v61 = vadd.f32 %v8859_v32, %v11047_v45  ;;  %v2591_v28 = vpop.f32.mrb[127].mxu1  ;;  %v3120_v53 = vpop.f32.mrb[239].mxu0  ;;  %8186 = vmatprep.subr.bf16.mxu1 %v9309_v59 }
 0x2bd   :  { %v11113_v31 = vadd.f32 %v11022_v55, %v3120_v53 }
 0x2be   :  { %8997 = vmatmul.mubr.bf16.gmra.mrb[232].mxu1 %v12624_v43  ;;  %9125 = vmatmul.mubr.bf16.gmra.mrb[88].mxu0 %v12614_v3  ;;  %v9310_v3 = vld [vmem:[%s12430_s6 + $0x28] sm:$0xff]  }
 0x2bf   :  { %9000 = vmatprep.mubr.bf16.mxu1 %v10441_v15  ;;  %9128 = vmatprep.mubr.bf16.mxu0 %v12615_v4 }
 0x2c0   :  { %8187 = vmatpush3.bf16.msra.mxu1 %v9310_v3 }
 0x2c1   :  { %v8862_v19 = vpop.f32.mrb[240].mxu0  ;;  %v8894_v44 = vpop.f32.mrb[128].mxu1 }
 0x2c2   :  { %v3133_v21 = vpop.f32.mrb[241].mxu0  ;;  %v3377_v20 = vpop.f32.mrb[129].mxu1 }
 0x2c3   :  { %v8863_v5 = vpop.f32.mrb[242].mxu0  ;;  %v8895_v45 = vpop.f32.mrb[130].mxu1 }
 0x2c4   :  { %v3135_v55 = vpop.f32.mrb[243].mxu0  ;;  %v3379_v16 = vpop.f32.mrb[131].mxu1 }
 0x2c6   :  { %9001 = vmatmul.mubr.bf16.gmra.mrb[236].mxu1 %v10436_v52  ;;  %9129 = vmatmul.mubr.bf16.gmra.mrb[92].mxu0 %v12618_v51 }
 0x2c7   :  { %9004 = vmatprep.mubr.bf16.mxu1 %v10467_v11  ;;  %9132 = vmatprep.mubr.bf16.mxu0 %v12619_v42 }
 0x2c9   :  { %v8866_v4 = vpop.f32.mrb[244].mxu0  ;;  %v8898_v32 = vpop.f32.mrb[132].mxu1 }
 0x2ca   :  { %v3145_v28 = vpop.f32.mrb[245].mxu0  ;;  %v3389_v53 = vpop.f32.mrb[133].mxu1 }
 0x2cb   :  { %v8867_v19 = vpop.f32.mrb[246].mxu0  ;;  %v8899_v44 = vpop.f32.mrb[134].mxu1 }
 0x2cc   :  { %v3147_v21 = vpop.f32.mrb[247].mxu0  ;;  %v3391_v20 = vpop.f32.mrb[135].mxu1 }
 0x2ce   :  { %9005 = vmatmul.mubr.bf16.gmra.mrb[240].mxu1 %v10462_v60  ;;  %9133 = vmatmul.mubr.bf16.gmra.mrb[96].mxu0 %v12620_v47 }
 0x2cf   :  { %9008 = vmatprep.mubr.bf16.mxu1 %v10493_v63  ;;  %9136 = vmatprep.mubr.bf16.mxu0 %v12621_v22 }
 0x2d1   :  { %v8870_v51 = vpop.f32.mrb[248].mxu0  ;;  %v8902_v5 = vpop.f32.mrb[136].mxu1 }
 0x2d2   :  { %v3157_v42 = vpop.f32.mrb[249].mxu0  ;;  %v3401_v45 = vpop.f32.mrb[137].mxu1  ;;  %v9311_v5 = vld [vmem:[%s12430_s6 + $0x70] sm:$0xff]  }
 0x2d3   :  { %v8871_v59 = vpop.f32.mrb[250].mxu0  ;;  %v8903_v55 = vpop.f32.mrb[138].mxu1  ;;  %v9312_v42 = vld [vmem:[%s12430_s6 + $0x30] sm:$0xff]   ;;  %8188 = vmatprep.subr.bf16.mxu1 %v9311_v5 }
 0x2d4   :  { %v3159_v16 = vpop.f32.mrb[251].mxu0  ;;  %v3403_v3 = vpop.f32.mrb[139].mxu1  ;;  %8189 = vmatpush3.bf16.msra.mxu1 %v9312_v42 }
 0x2d5   :  { %v12625_v16 = vld [vmem:[#allocation34_spill] sm:$0xff] }
 0x2d6   :  { %9009 = vmatmul.mubr.bf16.gmra.mrb[244].mxu1 %v10488_v24  ;;  %9137 = vmatmul.mubr.bf16.gmra.mrb[100].mxu0 %v12622_v56 }
 0x2d7   :  { %9012 = vmatprep.mubr.bf16.mxu1 %v10515_v36  ;;  %9140 = vmatprep.mubr.bf16.mxu0 %v12623_v14 }
 0x2d9   :  { %v8874_v47 = vpop.f32.mrb[252].mxu0  ;;  %v8906_v4 = vpop.f32.mrb[140].mxu1 }
 0x2da   :  { %v3169_v32 = vpop.f32.mrb[253].mxu0  ;;  %v3413_v22 = vpop.f32.mrb[141].mxu1 }
 0x2db   :  { %v8875_v28 = vpop.f32.mrb[254].mxu0  ;;  %v8907_v53 = vpop.f32.mrb[142].mxu1 }
 0x2dc   :  { %v3171_v19 = vpop.f32.mrb[255].mxu0  ;;  %v3415_v44 = vpop.f32.mrb[143].mxu1  ;;  %v12627_v28 = vld [vmem:[#allocation35_spill] sm:$0xff] }
 0x2de   :  { %9013 = vmatmul.mubr.bf16.gmra.mrb[248].mxu1 %v10512_v39  ;;  %9141 = vmatmul.mubr.bf16.gmra.mrb[104].mxu0 %v12624_v43 }
 0x2df   :  { %9016 = vmatprep.mubr.bf16.mxu1 %v10542_v18  ;;  %9144 = vmatprep.mubr.bf16.mxu0 %v10441_v15 }
 0x2e1   :  { %v8910_v56 = vpop.f32.mrb[144].mxu1  ;;  %v9038_v21 = vpop.f32.mrb[0].mxu0 }
 0x2e2   :  { %v11142_v14 = vadd.f32 %v8910_v56, %v10562_v58  ;;  %v3425_v20 = vpop.f32.mrb[145].mxu1  ;;  %v4055_v51 = vpop.f32.mrb[1].mxu0  ;;  %v12628_v56 = vld [vmem:[#allocation40_spill] sm:$0xff] }
 0x2e3   :  { %v3858_v43 = vadd.f32 %v3425_v20, %v10538_v54  ;;  %v8911_v45 = vpop.f32.mrb[146].mxu1  ;;  %v9039_v59 = vpop.f32.mrb[2].mxu0  ;;  %v12626_v54 = vld [vmem:[#allocation38_spill] sm:$0xff] }
 0x2e4   :  { %v11152_v15 = vadd.f32 %v8911_v45, %v10568_v17  ;;  %v3428_v55 = vpop.f32.mrb[147].mxu1  ;;  %v4057_v58 = vpop.f32.mrb[3].mxu0 }
 0x2e5   :  { %v3859_v3 = vadd.f32 %v3428_v55, %v12625_v16  ;;  %v12630_v58 = vld [vmem:[#allocation37_spill] sm:$0xff] }
 0x2e6   :  { %9017 = vmatmul.mubr.bf16.gmra.mrb[252].mxu1 %v10535_v30  ;;  %9145 = vmatmul.mubr.bf16.gmra.mrb[108].mxu0 %v10436_v52  ;;  %v12629_v52 = vld [vmem:[#allocation36_spill] sm:$0xff] }
 0x2e7   :  { %9148 = vmatprep.mubr.bf16.mxu0 %v10467_v11 }
 0x2e9   :  { %v8914_v47 = vpop.f32.mrb[148].mxu1  ;;  %v9042_v4 = vpop.f32.mrb[4].mxu0 }
 0x2ea   :  { %v11159_v32 = vadd.f32 %v8914_v47, %v12626_v54  ;;  %v3441_v22 = vpop.f32.mrb[149].mxu1  ;;  %v4067_v17 = vpop.f32.mrb[5].mxu0  ;;  %v12631_v54 = vld [vmem:[#allocation43_spill] sm:$0xff] }
 0x2eb   :  { %v11162_v53 = vadd.f32 %v3441_v22, %v12627_v28  ;;  %v8915_v19 = vpop.f32.mrb[150].mxu1  ;;  %v9043_v44 = vpop.f32.mrb[6].mxu0 }
 0x2ec   :  { %v11165_v21 = vadd.f32 %v8915_v19, %v12628_v56  ;;  %v3444_v20 = vpop.f32.mrb[151].mxu1  ;;  %v4069_v51 = vpop.f32.mrb[7].mxu0 }
 0x2ed   :  { %v11168_v5 = vadd.f32 %v3444_v20, %v12629_v52  ;;  %v12633_v20 = vld [vmem:[#allocation41_spill] sm:$0xff] }
 0x2ee   :  { %9149 = vmatmul.mubr.bf16.gmra.mrb[112].mxu0 %v10462_v60  ;;  %v12632_v60 = vld [vmem:[#allocation39_spill] sm:$0xff] }
 0x2ef   :  { %9152 = vmatprep.mubr.bf16.mxu0 %v10493_v63 }
 0x2f1   :  { %v8918_v11 = vpop.f32.mrb[152].mxu1  ;;  %v9046_v42 = vpop.f32.mrb[8].mxu0 }
 0x2f2   :  { %v11173_v45 = vadd.f32 %v8918_v11, %v10598_v40  ;;  %v3457_v59 = vpop.f32.mrb[153].mxu1  ;;  %v4079_v55 = vpop.f32.mrb[9].mxu0 }
 0x2f3   :  { %v11176_v16 = vadd.f32 %v3457_v59, %v12630_v58  ;;  %v8919_v47 = vpop.f32.mrb[154].mxu1  ;;  %v9047_v4 = vpop.f32.mrb[10].mxu0  ;;  %v12634_v55 = vld [vmem:[#allocation42_spill] sm:$0xff] }
 0x2f4   :  { %v11179_v22 = vadd.f32 %v8919_v47, %v12631_v54  ;;  %v3460_v17 = vpop.f32.mrb[155].mxu1  ;;  %v4081_v28 = vpop.f32.mrb[11].mxu0  ;;  %v11197_v47 = vld [vmem:[%s12431_s5] ss:$0 sm:$0xff] }
 0x2f5   :  { %v11182_v19 = vadd.f32 %v3460_v17, %v12632_v60  ;;  %v12635_v60 = vld [vmem:[#allocation44_spill] sm:$0xff] }
 0x2f6   :  { %9153 = vmatmul.mubr.bf16.gmra.mrb[116].mxu0 %v10488_v24 }
 0x2f7   :  { %9156 = vmatprep.mubr.bf16.mxu0 %v10515_v36 }
 0x2f9   :  { %v8922_v63 = vpop.f32.mrb[156].mxu1  ;;  %v9050_v40 = vpop.f32.mrb[12].mxu0 }
 0x2fa   :  { %v3473_v44 = vpop.f32.mrb[157].mxu1  ;;  %v4091_v56 = vpop.f32.mrb[13].mxu0 }
 0x2fb   :  { %v11187_v51 = vadd.f32 %v3473_v44, %v12633_v20  ;;  %v8923_v52 = vpop.f32.mrb[158].mxu1  ;;  %v9051_v11 = vpop.f32.mrb[14].mxu0  ;;  %v9314_v44 = vld [vmem:[%s12430_s6 + $0x38] sm:$0xff]  }
 0x2fc   :  { %v3476_v42 = vpop.f32.mrb[159].mxu1  ;;  %v4093_v59 = vpop.f32.mrb[15].mxu0  ;;  %v12636_v11 = vld [vmem:[#allocation45_spill] sm:$0xff] }
 0x2fd   :  { %v11190_v58 = vadd.f32 %v3476_v42, %v12634_v55 }
 0x2fe   :  { %9157 = vmatmul.mubr.bf16.gmra.mrb[120].mxu0 %v10512_v39 }
 0x2ff   :  { %9160 = vmatprep.mubr.bf16.mxu0 %v10542_v18  ;;  %v9313_v18 = vld [vmem:[%s12430_s6 + $0x78] sm:$0xff]  }
 0x300   :  { %8190 = vmatprep.subr.bf16.mxu1 %v9313_v18 }
 0x301   :  { %v8926_v24 = vpop.f32.mrb[160].mxu1  ;;  %v9054_v36 = vpop.f32.mrb[16].mxu0  ;;  %8191 = vmatpush3.bf16.msra.mxu1 %v9314_v44 }
 0x302   :  { %v11200_v4 = vadd.f32 %v8926_v24, %v10635_v13  ;;  %v4536_v54 = vadd.f32 %v9054_v36, %v3858_v43  ;;  %v3487_v17 = vpop.f32.mrb[161].mxu1  ;;  %v4103_v28 = vpop.f32.mrb[17].mxu0 }
 0x303   :  { %v11203_v63 = vadd.f32 %v3487_v17, %v12635_v60  ;;  %v8927_v40 = vpop.f32.mrb[162].mxu1  ;;  %v9055_v39 = vpop.f32.mrb[18].mxu0 }
 0x304   :  { %v4641_v56 = vadd.f32 %v11197_v47, %v4536_v54  ;;  %v11213_v13 = vadd.f32 %v8927_v40, %v10644_v41  ;;  %v4537_v43 = vadd.f32 %v9055_v39, %v3859_v3  ;;  %v3490_v20 = vpop.f32.mrb[163].mxu1  ;;  %v4105_v52 = vpop.f32.mrb[19].mxu0  ;;  %v12637_v40 = vld [vmem:[#allocation46_spill] sm:$0xff] }
 0x305   :  { %v11216_v42 = vadd.f32 %v3490_v20, %v12636_v11 }
 0x306   :  { %v4642_v59 = vadd.f32 %v11197_v47, %v4537_v43  ;;  %9161 = vmatmul.mubr.bf16.gmra.mrb[124].mxu0 %v10535_v30  ;;  %v4739_v55 = vmax.f32 %v4641_v56, 0.0  ;;  %v12638_v43 = vld [vmem:[#allocation50_spill] sm:$0xff] }
 0x308   :  { %v4740_v24 = vmax.f32 %v4642_v59, 0.0  ;;  %v12639_v59 = vld [vmem:[#allocation47_spill] sm:$0xff] }
 0x309   :  { %v8930_v36 = vpop.f32.mrb[164].mxu1  ;;  %v9058_v17 = vpop.f32.mrb[20].mxu0 }
 0x30a   :  { %v11220_v54 = vpack.c.bf16 %v4740_v24, %v4739_v55  ;;  %v11223_v41 = vadd.f32 %v8930_v36, %v10657_v57  ;;  %v4540_v3 = vadd.f32 %v9058_v17, %v11162_v53  ;;  %v3503_v28 = vpop.f32.mrb[165].mxu1  ;;  %v4117_v60 = vpop.f32.mrb[21].mxu0 }
 0x30b   :  { %v11227_v39 = vadd.f32 %v3503_v28, %v12637_v40  ;;  %v4538_v18 = vadd.f32 %v4117_v60, %v11142_v14  ;;  %v8931_v30 = vpop.f32.mrb[166].mxu1  ;;  %v9059_v44 = vpop.f32.mrb[22].mxu0 }
 0x30c   :  { %v4645_v56 = vadd.f32 %v11197_v47, %v4540_v3  ;;  %v11232_v20 = vadd.f32 %v8931_v30, %v12638_v43  ;;  %v4541_v52 = vadd.f32 %v9059_v44, %v11168_v5  ;;  %v3506_v57 = vpop.f32.mrb[167].mxu1  ;;  %v4120_v11 = vpop.f32.mrb[23].mxu0 }
 0x30d   :  { %v4643_v53 = vadd.f32 %v11197_v47, %v4538_v18  ;;  %v11237_v55 = vadd.f32 %v3506_v57, %v12639_v59  ;;  %v4539_v24 = vadd.f32 %v4120_v11, %v11152_v15  ;;  %v12640_v15 = vld [vmem:[#allocation48_spill] sm:$0xff] }
 0x30e   :  { %v4646_v14 = vadd.f32 %v11197_v47, %v4541_v52  ;;  %v4743_v17 = vmax.f32 %v4645_v56, 0.0 }
 0x30f   :  { %v4644_v36 = vadd.f32 %v11197_v47, %v4539_v24  ;;  %v4741_v28 = vmax.f32 %v4643_v53, 0.0  ;;  %v9315_v24 = vld [vmem:[%s12430_s6 + $0xc0] sm:$0xff]  }
 0x310   :  { %v4744_v3 = vmax.f32 %v4646_v14, 0.0  ;;  %8198 = vmatprep.subr.bf16.mxu1 %v9315_v24 }
 0x311   :  { %v4742_v60 = vmax.f32 %v4644_v36, 0.0  ;;  %v8934_v40 = vpop.f32.mrb[168].mxu1  ;;  %v9062_v30 = vpop.f32.mrb[24].mxu0 }
 0x312   :  { %v11242_v5 = vpack.c.bf16 %v4744_v3, %v4743_v17  ;;  %v11245_v44 = vadd.f32 %v8934_v40, %v10677_v35  ;;  %v4544_v18 = vadd.f32 %v9062_v30, %v11176_v16  ;;  %v3519_v43 = vpop.f32.mrb[169].mxu1  ;;  %v4133_v57 = vpop.f32.mrb[25].mxu0  ;;  %v12641_v40 = vld [vmem:[#allocation49_spill] sm:$0xff] }
 0x313   :  { %v11249_v11 = vadd.f32 %v3519_v43, %v12640_v15  ;;  %v4542_v52 = vadd.f32 %v4133_v57, %v11159_v32  ;;  %v8935_v56 = vpop.f32.mrb[170].mxu1  ;;  %v9063_v59 = vpop.f32.mrb[26].mxu0  ;;  %v4838_v53 = vpack.c.bf16 %v4742_v60, %v4741_v28 }
 0x314   :  { %v4649_v14 = vadd.f32 %v11197_v47, %v4544_v18  ;;  %v11257_v35 = vadd.f32 %v8935_v56, %v10684_v2  ;;  %v4545_v16 = vadd.f32 %v9063_v59, %v11182_v19  ;;  %v3522_v36 = vpop.f32.mrb[171].mxu1  ;;  %v4136_v17 = vpop.f32.mrb[27].mxu0 }
 0x315   :  { %v4647_v3 = vadd.f32 %v11197_v47, %v4542_v52  ;;  %v11262_v32 = vadd.f32 %v3522_v36, %v12641_v40  ;;  %v4543_v28 = vadd.f32 %v4136_v17, %v11165_v21 }
 0x316   :  { %v4650_v60 = vadd.f32 %v11197_v47, %v4545_v16  ;;  %v4747_v18 = vmax.f32 %v4649_v14, 0.0 }
 0x317   :  { %v4648_v30 = vadd.f32 %v11197_v47, %v4543_v28  ;;  %v4745_v2 = vmax.f32 %v4647_v3, 0.0 }
 0x318   :  { %v4748_v43 = vmax.f32 %v4650_v60, 0.0 }
 0x319   :  { %v4746_v57 = vmax.f32 %v4648_v30, 0.0  ;;  %v8938_v15 = vpop.f32.mrb[172].mxu1  ;;  %v9066_v19 = vpop.f32.mrb[28].mxu0 }
 0x31a   :  { %v11267_v56 = vpack.c.bf16 %v4748_v43, %v4747_v18  ;;  %v4548_v52 = vadd.f32 %v9066_v19, %v11187_v51  ;;  %v3535_v59 = vpop.f32.mrb[173].mxu1  ;;  %v4149_v36 = vpop.f32.mrb[29].mxu0 }
 0x31b   :  { %v11271_v40 = vadd.f32 %v3535_v59, %v10672_v33  ;;  %v4546_v21 = vadd.f32 %v4149_v36, %v11173_v45  ;;  %v8939_v24 = vpop.f32.mrb[174].mxu1  ;;  %v9067_v16 = vpop.f32.mrb[30].mxu0  ;;  %v4840_v17 = vpack.c.bf16 %v4746_v57, %v4745_v2 }
 0x31c   :  { %v4653_v14 = vadd.f32 %v11197_v47, %v4548_v52  ;;  %v4549_v3 = vadd.f32 %v9067_v16, %v11190_v58  ;;  %v3538_v28 = vpop.f32.mrb[175].mxu1  ;;  %v4152_v60 = vpop.f32.mrb[31].mxu0 }
 0x31d   :  { %v4651_v30 = vadd.f32 %v11197_v47, %v4546_v21  ;;  %v11278_v51 = vadd.f32 %v3538_v28, %v10679_v27  ;;  %v4547_v18 = vadd.f32 %v4152_v60, %v11179_v22  ;;  %4896 = vrot.lane.b32.xlu0 %v4840_v17, %s9505_s1  ;;  %v12642_v60 = vld [vmem:[#allocation51_spill] sm:$0xff] }
 0x31e   :  { %v4654_v33 = vadd.f32 %v11197_v47, %v4549_v3  ;;  %v4751_v43 = vmax.f32 %v4653_v14, 0.0 }
 0x31f   :  { %v4652_v45 = vadd.f32 %v11197_v47, %v4547_v18  ;;  %v4749_v57 = vmax.f32 %v4651_v30, 0.0 }
 0x320   :  { %v4752_v2 = vmax.f32 %v4654_v33, 0.0  ;;  %v9321_v33 = vld [vmem:[%s12430_s6 + $0x440] sm:$0xff]  }
 0x321   :  { %v4750_v58 = vmax.f32 %v4652_v45, 0.0  ;;  %v9070_v15 = vpop.f32.mrb[32].mxu0  ;;  %4887 = vrot.lane.b32.xlu0 %v4838_v53, %s9505_s1  ;;  %v8942_v19 = vpop.f32.mrb[176].mxu1  ;;  %8352 = vmatprep.subr.bf16.mxu0 %v9321_v33 }
 0x322   :  { %v11285_v52 = vpack.c.bf16 %v4752_v2, %v4751_v43  ;;  %v4550_v27 = vadd.f32 %v9070_v15, %v11203_v63  ;;  %v11289_v22 = vadd.f32 %v8942_v19, %v10722_v29  ;;  %v3549_v59 = vpop.f32.mrb[177].mxu1  ;;  %v4165_v36 = vpop.f32.mrb[33].mxu0  ;;  %v12643_v19 = vld [vmem:[#allocation52_spill] sm:$0xff] }
 0x323   :  { %v11292_v21 = vadd.f32 %v3549_v59, %v10699_v12  ;;  %v8943_v24 = vpop.f32.mrb[178].mxu1  ;;  %v9071_v16 = vpop.f32.mrb[34].mxu0  ;;  %v4842_v17 = vpack.c.bf16 %v4750_v58, %v4749_v57 }
 0x324   :  { %v4655_v14 = vadd.f32 %v11197_v47, %v4550_v27  ;;  %v11296_v53 = vadd.f32 %v8943_v24, %v10732_v50  ;;  %v4551_v3 = vadd.f32 %v9071_v16, %v11216_v42  ;;  %v3552_v28 = vpop.f32.mrb[179].mxu1  ;;  %v4167_v63 = vpop.f32.mrb[35].mxu0  ;;  %v9322_v50 = vld [vmem:[%s12430_s6 + $0x400] sm:$0xff]  }
 0x325   :  { %v11300_v29 = vadd.f32 %v3552_v28, %v12642_v60  ;;  %8353 = vmatpush3.bf16.msra.mxu0 %v9322_v50  ;;  %v12644_v60 = vld [vmem:[#allocation53_spill] sm:$0xff] }
 0x326   :  { %v4656_v30 = vadd.f32 %v11197_v47, %v4551_v3  ;;  %v4753_v18 = vmax.f32 %v4655_v14, 0.0 }
 0x328   :  { %v4754_v12 = vmax.f32 %v4656_v30, 0.0 }
 0x329   :  { %v8946_v45 = vpop.f32.mrb[180].mxu1  ;;  %v9074_v43 = vpop.f32.mrb[36].mxu0 }
 0x32a   :  { %v11310_v42 = vadd.f32 %v8946_v45, %v10746_v46  ;;  %v4554_v2 = vadd.f32 %v9074_v43, %v11227_v39  ;;  %v3565_v57 = vpop.f32.mrb[181].mxu1  ;;  %v4179_v58 = vpop.f32.mrb[37].mxu0  ;;  %v4844_v15 = vpack.c.bf16 %v4754_v12, %v4753_v18 }
 0x32b   :  { %v11314_v27 = vadd.f32 %v3565_v57, %v12643_v19  ;;  %v4552_v59 = vadd.f32 %v4179_v58, %v11200_v4  ;;  %v8947_v36 = vpop.f32.mrb[182].mxu1  ;;  %v9075_v24 = vpop.f32.mrb[38].mxu0  ;;  %v12645_v19 = vld [vmem:[#allocation54_spill] sm:$0xff] }
 0x32c   :  { %v4659_v16 = vadd.f32 %v11197_v47, %v4554_v2  ;;  %v11319_v14 = vadd.f32 %v8947_v36, %v10756_v26  ;;  %v4555_v46 = vadd.f32 %v9075_v24, %v11237_v55  ;;  %v4182_v39 = vpop.f32.mrb[39].mxu0  ;;  %4912 = vrot.lane.b32.xlu1 %v4844_v15, %s9505_s1  ;;  %v3568_v3 = vpop.f32.mrb[183].mxu1 }
 0x32d   :  { %v4657_v28 = vadd.f32 %v11197_v47, %v4552_v59  ;;  %v4553_v63 = vadd.f32 %v4182_v39, %v11213_v13  ;;  %v11326_v4 = vadd.f32 %v3568_v3, %v12644_v60 }
 0x32e   :  { %v4660_v30 = vadd.f32 %v11197_v47, %v4555_v46  ;;  %v4757_v12 = vmax.f32 %v4659_v16, 0.0 }
 0x32f   :  { %v4658_v18 = vadd.f32 %v11197_v47, %v4553_v63  ;;  %v4755_v55 = vmax.f32 %v4657_v28, 0.0  ;;  %v12646_v63 = vld [vmem:[#allocation55_spill] sm:$0xff] }
 0x330   :  { %v4758_v26 = vmax.f32 %v4660_v30, 0.0  ;;  %4904 = vrot.lane.b32.xlu1 %v4842_v17, %s9505_s1 }
 0x331   :  { %v4756_v33 = vmax.f32 %v4658_v18, 0.0  ;;  %v8950_v50 = vpop.f32.mrb[184].mxu1  ;;  %v9078_v45 = vpop.f32.mrb[40].mxu0 }
 0x332   :  { %v11332_v43 = vadd.f32 %v8950_v50, %v10768_v9  ;;  %v4558_v13 = vadd.f32 %v9078_v45, %v11249_v11  ;;  %v3581_v2 = vpop.f32.mrb[185].mxu1  ;;  %v4195_v57 = vpop.f32.mrb[41].mxu0  ;;  %v4846_v58 = vpack.c.bf16 %v4758_v26, %v4757_v12 }
 0x333   :  { %v11335_v15 = vpack.c.bf16 %v4756_v33, %v4755_v55  ;;  %v11338_v59 = vadd.f32 %v3581_v2, %v12645_v19  ;;  %v4556_v36 = vadd.f32 %v4195_v57, %v11223_v41  ;;  %v8951_v17 = vpop.f32.mrb[186].mxu1  ;;  %v9079_v24 = vpop.f32.mrb[42].mxu0 }
 0x334   :  { %v4663_v16 = vadd.f32 %v11197_v47, %v4558_v13  ;;  %v11343_v46 = vadd.f32 %v8951_v17, %v10776_v62  ;;  %v4559_v9 = vadd.f32 %v9079_v24, %v11262_v32  ;;  %v4198_v11 = vpop.f32.mrb[43].mxu0  ;;  %4920 = vrot.lane.b32.xlu1 %v4846_v58, %s9505_s1  ;;  %v3584_v39 = vpop.f32.mrb[187].mxu1 }
 0x335   :  { %v4661_v3 = vadd.f32 %v11197_v47, %v4556_v36  ;;  %v4557_v28 = vadd.f32 %v4198_v11, %v11232_v20  ;;  %v11350_v60 = vadd.f32 %v3584_v39, %v12646_v63  ;;  %v12647_v20 = vld [vmem:[#allocation56_spill] sm:$0xff]  ;;  %v12648_v39 = vld [vmem:[#allocation57_spill] sm:$0xff] }
 0x336   :  { %v4664_v41 = vadd.f32 %v11197_v47, %v4559_v9  ;;  %v4761_v18 = vmax.f32 %v4663_v16, 0.0 }
 0x337   :  { %v4662_v30 = vadd.f32 %v11197_v47, %v4557_v28  ;;  %v4759_v12 = vmax.f32 %v4661_v3, 0.0 }
 0x338   :  { %v4762_v62 = vmax.f32 %v4664_v41, 0.0 }
 0x339   :  { %v4760_v26 = vmax.f32 %v4662_v30, 0.0  ;;  %v8954_v32 = vpop.f32.mrb[188].mxu1  ;;  %v9082_v55 = vpop.f32.mrb[44].mxu0 }
 0x33a   :  { %v4562_v33 = vadd.f32 %v9082_v55, %v11271_v40  ;;  %v3597_v50 = vpop.f32.mrb[189].mxu1  ;;  %v4211_v45 = vpop.f32.mrb[45].mxu0  ;;  %v4848_v13 = vpack.c.bf16 %v4762_v62, %v4761_v18 }
 0x33b   :  { %v11355_v2 = vpack.c.bf16 %v4760_v26, %v4759_v12  ;;  %v11358_v57 = vadd.f32 %v3597_v50, %v12647_v20  ;;  %v4560_v58 = vadd.f32 %v4211_v45, %v11245_v44  ;;  %v8955_v19 = vpop.f32.mrb[190].mxu1  ;;  %v9083_v36 = vpop.f32.mrb[46].mxu0  ;;  %v12649_v12 = vld [vmem:[#allocation5_spill] sm:$0xff]  ;;  %v12650_v45 = vld [vmem:[#allocation58_spill] sm:$0xff] }
 0x33c   :  { %v4667_v17 = vadd.f32 %v11197_v47, %v4562_v33  ;;  %v4563_v24 = vadd.f32 %v9083_v36, %v11278_v51  ;;  %v4214_v16 = vpop.f32.mrb[47].mxu0  ;;  %4928 = vrot.lane.b32.xlu0 %v4848_v13, %s9505_s1  ;;  %v3600_v40 = vpop.f32.mrb[191].mxu1  ;;  %v12651_v36 = vld [vmem:[#allocation61_spill] sm:$0xff] }
 0x33d   :  { %v4665_v9 = vadd.f32 %v11197_v47, %v4560_v58  ;;  %v4561_v11 = vadd.f32 %v4214_v16, %v11257_v35  ;;  %v11367_v3 = vadd.f32 %v3600_v40, %v12648_v39  ;;  %v12652_v40 = vld [vmem:[#allocation59_spill] sm:$0xff] }
 0x33e   :  { %v4668_v28 = vadd.f32 %v11197_v47, %v4563_v24  ;;  %v4765_v63 = vmax.f32 %v4667_v17, 0.0 }
 0x33f   :  { %v4666_v44 = vadd.f32 %v11197_v47, %v4561_v11  ;;  %v4763_v30 = vmax.f32 %v4665_v9, 0.0 }
 0x340   :  { %v4766_v41 = vmax.f32 %v4668_v28, 0.0 }
 0x341   :  { %v4764_v18 = vmax.f32 %v4666_v44, 0.0  ;;  %v8958_v51 = vpop.f32.mrb[192].mxu1  ;;  %v9086_v62 = vpop.f32.mrb[48].mxu0 }
 0x342   :  { %v11372_v26 = vadd.f32 %v8958_v51, %v12649_v12  ;;  %v4564_v32 = vadd.f32 %v9086_v62, %v11292_v21  ;;  %v3611_v55 = vpop.f32.mrb[193].mxu1  ;;  %v4227_v35 = vpop.f32.mrb[49].mxu0  ;;  %v4850_v33 = vpack.c.bf16 %v4766_v41, %v4765_v63  ;;  %v9339_v12 = vld [vmem:[%s12430_s6 + $0x448] sm:$0xff]  }
 0x343   :  { %v11375_v50 = vpack.c.bf16 %v4764_v18, %v4763_v30  ;;  %v11378_v13 = vadd.f32 %v3611_v55, %v12650_v45  ;;  %v8959_v20 = vpop.f32.mrb[194].mxu1  ;;  %v9087_v58 = vpop.f32.mrb[50].mxu0  ;;  %v12653_v30 = vld [vmem:[#allocation7_spill] sm:$0xff]  ;;  %8354 = vmatprep.subr.bf16.mxu0 %v9339_v12  ;;  %v12657_v12 = vld [vmem:[#allocation9_spill] sm:$0xff] }
 0x344   :  { %v4669_v19 = vadd.f32 %v11197_v47, %v4564_v32  ;;  %v11382_v17 = vadd.f32 %v8959_v20, %v12651_v36  ;;  %v4565_v24 = vadd.f32 %v9087_v58, %v11300_v29  ;;  %v4229_v16 = vpop.f32.mrb[51].mxu0  ;;  %4936 = vrot.lane.b32.xlu1 %v4850_v33, %s9505_s1  ;;  %v3614_v21 = vpop.f32.mrb[195].mxu1  ;;  %v9340_v32 = vld [vmem:[%s12430_s6 + $0x408] sm:$0xff]  }
 0x345   :  { %v11387_v9 = vadd.f32 %v3614_v21, %v12652_v40  ;;  %v12654_v55 = vld [vmem:[#allocation3_spill] sm:$0xff]  ;;  %v12656_v40 = vld [vmem:[#allocation60_spill] sm:$0xff]  ;;  %8355 = vmatpush3.bf16.msra.mxu0 %v9340_v32 }
 0x346   :  { %v4670_v11 = vadd.f32 %v11197_v47, %v4565_v24  ;;  %v4767_v39 = vmax.f32 %v4669_v19, 0.0  ;;  %v12658_v32 = vld [vmem:[#allocation4_spill] sm:$0xff] }
 0x348   :  { %v4768_v28 = vmax.f32 %v4670_v11, 0.0 }
 0x349   :  { %v8962_v44 = vpop.f32.mrb[196].mxu1  ;;  %v9090_v63 = vpop.f32.mrb[52].mxu0 }
 0x34a   :  { %v11390_v41 = vpack.c.bf16 %v4768_v28, %v4767_v39  ;;  %v11393_v18 = vadd.f32 %v8962_v44, %v12653_v30  ;;  %v4568_v29 = vadd.f32 %v9090_v63, %v11314_v27  ;;  %v3627_v51 = vpop.f32.mrb[197].mxu1  ;;  %v4241_v62 = vpop.f32.mrb[53].mxu0  ;;  %v12655_v27 = vld [vmem:[#allocation63_spill] sm:$0xff] }
 0x34b   :  { %v11403_v35 = vadd.f32 %v3627_v51, %v12654_v55  ;;  %v4566_v33 = vadd.f32 %v4241_v62, %v11289_v22  ;;  %v8963_v45 = vpop.f32.mrb[198].mxu1  ;;  %v9091_v20 = vpop.f32.mrb[54].mxu0 }
 0x34c   :  { %v4673_v58 = vadd.f32 %v11197_v47, %v4568_v29  ;;  %v11408_v19 = vadd.f32 %v8963_v45, %v12655_v27  ;;  %v4569_v36 = vadd.f32 %v9091_v20, %v11326_v4  ;;  %v3630_v24 = vpop.f32.mrb[199].mxu1  ;;  %v4244_v16 = vpop.f32.mrb[55].mxu0 }
 0x34d   :  { %v4671_v21 = vadd.f32 %v11197_v47, %v4566_v33  ;;  %v11413_v11 = vadd.f32 %v3630_v24, %v12656_v40  ;;  %v4567_v39 = vadd.f32 %v4244_v16, %v11296_v53 }
 0x34e   :  { %v4674_v22 = vadd.f32 %v11197_v47, %v4569_v36  ;;  %v4771_v44 = vmax.f32 %v4673_v58, 0.0 }
 0x34f   :  { %v4672_v28 = vadd.f32 %v11197_v47, %v4567_v39  ;;  %v4769_v30 = vmax.f32 %v4671_v21, 0.0  ;;  %v12659_v21 = vld [vmem:[#allocation65_spill] sm:$0xff] }
 0x350   :  { %v4772_v63 = vmax.f32 %v4674_v22, 0.0 }
 0x351   :  { %v4770_v29 = vmax.f32 %v4672_v28, 0.0  ;;  %v8966_v4 = vpop.f32.mrb[200].mxu1  ;;  %v9094_v51 = vpop.f32.mrb[56].mxu0 }
 0x352   :  { %v11418_v62 = vpack.c.bf16 %v4772_v63, %v4771_v44  ;;  %v11421_v55 = vadd.f32 %v8966_v4, %v12657_v12  ;;  %v4572_v33 = vadd.f32 %v9094_v51, %v11338_v59  ;;  %v3643_v45 = vpop.f32.mrb[201].mxu1  ;;  %v4257_v53 = vpop.f32.mrb[57].mxu0  ;;  %v12660_v44 = vld [vmem:[#allocation62_spill] sm:$0xff] }
 0x353   :  { %v11425_v20 = vadd.f32 %v3643_v45, %v12658_v32  ;;  %v4570_v27 = vadd.f32 %v4257_v53, %v11310_v42  ;;  %v8967_v58 = vpop.f32.mrb[202].mxu1  ;;  %v9095_v36 = vpop.f32.mrb[58].mxu0  ;;  %v4852_v24 = vpack.c.bf16 %v4770_v29, %v4769_v30 }
 0x354   :  { %v4677_v16 = vadd.f32 %v11197_v47, %v4572_v33  ;;  %v11430_v40 = vadd.f32 %v8967_v58, %v12659_v21  ;;  %v4573_v39 = vadd.f32 %v9095_v36, %v11350_v60  ;;  %v3646_v22 = vpop.f32.mrb[203].mxu1  ;;  %v4260_v28 = vpop.f32.mrb[59].mxu0  ;;  %v12661_v36 = vld [vmem:[#allocation6_spill] sm:$0xff] }
 0x355   :  { %v4675_v59 = vadd.f32 %v11197_v47, %v4570_v27  ;;  %v11435_v63 = vadd.f32 %v3646_v22, %v12660_v44  ;;  %v4571_v4 = vadd.f32 %v4260_v28, %v11319_v14  ;;  %4944 = vrot.lane.b32.xlu0 %v4852_v24, %s9505_s1 }
 0x356   :  { %v4678_v42 = vadd.f32 %v11197_v47, %v4573_v39  ;;  %v4775_v29 = vmax.f32 %v4677_v16, 0.0 }
 0x357   :  { %v4676_v30 = vadd.f32 %v11197_v47, %v4571_v4  ;;  %v4773_v12 = vmax.f32 %v4675_v59, 0.0 }
 0x358   :  { %v4776_v51 = vmax.f32 %v4678_v42, 0.0  ;;  %v12662_v42 = vld [vmem:[#allocation64_spill] sm:$0xff] }
 0x359   :  { %v4774_v33 = vmax.f32 %v4676_v30, 0.0  ;;  %v8970_v60 = vpop.f32.mrb[204].mxu1  ;;  %v9098_v45 = vpop.f32.mrb[60].mxu0 }
 0x35a   :  { %v11441_v53 = vpack.c.bf16 %v4776_v51, %v4775_v29  ;;  %v4576_v32 = vadd.f32 %v9098_v45, %v11358_v57  ;;  %v3659_v27 = vpop.f32.mrb[205].mxu1  ;;  %v4273_v58 = vpop.f32.mrb[61].mxu0 }
 0x35b   :  { %v11445_v14 = vadd.f32 %v3659_v27, %v12661_v36  ;;  %v4574_v24 = vadd.f32 %v4273_v58, %v11332_v43  ;;  %v8971_v21 = vpop.f32.mrb[206].mxu1  ;;  %v9099_v39 = vpop.f32.mrb[62].mxu0  ;;  %v4854_v22 = vpack.c.bf16 %v4774_v33, %v4773_v12  ;;  %v12663_v27 = vld [vmem:[#allocation13_spill] sm:$0xff] }
 0x35c   :  { %v4681_v16 = vadd.f32 %v11197_v47, %v4576_v32  ;;  %v4577_v28 = vadd.f32 %v9099_v39, %v11367_v3  ;;  %v3662_v59 = vpop.f32.mrb[207].mxu1  ;;  %v4276_v44 = vpop.f32.mrb[63].mxu0  ;;  %v12664_v21 = vld [vmem:[#allocation8_spill] sm:$0xff] }
 0x35d   :  { %v4679_v4 = vadd.f32 %v11197_v47, %v4574_v24  ;;  %v11452_v57 = vadd.f32 %v3662_v59, %v12662_v42  ;;  %v4575_v30 = vadd.f32 %v4276_v44, %v11343_v46  ;;  %4952 = vrot.lane.b32.xlu1 %v4854_v22, %s9505_s1  ;;  %v12665_v44 = vld [vmem:[#allocation67_spill] sm:$0xff] }
 0x35e   :  { %v4682_v43 = vadd.f32 %v11197_v47, %v4577_v28  ;;  %v4779_v51 = vmax.f32 %v4681_v16, 0.0 }
 0x35f   :  { %v4680_v29 = vadd.f32 %v11197_v47, %v4575_v30  ;;  %v4777_v33 = vmax.f32 %v4679_v4, 0.0 }
 0x360   :  { %v4780_v12 = vmax.f32 %v4682_v43, 0.0 }
 0x361   :  { %v4778_v60 = vmax.f32 %v4680_v29, 0.0  ;;  %v8974_v3 = vpop.f32.mrb[208].mxu1  ;;  %v9102_v45 = vpop.f32.mrb[64].mxu0  ;;  %v12666_v29 = vld [vmem:[#allocation11_spill] sm:$0xff] }
 0x362   :  { %v11458_v32 = vpack.c.bf16 %v4780_v12, %v4779_v51  ;;  %v11461_v58 = vadd.f32 %v8974_v3, %v12663_v27  ;;  %v4578_v36 = vadd.f32 %v9102_v45, %v11378_v13  ;;  %v3673_v46 = vpop.f32.mrb[209].mxu1  ;;  %v4289_v24 = vpop.f32.mrb[65].mxu0  ;;  %v9357_v13 = vld [vmem:[%s12430_s6 + $0x450] sm:$0xff]   ;;  %v12667_v27 = vld [vmem:[#allocation15_spill] sm:$0xff] }
 0x363   :  { %v11465_v39 = vadd.f32 %v3673_v46, %v12664_v21  ;;  %v8975_v22 = vpop.f32.mrb[210].mxu1  ;;  %v9103_v28 = vpop.f32.mrb[66].mxu0  ;;  %v4856_v16 = vpack.c.bf16 %v4778_v60, %v4777_v33  ;;  %8356 = vmatprep.subr.bf16.mxu0 %v9357_v13 }
 0x364   :  { %v4683_v59 = vadd.f32 %v11197_v47, %v4578_v36  ;;  %v11469_v4 = vadd.f32 %v8975_v22, %v12665_v44  ;;  %v4579_v42 = vadd.f32 %v9103_v28, %v11387_v9  ;;  %v3676_v30 = vpop.f32.mrb[211].mxu1  ;;  %v4291_v43 = vpop.f32.mrb[67].mxu0  ;;  %v9358_v9 = vld [vmem:[%s12430_s6 + $0x410] sm:$0xff]   ;;  %v12668_v28 = vld [vmem:[#allocation10_spill] sm:$0xff] }
 0x365   :  { %v11473_v51 = vadd.f32 %v3676_v30, %v12666_v29  ;;  %4960 = vrot.lane.b32.xlu0 %v4856_v16, %s9505_s1  ;;  %8357 = vmatpush3.bf16.msra.mxu0 %v9358_v9  ;;  %v12669_v43 = vld [vmem:[#allocation69_spill] sm:$0xff]  ;;  %v12670_v9 = vld [vmem:[#allocation66_spill] sm:$0xff] }
 0x366   :  { %v4684_v12 = vadd.f32 %v11197_v47, %v4579_v42  ;;  %v4781_v33 = vmax.f32 %v4683_v59, 0.0 }
 0x368   :  { %v4782_v60 = vmax.f32 %v4684_v12, 0.0 }
 0x369   :  { %v8978_v3 = vpop.f32.mrb[212].mxu1  ;;  %v9106_v45 = vpop.f32.mrb[68].mxu0 }
 0x36a   :  { %v11484_v36 = vadd.f32 %v8978_v3, %v12667_v27  ;;  %v4582_v46 = vadd.f32 %v9106_v45, %v11403_v35  ;;  %v3689_v24 = vpop.f32.mrb[213].mxu1  ;;  %v4303_v21 = vpop.f32.mrb[69].mxu0  ;;  %v4858_v22 = vpack.c.bf16 %v4782_v60, %v4781_v33 }
 0x36b   :  { %v11488_v16 = vadd.f32 %v3689_v24, %v12668_v28  ;;  %v4580_v59 = vadd.f32 %v4303_v21, %v11372_v26  ;;  %v8979_v44 = vpop.f32.mrb[214].mxu1  ;;  %v9107_v42 = vpop.f32.mrb[70].mxu0 }
 0x36c   :  { %v4687_v30 = vadd.f32 %v11197_v47, %v4582_v46  ;;  %v11493_v29 = vadd.f32 %v8979_v44, %v12669_v43  ;;  %v4583_v13 = vadd.f32 %v9107_v42, %v11413_v11  ;;  %v4306_v12 = vpop.f32.mrb[71].mxu0  ;;  %4968 = vrot.lane.b32.xlu1 %v4858_v22, %s9505_s1  ;;  %v3692_v35 = vpop.f32.mrb[215].mxu1  ;;  %v12671_v44 = vld [vmem:[#allocation17_spill] sm:$0xff] }
 0x36d   :  { %v4685_v33 = vadd.f32 %v11197_v47, %v4580_v59  ;;  %v4581_v60 = vadd.f32 %v4306_v12, %v11382_v17  ;;  %v11500_v3 = vadd.f32 %v3692_v35, %v12670_v9  ;;  %v12673_v35 = vld [vmem:[#allocation12_spill] sm:$0xff] }
 0x36e   :  { %v4688_v26 = vadd.f32 %v11197_v47, %v4583_v13  ;;  %v4785_v27 = vmax.f32 %v4687_v30, 0.0 }
 0x36f   :  { %v4686_v45 = vadd.f32 %v11197_v47, %v4581_v60  ;;  %v4783_v24 = vmax.f32 %v4685_v33, 0.0 }
 0x370   :  { %v4786_v46 = vmax.f32 %v4688_v26, 0.0  ;;  %v12674_v26 = vld [vmem:[#allocation71_spill] sm:$0xff] }
 0x371   :  { %v4784_v21 = vmax.f32 %v4686_v45, 0.0  ;;  %v8982_v11 = vpop.f32.mrb[216].mxu1  ;;  %v9110_v28 = vpop.f32.mrb[72].mxu0 }
 0x372   :  { %v11505_v22 = vadd.f32 %v8982_v11, %v12671_v44  ;;  %v4586_v59 = vadd.f32 %v9110_v28, %v11425_v20  ;;  %v3705_v42 = vpop.f32.mrb[217].mxu1  ;;  %v4319_v17 = vpop.f32.mrb[73].mxu0  ;;  %v4860_v43 = vpack.c.bf16 %v4786_v46, %v4785_v27 }
 0x373   :  { %v11508_v12 = vpack.c.bf16 %v4784_v21, %v4783_v24  ;;  %v11511_v13 = vadd.f32 %v3705_v42, %v12673_v35  ;;  %v4584_v30 = vadd.f32 %v4319_v17, %v11393_v18  ;;  %v8983_v60 = vpop.f32.mrb[218].mxu1  ;;  %v9111_v33 = vpop.f32.mrb[74].mxu0  ;;  %v12675_v21 = vld [vmem:[#allocation68_spill] sm:$0xff] }
 0x374   :  { %v4691_v9 = vadd.f32 %v11197_v47, %v4586_v59  ;;  %v11516_v45 = vadd.f32 %v8983_v60, %v12674_v26  ;;  %v4587_v11 = vadd.f32 %v9111_v33, %v11435_v63  ;;  %v4322_v20 = vpop.f32.mrb[75].mxu0  ;;  %4976 = vrot.lane.b32.xlu0 %v4860_v43, %s9505_s1  ;;  %v3708_v27 = vpop.f32.mrb[219].mxu1 }
 0x375   :  { %12672 = vst [vmem:[#allocation27_spill] sm:$0xff] %v11508_v12  ;;  %v4689_v46 = vadd.f32 %v11197_v47, %v4584_v30  ;;  %v4585_v24 = vadd.f32 %v4322_v20, %v11408_v19  ;;  %v11523_v28 = vadd.f32 %v3708_v27, %v12675_v21  ;;  %v12676_v19 = vld [vmem:[#allocation14_spill] sm:$0xff] }
 0x376   :  { %v4692_v18 = vadd.f32 %v11197_v47, %v4587_v11  ;;  %v4789_v59 = vmax.f32 %v4691_v9, 0.0 }
 0x377   :  { %v4690_v44 = vadd.f32 %v11197_v47, %v4585_v24  ;;  %v4787_v17 = vmax.f32 %v4689_v46, 0.0 }
 0x378   :  { %v4790_v42 = vmax.f32 %v4692_v18, 0.0 }
 0x379   :  { %v4788_v35 = vmax.f32 %v4690_v44, 0.0  ;;  %v8986_v63 = vpop.f32.mrb[220].mxu1  ;;  %v9114_v60 = vpop.f32.mrb[76].mxu0 }
 0x37a   :  { %v4590_v43 = vadd.f32 %v9114_v60, %v11445_v14  ;;  %v3721_v33 = vpop.f32.mrb[221].mxu1  ;;  %v4335_v26 = vpop.f32.mrb[77].mxu0  ;;  %v4862_v30 = vpack.c.bf16 %v4790_v42, %v4789_v59  ;;  %v12677_v59 = vld [vmem:[#allocation70_spill] sm:$0xff] }
 0x37b   :  { %v11528_v12 = vpack.c.bf16 %v4788_v35, %v4787_v17  ;;  %v11531_v20 = vadd.f32 %v3721_v33, %v12676_v19  ;;  %v4588_v11 = vadd.f32 %v4335_v26, %v11421_v55  ;;  %v8987_v27 = vpop.f32.mrb[222].mxu1  ;;  %v9115_v24 = vpop.f32.mrb[78].mxu0  ;;  %v9375_v55 = vld [vmem:[%s12430_s6 + $0x458] sm:$0xff]  }
 0x37c   :  { %v4695_v9 = vadd.f32 %v11197_v47, %v4590_v43  ;;  %v4591_v46 = vadd.f32 %v9115_v24, %v11452_v57  ;;  %v4338_v21 = vpop.f32.mrb[79].mxu0  ;;  %4984 = vrot.lane.b32.xlu1 %v4862_v30, %s9505_s1  ;;  %v3724_v14 = vpop.f32.mrb[223].mxu1  ;;  %v9376_v57 = vld [vmem:[%s12430_s6 + $0x418] sm:$0xff]   ;;  %8358 = vmatprep.subr.bf16.mxu0 %v9375_v55 }
 0x37d   :  { %v4693_v18 = vadd.f32 %v11197_v47, %v4588_v11  ;;  %v4589_v44 = vadd.f32 %v4338_v21, %v11430_v40  ;;  %v11540_v42 = vadd.f32 %v3724_v14, %v12677_v59  ;;  %8359 = vmatpush3.bf16.msra.mxu0 %v9376_v57  ;;  %v12678_v30 = vld [vmem:[#allocation21_spill] sm:$0xff]  ;;  %v12679_v14 = vld [vmem:[#allocation16_spill] sm:$0xff] }
 0x37e   :  { %v4696_v17 = vadd.f32 %v11197_v47, %v4591_v46  ;;  %v4793_v63 = vmax.f32 %v4695_v9, 0.0 }
 0x37f   :  { %v4694_v35 = vadd.f32 %v11197_v47, %v4589_v44  ;;  %v4791_v43 = vmax.f32 %v4693_v18, 0.0 }
 0x380   :  { %v4794_v60 = vmax.f32 %v4696_v17, 0.0  ;;  %v12680_v17 = vld [vmem:[#allocation73_spill] sm:$0xff] }
 0x381   :  { %v4792_v40 = vmax.f32 %v4694_v35, 0.0  ;;  %v8990_v33 = vpop.f32.mrb[224].mxu1  ;;  %v9118_v26 = vpop.f32.mrb[80].mxu0 }
 0x382   :  { %v11551_v19 = vadd.f32 %v8990_v33, %v12678_v30  ;;  %v4592_v11 = vadd.f32 %v9118_v26, %v11465_v39  ;;  %v3735_v27 = vpop.f32.mrb[225].mxu1  ;;  %v4351_v24 = vpop.f32.mrb[81].mxu0  ;;  %v4864_v46 = vpack.c.bf16 %v4794_v60, %v4793_v63  ;;  %v12681_v33 = vld [vmem:[#allocation19_spill] sm:$0xff] }
 0x383   :  { %v11554_v21 = vpack.c.bf16 %v4792_v40, %v4791_v43  ;;  %v11557_v44 = vadd.f32 %v3735_v27, %v12679_v14  ;;  %v8991_v9 = vpop.f32.mrb[226].mxu1  ;;  %v9119_v59 = vpop.f32.mrb[82].mxu0 }
 0x384   :  { %v4697_v18 = vadd.f32 %v11197_v47, %v4592_v11  ;;  %v11561_v55 = vadd.f32 %v8991_v9, %v12680_v17  ;;  %v4593_v57 = vadd.f32 %v9119_v59, %v11473_v51  ;;  %v4353_v35 = vpop.f32.mrb[83].mxu0  ;;  %4992 = vrot.lane.b32.xlu0 %v4864_v46, %s9505_s1  ;;  %v3738_v39 = vpop.f32.mrb[227].mxu1  ;;  %v12682_v11 = vld [vmem:[#allocation23_spill] sm:$0xff]  ;;  %v12683_v46 = vld [vmem:[#allocation18_spill] sm:$0xff] }
 0x385   :  { %v11566_v63 = vadd.f32 %v3738_v39, %v12681_v33  ;;  %v12684_v39 = vld [vmem:[#allocation75_spill] sm:$0xff] }
 0x386   :  { %v4698_v60 = vadd.f32 %v11197_v47, %v4593_v57  ;;  %v4795_v43 = vmax.f32 %v4697_v18, 0.0 }
 0x388   :  { %v4796_v40 = vmax.f32 %v4698_v60, 0.0 }
 0x389   :  { %v8994_v26 = vpop.f32.mrb[228].mxu1  ;;  %v9122_v30 = vpop.f32.mrb[84].mxu0 }
 0x38a   :  { %v11569_v27 = vpack.c.bf16 %v4796_v40, %v4795_v43  ;;  %v11572_v24 = vadd.f32 %v8994_v26, %v12682_v11  ;;  %v4596_v51 = vadd.f32 %v9122_v30, %v11488_v16  ;;  %v3751_v14 = vpop.f32.mrb[229].mxu1  ;;  %v4365_v9 = vpop.f32.mrb[85].mxu0  ;;  %v12685_v26 = vld [vmem:[#allocation72_spill] sm:$0xff] }
 0x38b   :  { %v11576_v59 = vadd.f32 %v3751_v14, %v12683_v46  ;;  %v4594_v17 = vadd.f32 %v4365_v9, %v11461_v58  ;;  %v8995_v35 = vpop.f32.mrb[230].mxu1  ;;  %v9123_v57 = vpop.f32.mrb[86].mxu0 }
 0x38c   :  { %v4701_v18 = vadd.f32 %v11197_v47, %v4596_v51  ;;  %v11581_v33 = vadd.f32 %v8995_v35, %v12684_v39  ;;  %v4597_v60 = vadd.f32 %v9123_v57, %v11500_v3  ;;  %v3754_v43 = vpop.f32.mrb[231].mxu1  ;;  %v4368_v40 = vpop.f32.mrb[87].mxu0 }
 0x38d   :  { %v4699_v16 = vadd.f32 %v11197_v47, %v4594_v17  ;;  %v11586_v30 = vadd.f32 %v3754_v43, %v12685_v26  ;;  %v4595_v11 = vadd.f32 %v4368_v40, %v11469_v4 }
 0x38e   :  { %v4702_v58 = vadd.f32 %v11197_v47, %v4597_v60  ;;  %v4799_v9 = vmax.f32 %v4701_v18, 0.0  ;;  %v9316_v18 = vld [vmem:[%s12430_s6 + $0x80] sm:$0xff]  }
 0x38f   :  { %v4700_v14 = vadd.f32 %v11197_v47, %v4595_v11  ;;  %v4897_v51 = vpop.permute.xlu0 %4896  ;;  %v4797_v35 = vmax.f32 %v4699_v16, 0.0  ;;  %v12686_v11 = vld [vmem:[#allocation20_spill] sm:$0xff] }
 0x390   :  { %v4800_v46 = vmax.f32 %v4702_v58, 0.0  ;;  %v4900_v3 = vsel %vm4889_vm2, %v11242_v5, %v4897_v51 }
 0x391   :  { %v4798_v57 = vmax.f32 %v4700_v14, 0.0  ;;  %v8998_v39 = vpop.f32.mrb[232].mxu1  ;;  %v9126_v17 = vpop.f32.mrb[88].mxu0  ;;  %6715 = vmatprep.mubr.bf16.mxu1 %v4900_v3 }
 0x392   :  { %v11593_v43 = vpack.c.bf16 %v4800_v46, %v4799_v9  ;;  %v11596_v4 = vadd.f32 %v8998_v39, %v11042_v7  ;;  %v4600_v60 = vadd.f32 %v9126_v17, %v11511_v13  ;;  %v3767_v40 = vpop.f32.mrb[233].mxu1  ;;  %v4381_v26 = vpop.f32.mrb[89].mxu0  ;;  %v9317_v7 = vld [vmem:[%s12430_s6 + $0xc8] sm:$0xff]  }
 0x393   :  { %v11603_v5 = vadd.f32 %v3767_v40, %v12686_v11  ;;  %v4598_v16 = vadd.f32 %v4381_v26, %v11484_v36  ;;  %v9127_v58 = vpop.f32.mrb[90].mxu0  ;;  %v4888_v14 = vpop.permute.xlu0 %4887  ;;  %v4866_v51 = vpack.c.bf16 %v4798_v57, %v4797_v35 }
 0x394   :  { %v4705_v13 = vadd.f32 %v11197_v47, %v4600_v60  ;;  %v4601_v9 = vadd.f32 %v9127_v58, %v11523_v28  ;;  %v4892_v46 = vsel %vm4889_vm2, %v11220_v54, %v4888_v14  ;;  %v8999_v3 = vpop.f32.mrb[234].mxu1  ;;  %v4384_v39 = vpop.f32.mrb[91].mxu0  ;;  %v12687_v60 = vld [vmem:[#allocation74_spill] sm:$0xff]  ;;  %v9318_v54 = vld [vmem:[%s12430_s6 + $0x88] sm:$0xff]  }
 0x395   :  { %v4703_v17 = vadd.f32 %v11197_v47, %v4598_v16  ;;  %v11615_v36 = vadd.f32 %v8999_v3, %v11050_v34  ;;  %v3770_v40 = vpop.f32.mrb[235].mxu1  ;;  %v4599_v35 = vadd.f32 %v4384_v39, %v11493_v29  ;;  %5000 = vrot.lane.b32.xlu1 %v4866_v51, %s9505_s1  ;;  %6716 = vmatmul.mubr.bf16.vlgmr.msra.gmra.mrb[0].mxu1 %v4892_v46  ;;  %v9319_v34 = vld [vmem:[%s12430_s6 + $0xd0] sm:$0xff]  }
 0x396   :  { %v4706_v57 = vadd.f32 %v11197_v47, %v4601_v9  ;;  %v11621_v28 = vadd.f32 %v3770_v40, %v12687_v60  ;;  %8199 = vmatpush3.bf16.msra.mxu1 %v9316_v18  ;;  %v4803_v29 = vmax.f32 %v4705_v13, 0.0 }
 0x397   :  { %v4704_v26 = vadd.f32 %v11197_v47, %v4599_v35  ;;  %8200 = vmatprep.subr.bf16.mxu1 %v9317_v7  ;;  %v4801_v16 = vmax.f32 %v4703_v17, 0.0  ;;  %v9320_v47 = vld [vmem:[%s12430_s6 + $0x90] sm:$0xff]   ;;  %v11646_v35 = vld [vmem:[%s12431_s5] ss:$0 sm:$0xff] }
 0x398   :  { %v4804_v11 = vmax.f32 %v4706_v57, 0.0 }
 0x399   :  { %v4802_v58 = vmax.f32 %v4704_v26, 0.0  ;;  %v9002_v14 = vpop.f32.mrb[236].mxu1  ;;  %v9130_v51 = vpop.f32.mrb[92].mxu0  ;;  %v12688_v26 = vld [vmem:[#allocation22_spill] sm:$0xff] }
 0x39a   :  { %v11630_v9 = vpack.c.bf16 %v4804_v11, %v4803_v29  ;;  %v4604_v18 = vadd.f32 %v9130_v51, %v11531_v20  ;;  %v3783_v46 = vpop.f32.mrb[237].mxu1  ;;  %v4397_v3 = vpop.f32.mrb[93].mxu0  ;;  %8201 = vmatpush3.bf16.msra.mxu1 %v9318_v54  ;;  %v9323_v20 = vld [vmem:[%s12430_s6 + $0xd8] sm:$0xff]  }
 0x39b   :  { %v11637_v7 = vadd.f32 %v3783_v46, %v11037_v38  ;;  %v4602_v13 = vadd.f32 %v4397_v3, %v11505_v22  ;;  %v9003_v39 = vpop.f32.mrb[238].mxu1  ;;  %v9131_v17 = vpop.f32.mrb[94].mxu0  ;;  %v4868_v40 = vpack.c.bf16 %v4802_v58, %v4801_v16  ;;  %8202 = vmatprep.subr.bf16.mxu1 %v9319_v34  ;;  %v9324_v58 = vld [vmem:[%s12430_s6 + $0x98] sm:$0xff]  }
 0x39c   :  { %v4709_v57 = vadd.f32 %v11646_v35, %v4604_v18  ;;  %v4605_v38 = vadd.f32 %v9131_v17, %v11540_v42  ;;  %v3786_v60 = vpop.f32.mrb[239].mxu1  ;;  %v4400_v54 = vpop.f32.mrb[95].mxu0  ;;  %v9393_v42 = vld [vmem:[%s12430_s6 + $0x460] sm:$0xff]  }
 0x39d   :  { %v4707_v22 = vadd.f32 %v11646_v35, %v4602_v13  ;;  %v11652_v29 = vadd.f32 %v3786_v60, %v12688_v26  ;;  %v4603_v34 = vadd.f32 %v4400_v54, %v11516_v45  ;;  %5008 = vrot.lane.b32.xlu0 %v4868_v40, %s9505_s1  ;;  %v9325_v45 = vld [vmem:[%s12430_s6 + $0xe0] sm:$0xff]   ;;  %8360 = vmatprep.subr.bf16.mxu0 %v9393_v42 }
 0x39e   :  { %v4710_v11 = vadd.f32 %v11646_v35, %v4605_v38  ;;  %v4913_v16 = vpop.permute.xlu1 %4912  ;;  %8203 = vmatpush3.bf16.msra.mxu1 %v9320_v47  ;;  %v4807_v18 = vmax.f32 %v4709_v57, 0.0  ;;  %v9326_v57 = vld [vmem:[%s12430_s6 + $0xa0] sm:$0xff]  }
 0x39f   :  { %v4708_v14 = vadd.f32 %v11646_v35, %v4603_v34  ;;  %v4916_v51 = vsel %vm4889_vm2, %v11285_v52, %v4913_v16  ;;  %8204 = vmatprep.subr.bf16.mxu1 %v9323_v20  ;;  %v4805_v3 = vmax.f32 %v4707_v22, 0.0  ;;  %v12689_v34 = vld [vmem:[#allocation25_spill] sm:$0xff] }
 0x3a0   :  { %v4808_v46 = vmax.f32 %v4710_v11, 0.0  ;;  %6756 = vmatprep.mubr.bf16.mxu1 %v4916_v51  ;;  %v9394_v51 = vld [vmem:[%s12430_s6 + $0x420] sm:$0xff]  }
 0x3a1   :  { %v4806_v47 = vmax.f32 %v4708_v14, 0.0  ;;  %v9006_v13 = vpop.f32.mrb[240].mxu1  ;;  %v9134_v39 = vpop.f32.mrb[96].mxu0  ;;  %8361 = vmatpush3.bf16.msra.mxu0 %v9394_v51 }
 0x3a2   :  { %v11669_v17 = vpack.c.bf16 %v4808_v46, %v4807_v18  ;;  %v11672_v40 = vadd.f32 %v9006_v13, %v11075_v23  ;;  %v4606_v52 = vadd.f32 %v9134_v39, %v11557_v44  ;;  %v4413_v20 = vpop.f32.mrb[97].mxu0  ;;  %v4905_v38 = vpop.permute.xlu1 %4904  ;;  %8205 = vmatpush3.bf16.msra.mxu1 %v9324_v58  ;;  %v9327_v23 = vld [vmem:[%s12430_s6 + $0xe8] sm:$0xff]   ;;  %v12690_v18 = vld [vmem:[#allocation24_spill] sm:$0xff] }
 0x3a3   :  { %v11680_v60 = vsel %vm4889_vm2, %v11267_v56, %v4905_v38  ;;  %v3797_v54 = vpop.f32.mrb[241].mxu1  ;;  %v9135_v22 = vpop.f32.mrb[98].mxu0  ;;  %8206 = vmatprep.subr.bf16.mxu1 %v9325_v45  ;;  %v11685_v26 = vpack.c.bf16 %v4806_v47, %v4805_v3  ;;  %v9329_v47 = vld [vmem:[%s12430_s6 + $0xf0] sm:$0xff]  }
 0x3a4   :  { %v4711_v44 = vadd.f32 %v11646_v35, %v4606_v52  ;;  %v11689_v11 = vadd.f32 %v3797_v54, %v12689_v34  ;;  %v9007_v16 = vpop.f32.mrb[242].mxu1  ;;  %v4607_v58 = vadd.f32 %v9135_v22, %v11566_v63  ;;  %v4415_v42 = vpop.f32.mrb[99].mxu0  ;;  %v9328_v63 = vld [vmem:[%s12430_s6 + $0xa8] sm:$0xff]  }
 0x3a5   :  { %v11693_v56 = vadd.f32 %v9007_v16, %v11081_v1  ;;  %v3800_v14 = vpop.f32.mrb[243].mxu1  ;;  %v9401_v52 = vld [vmem:[%s12430_s6 + $0x468] sm:$0xff]  }
 0x3a6   :  { %v4712_v45 = vadd.f32 %v11646_v35, %v4607_v58  ;;  %v11700_v46 = vadd.f32 %v3800_v14, %v12690_v18  ;;  %v4921_v3 = vpop.permute.xlu1 %4920  ;;  %8207 = vmatpush3.bf16.msra.mxu1 %v9326_v57  ;;  %v4809_v13 = vmax.f32 %v4711_v44, 0.0  ;;  %v9402_v57 = vld [vmem:[%s12430_s6 + $0x428] sm:$0xff]   ;;  %v9330_v44 = vld [vmem:[%s12430_s6 + $0xb0] sm:$0xff]   ;;  %8362 = vmatprep.subr.bf16.mxu0 %v9401_v52 }
 0x3a7   :  { %v11707_v1 = vsel %vm4889_vm2, %v11335_v15, %v4921_v3  ;;  %8208 = vmatprep.subr.bf16.mxu1 %v9327_v23  ;;  %8363 = vmatpush3.bf16.msra.mxu0 %v9402_v57  ;;  %v9409_v57 = vld [vmem:[%s12430_s6 + $0x478] sm:$0xff]  }
 0x3a8   :  { %v4810_v39 = vmax.f32 %v4712_v45, 0.0 }
 0x3a9   :  { %v9010_v20 = vpop.f32.mrb[244].mxu1  ;;  %v9138_v38 = vpop.f32.mrb[100].mxu0 }
 0x3aa   :  { %v11719_v15 = vadd.f32 %v9010_v20, %v11091_v6  ;;  %v4610_v54 = vadd.f32 %v9138_v38, %v11576_v59  ;;  %v3813_v22 = vpop.f32.mrb[245].mxu1  ;;  %v4427_v23 = vpop.f32.mrb[101].mxu0  ;;  %8209 = vmatpush3.bf16.msra.mxu1 %v9328_v63  ;;  %v11725_v34 = vpack.c.bf16 %v4810_v39, %v4809_v13  ;;  %v9331_v59 = vld [vmem:[%s12430_s6 + $0xf8] sm:$0xff]  }
 0x3ab   :  { %v11728_v16 = vadd.f32 %v3813_v22, %v11072_v37  ;;  %v4608_v58 = vadd.f32 %v4427_v23, %v11551_v19  ;;  %v9011_v42 = vpop.f32.mrb[246].mxu1  ;;  %v9139_v6 = vpop.f32.mrb[102].mxu0  ;;  %8210 = vmatprep.subr.bf16.mxu1 %v9329_v47  ;;  %v9405_v19 = vld [vmem:[%s12430_s6 + $0x470] sm:$0xff]   ;;  %v9332_v39 = vld [vmem:[%s12430_s6 + $0xb8] sm:$0xff]  }
 0x3ac   :  { %v4715_v14 = vadd.f32 %v11646_v35, %v4610_v54  ;;  %v11736_v51 = vadd.f32 %v9011_v42, %v11097_v25  ;;  %v4611_v45 = vadd.f32 %v9139_v6, %v11586_v30  ;;  %v3816_v18 = vpop.f32.mrb[247].mxu1  ;;  %v4430_v37 = vpop.f32.mrb[103].mxu0  ;;  %v9406_v25 = vld [vmem:[%s12430_s6 + $0x430] sm:$0xff]   ;;  %8364 = vmatprep.subr.bf16.mxu0 %v9405_v19 }
 0x3ad   :  { %v4713_v3 = vadd.f32 %v11646_v35, %v4608_v58  ;;  %v11744_v63 = vadd.f32 %v3816_v18, %v11078_v10  ;;  %v4609_v47 = vadd.f32 %v4430_v37, %v11561_v55  ;;  %v9333_v55 = vld [vmem:[%s12430_s6 + $0x140] sm:$0xff]   ;;  %8365 = vmatpush3.bf16.msra.mxu0 %v9406_v25 }
 0x3ae   :  { %v4716_v13 = vadd.f32 %v11646_v35, %v4611_v45  ;;  %v4929_v30 = vpop.permute.xlu0 %4928  ;;  %8211 = vmatpush3.bf16.msra.mxu1 %v9330_v44  ;;  %v4813_v20 = vmax.f32 %v4715_v14, 0.0  ;;  %v9334_v45 = vld [vmem:[%s12430_s6 + $0x100] sm:$0xff]   ;;  %8366 = vmatprep.subr.bf16.mxu0 %v9409_v57 }
 0x3af   :  { %v4714_v52 = vadd.f32 %v11646_v35, %v4609_v47  ;;  %v4932_v10 = vsel %vm4889_vm2, %v11355_v2, %v4929_v30  ;;  %8212 = vmatprep.subr.bf16.mxu1 %v9331_v59  ;;  %v4811_v54 = vmax.f32 %v4713_v3, 0.0  ;;  %v9410_v2 = vld [vmem:[%s12430_s6 + $0x438] sm:$0xff]  }
 0x3b0   :  { %v4814_v38 = vmax.f32 %v4716_v13, 0.0 }
 0x3b1   :  { %v4812_v22 = vmax.f32 %v4714_v52, 0.0  ;;  %v9014_v23 = vpop.f32.mrb[248].mxu1  ;;  %v9142_v44 = vpop.f32.mrb[104].mxu0  ;;  %8367 = vmatpush3.bf16.msra.mxu0 %v9410_v2 }
 0x3b2   :  { %v11767_v58 = vadd.f32 %v9014_v23, %v11107_v8  ;;  %v4614_v42 = vadd.f32 %v9142_v44, %v11603_v5  ;;  %v3829_v6 = vpop.f32.mrb[249].mxu1  ;;  %v4443_v59 = vpop.f32.mrb[105].mxu0  ;;  %v4874_v14 = vpack.c.bf16 %v4814_v38, %v4813_v20  ;;  %8213 = vmatpush3.bf16.msra.mxu1 %v9332_v39  ;;  %v9335_v5 = vld [vmem:[%s12430_s6 + $0x148] sm:$0xff]  }
 0x3b3   :  { %v11773_v18 = vpack.c.bf16 %v4812_v22, %v4811_v54  ;;  %v11776_v37 = vadd.f32 %v3829_v6, %v11088_v0  ;;  %v4612_v19 = vadd.f32 %v4443_v59, %v11572_v24  ;;  %v9015_v8 = vpop.f32.mrb[250].mxu1  ;;  %v9143_v3 = vpop.f32.mrb[106].mxu0  ;;  %8220 = vmatprep.subr.bf16.mxu1 %v9333_v55 }
 0x3b4   :  { %v4719_v47 = vadd.f32 %v11646_v35, %v4614_v42  ;;  %v11784_v25 = vadd.f32 %v9015_v8, %v11113_v31  ;;  %v4615_v13 = vadd.f32 %v9143_v3, %v11621_v28  ;;  %v4446_v30 = vpop.f32.mrb[107].mxu0  ;;  %5032 = vrot.lane.b32.xlu1 %v4874_v14, %s9505_s1  ;;  %v3832_v0 = vpop.f32.mrb[251].mxu1  ;;  %v9336_v31 = vld [vmem:[%s12430_s6 + $0x108] sm:$0xff]   ;;  %v9338_v42 = vld [vmem:[%s12430_s6 + $0x110] sm:$0xff]  }
 0x3b5   :  { %v4717_v24 = vadd.f32 %v11646_v35, %v4612_v19  ;;  %v4613_v39 = vadd.f32 %v4446_v30, %v11581_v33  ;;  %v11791_v52 = vadd.f32 %v3832_v0, %v11094_v49  ;;  %6757 = vmatmul.mubr.bf16.vlgmr.msra.gmra.mrb[4].mxu1 %v11680_v60  ;;  %v9337_v49 = vld [vmem:[%s12430_s6 + $0x150] sm:$0xff]  }
 0x3b6   :  { %v4720_v55 = vadd.f32 %v11646_v35, %v4615_v13  ;;  %v4937_v20 = vpop.permute.xlu1 %4936  ;;  %8221 = vmatpush3.bf16.msra.mxu1 %v9334_v45  ;;  %6797 = vmatprep.mubr.bf16.mxu1 %v4932_v10  ;;  %v4817_v33 = vmax.f32 %v4719_v47, 0.0  ;;  %v9417_v13 = vld [vmem:[%s12430_s6 + $0x540] sm:$0xff]  }
 0x3b7   :  { %v4718_v28 = vadd.f32 %v11646_v35, %v4613_v39  ;;  %v11801_v38 = vsel %vm4889_vm2, %v11375_v50, %v4937_v20  ;;  %8222 = vmatprep.subr.bf16.mxu1 %v9335_v5  ;;  %v4815_v10 = vmax.f32 %v4717_v24, 0.0  ;;  %8396 = vmatprep.subr.bf16.mxu0 %v9417_v13 }
 0x3b8   :  { %v4818_v60 = vmax.f32 %v4720_v55, 0.0  ;;  %5016 = vrot.lane.b32.xlu1 %v11685_v26, %s9505_s1 }
 0x3b9   :  { %v4816_v57 = vmax.f32 %v4718_v28, 0.0  ;;  %v9018_v54 = vpop.f32.mrb[252].mxu1  ;;  %v9146_v22 = vpop.f32.mrb[108].mxu0 }
 0x3ba   :  { %v4618_v23 = vadd.f32 %v9146_v22, %v11637_v7  ;;  %v3845_v44 = vpop.f32.mrb[253].mxu1  ;;  %v4459_v2 = vpop.f32.mrb[109].mxu0  ;;  %v4876_v50 = vpack.c.bf16 %v4818_v60, %v4817_v33  ;;  %8223 = vmatpush3.bf16.msra.mxu1 %v9336_v31  ;;  %v9341_v7 = vld [vmem:[%s12430_s6 + $0x158] sm:$0xff]  }
 0x3bb   :  { %v11812_v6 = vpack.c.bf16 %v4816_v57, %v4815_v10  ;;  %v11815_v59 = vadd.f32 %v3845_v44, %v11104_v48  ;;  %v4616_v26 = vadd.f32 %v4459_v2, %v11596_v4  ;;  %v9019_v14 = vpop.f32.mrb[254].mxu1  ;;  %v9147_v45 = vpop.f32.mrb[110].mxu0  ;;  %8224 = vmatprep.subr.bf16.mxu1 %v9337_v49  ;;  %v9344_v49 = vld [vmem:[%s12430_s6 + $0x120] sm:$0xff]   ;;  %v9347_v2 = vld [vmem:[%s12430_s6 + $0x170] sm:$0xff]  }
 0x3bc   :  { %v4723_v19 = vadd.f32 %v11646_v35, %v4618_v23  ;;  %v4619_v8 = vadd.f32 %v9147_v45, %v11652_v29  ;;  %v4462_v3 = vpop.f32.mrb[111].mxu0  ;;  %5040 = vrot.lane.b32.xlu0 %v4876_v50, %s9505_s1  ;;  %v3848_v5 = vpop.f32.mrb[255].mxu1  ;;  %v9342_v29 = vld [vmem:[%s12430_s6 + $0x118] sm:$0xff]   ;;  %v9346_v23 = vld [vmem:[%s12430_s6 + $0x128] sm:$0xff]  }
 0x3bd   :  { %v4721_v48 = vadd.f32 %v11646_v35, %v4616_v26  ;;  %v4617_v47 = vadd.f32 %v4462_v3, %v11615_v36  ;;  %v11827_v4 = vadd.f32 %v3848_v5, %v11110_v61  ;;  %v9343_v36 = vld [vmem:[%s12430_s6 + $0x160] sm:$0xff]   ;;  %v9349_v5 = vld [vmem:[%s12430_s6 + $0x178] sm:$0xff]  }
 0x3be   :  { %v4724_v30 = vadd.f32 %v11646_v35, %v4619_v8  ;;  %8225 = vmatpush3.bf16.msra.mxu1 %v9338_v42  ;;  %v4821_v61 = vmax.f32 %v4723_v19, 0.0  ;;  %v9348_v19 = vld [vmem:[%s12430_s6 + $0x130] sm:$0xff]  }
 0x3bf   :  { %v4722_v0 = vadd.f32 %v11646_v35, %v4617_v47  ;;  %8226 = vmatprep.subr.bf16.mxu1 %v9341_v7  ;;  %v4819_v39 = vmax.f32 %v4721_v48, 0.0 }
 0x3c0   :  { %v4822_v24 = vmax.f32 %v4724_v30, 0.0  ;;  %5024 = vrot.lane.b32.xlu0 %v11725_v34, %s9505_s1  ;;  %v9345_v34 = vld [vmem:[%s12430_s6 + $0x168] sm:$0xff]  }
 0x3c1   :  { %v4820_v55 = vmax.f32 %v4722_v0, 0.0  ;;  %v9150_v20 = vpop.f32.mrb[112].mxu0 }
 0x3c2   :  { %v4620_v31 = vadd.f32 %v9150_v20, %v11689_v11  ;;  %v4475_v28 = vpop.f32.mrb[113].mxu0  ;;  %8227 = vmatpush3.bf16.msra.mxu1 %v9342_v29  ;;  %v11846_v33 = vpack.c.bf16 %v4822_v24, %v4821_v61 }
 0x3c3   :  { %v11848_v60 = vpack.c.bf16 %v4820_v55, %v4819_v39  ;;  %v9151_v10 = vpop.f32.mrb[114].mxu0  ;;  %8228 = vmatprep.subr.bf16.mxu1 %v9343_v36 }
 0x3c4   :  { %v4725_v57 = vadd.f32 %v11646_v35, %v4620_v31  ;;  %v4621_v11 = vadd.f32 %v9151_v10, %v11700_v46  ;;  %v4477_v54 = vpop.f32.mrb[115].mxu0 }
 0x3c6   :  { %v4726_v22 = vadd.f32 %v11646_v35, %v4621_v11  ;;  %8229 = vmatpush3.bf16.msra.mxu1 %v9344_v49  ;;  %v4823_v50 = vmax.f32 %v4725_v57, 0.0  ;;  %v9352_v49 = vld [vmem:[%s12430_s6 + $0x180] sm:$0xff]  }
 0x3c7   :  { %v4945_v44 = vpop.permute.xlu0 %4944  ;;  %8230 = vmatprep.subr.bf16.mxu1 %v9345_v34 }
 0x3c8   :  { %v4824_v42 = vmax.f32 %v4726_v22, 0.0  ;;  %v4948_v26 = vsel %vm4889_vm2, %v11390_v41, %v4945_v44  ;;  %v9354_v44 = vld [vmem:[%s12430_s6 + $0x188] sm:$0xff]  }
 0x3c9   :  { %v9154_v46 = vpop.f32.mrb[116].mxu0 }
 0x3ca   :  { %v11864_v14 = vpack.c.bf16 %v4824_v42, %v4823_v50  ;;  %v4624_v45 = vadd.f32 %v9154_v46, %v11728_v16  ;;  %v4489_v7 = vpop.f32.mrb[117].mxu0  ;;  %8231 = vmatpush3.bf16.msra.mxu1 %v9346_v23 }
 0x3cb   :  { %v4622_v8 = vadd.f32 %v4489_v7, %v11672_v40  ;;  %v9155_v3 = vpop.f32.mrb[118].mxu0  ;;  %8232 = vmatprep.subr.bf16.mxu1 %v9347_v2  ;;  %v9350_v40 = vld [vmem:[%s12430_s6 + $0x138] sm:$0xff]  }
 0x3cc   :  { %v4729_v41 = vadd.f32 %v11646_v35, %v4624_v45  ;;  %v4625_v48 = vadd.f32 %v9155_v3, %v11744_v63  ;;  %v4492_v47 = vpop.f32.mrb[119].mxu0  ;;  %v9351_v63 = vld [vmem:[%s12430_s6 + $0x1c0] sm:$0xff]   ;;  %v9356_v3 = vld [vmem:[%s12430_s6 + $0x190] sm:$0xff]  }
 0x3cd   :  { %v4727_v16 = vadd.f32 %v11646_v35, %v4622_v8  ;;  %v4623_v13 = vadd.f32 %v4492_v47, %v11693_v56 }
 0x3ce   :  { %v4730_v30 = vadd.f32 %v11646_v35, %v4625_v48  ;;  %8233 = vmatpush3.bf16.msra.mxu1 %v9348_v19  ;;  %v4827_v36 = vmax.f32 %v4729_v41, 0.0 }
 0x3cf   :  { %v4728_v29 = vadd.f32 %v11646_v35, %v4623_v13  ;;  %v4953_v0 = vpop.permute.xlu1 %4952  ;;  %8234 = vmatprep.subr.bf16.mxu1 %v9349_v5  ;;  %v4825_v24 = vmax.f32 %v4727_v16, 0.0 }
 0x3d0   :  { %v4828_v61 = vmax.f32 %v4730_v30, 0.0  ;;  %v11888_v56 = vsel %vm4889_vm2, %v11418_v62, %v4953_v0  ;;  %v9353_v62 = vld [vmem:[%s12430_s6 + $0x1c8] sm:$0xff]  }
 0x3d1   :  { %v4826_v39 = vmax.f32 %v4728_v29, 0.0  ;;  %v9158_v55 = vpop.f32.mrb[120].mxu0  ;;  %v9360_v29 = vld [vmem:[%s12430_s6 + $0x198] sm:$0xff]  }
 0x3d2   :  { %v11890_v20 = vpack.c.bf16 %v4828_v61, %v4827_v36  ;;  %v4628_v31 = vadd.f32 %v9158_v55, %v11776_v37  ;;  %v4505_v28 = vpop.f32.mrb[121].mxu0  ;;  %8235 = vmatpush3.bf16.msra.mxu1 %v9350_v40  ;;  %v9363_v55 = vld [vmem:[%s12430_s6 + $0x1e8] sm:$0xff]  }
 0x3d3   :  { %v4626_v10 = vadd.f32 %v4505_v28, %v11719_v15  ;;  %v9159_v34 = vpop.f32.mrb[122].mxu0  ;;  %8242 = vmatprep.subr.bf16.mxu1 %v9351_v63  ;;  %v11900_v57 = vpack.c.bf16 %v4826_v39, %v4825_v24  ;;  %v12691_v28 = vld [vmem:[#allocation27_spill] sm:$0xff] }
 0x3d4   :  { %v4733_v11 = vadd.f32 %v11646_v35, %v4628_v31  ;;  %v4629_v37 = vadd.f32 %v9159_v34, %v11791_v52  ;;  %v4508_v54 = vpop.f32.mrb[123].mxu0  ;;  %v9355_v52 = vld [vmem:[%s12430_s6 + $0x1d0] sm:$0xff]  }
 0x3d5   :  { %v4731_v22 = vadd.f32 %v11646_v35, %v4626_v10  ;;  %v4627_v23 = vadd.f32 %v4508_v54, %v11736_v51  ;;  %6798 = vmatmul.mubr.bf16.vlgmr.msra.gmra.mrb[8].mxu1 %v11707_v1  ;;  %v9365_v10 = vld [vmem:[%s12430_s6 + $0x1f0] sm:$0xff]  }
 0x3d6   :  { %v4734_v15 = vadd.f32 %v11646_v35, %v4629_v37  ;;  %8243 = vmatpush3.bf16.msra.mxu1 %v9352_v49  ;;  %6838 = vmatprep.mubr.bf16.mxu1 %v4948_v26  ;;  %v4831_v42 = vmax.f32 %v4733_v11, 0.0  ;;  %v9366_v34 = vld [vmem:[%s12430_s6 + $0x1b0] sm:$0xff]   ;;  %v9368_v37 = vld [vmem:[%s12430_s6 + $0x1b8] sm:$0xff]  }
 0x3d7   :  { %v4732_v2 = vadd.f32 %v11646_v35, %v4627_v23  ;;  %v4961_v50 = vpop.permute.xlu0 %4960  ;;  %8244 = vmatprep.subr.bf16.mxu1 %v9353_v62  ;;  %v4829_v46 = vmax.f32 %v4731_v22, 0.0  ;;  %v9367_v62 = vld [vmem:[%s12430_s6 + $0x1f8] sm:$0xff]   ;;  %v9370_v22 = vld [vmem:[%s12430_s6 + $0x200] sm:$0xff]   ;;  %v9371_v23 = vld [vmem:[%s12430_s6 + $0x248] sm:$0xff]  }
 0x3d8   :  { %v4832_v51 = vmax.f32 %v4734_v15, 0.0  ;;  %v11917_v1 = vsel %vm4889_vm2, %v11441_v53, %v4961_v50  ;;  %v9359_v53 = vld [vmem:[%s12430_s6 + $0x1d8] sm:$0xff]  }
 0x3d9   :  { %v4830_v26 = vmax.f32 %v4732_v2, 0.0  ;;  %v9162_v45 = vpop.f32.mrb[124].mxu0  ;;  %v9373_v2 = vld [vmem:[%s12430_s6 + $0x250] sm:$0xff]   ;;  %v9377_v50 = vld [vmem:[%s12430_s6 + $0x258] sm:$0xff]  }
 0x3da   :  { %v11919_v7 = vpack.c.bf16 %v4832_v51, %v4831_v42  ;;  %v4632_v19 = vadd.f32 %v9162_v45, %v11815_v59  ;;  %v4521_v8 = vpop.f32.mrb[125].mxu0  ;;  %8245 = vmatpush3.bf16.msra.mxu1 %v9354_v44  ;;  %v9380_v42 = vld [vmem:[%s12430_s6 + $0x220] sm:$0xff]   ;;  %v9381_v51 = vld [vmem:[%s12430_s6 + $0x268] sm:$0xff]  }
 0x3db   :  { %v4630_v5 = vadd.f32 %v4521_v8, %v11767_v58  ;;  %v9163_v41 = vpop.f32.mrb[126].mxu0  ;;  %v4882_v48 = vpack.c.bf16 %v4830_v26, %v4829_v46  ;;  %8246 = vmatprep.subr.bf16.mxu1 %v9355_v52  ;;  %v9379_v52 = vld [vmem:[%s12430_s6 + $0x260] sm:$0xff]   ;;  %v9383_v26 = vld [vmem:[%s12430_s6 + $0x270] sm:$0xff]   ;;  %v9385_v8 = vld [vmem:[%s12430_s6 + $0x278] sm:$0xff]  }
 0x3dc   :  { %v4737_v47 = vadd.f32 %v11646_v35, %v4632_v19  ;;  %v4633_v16 = vadd.f32 %v9163_v41, %v11827_v4  ;;  %v4524_v59 = vpop.f32.mrb[127].mxu0  ;;  %v9384_v19 = vld [vmem:[%s12430_s6 + $0x230] sm:$0xff]  }
 0x3dd   :  { %v4735_v13 = vadd.f32 %v11646_v35, %v4630_v5  ;;  %v4631_v30 = vadd.f32 %v4524_v59, %v11784_v25  ;;  %5064 = vrot.lane.b32.xlu1 %v4882_v48, %s9505_s1  ;;  %v9361_v25 = vld [vmem:[%s12430_s6 + $0x1e0] sm:$0xff]   ;;  %v9396_v59 = vld [vmem:[%s12430_s6 + $0x298] sm:$0xff]  }
 0x3de   :  { %v4738_v58 = vadd.f32 %v11646_v35, %v4633_v16  ;;  %v4969_v40 = vpop.permute.xlu1 %4968  ;;  %8247 = vmatpush3.bf16.msra.mxu1 %v9356_v3  ;;  %v4835_v63 = vmax.f32 %v4737_v47, 0.0  ;;  %v9386_v3 = vld [vmem:[%s12430_s6 + $0x238] sm:$0xff]   ;;  %v9388_v48 = vld [vmem:[%s12430_s6 + $0x280] sm:$0xff]   ;;  %v9390_v47 = vld [vmem:[%s12430_s6 + $0x288] sm:$0xff]  }
 0x3df   :  { %v4736_v0 = vadd.f32 %v11646_v35, %v4631_v30  ;;  %v11941_v4 = vsel %vm4889_vm2, %v11458_v32, %v4969_v40  ;;  %8248 = vmatprep.subr.bf16.mxu1 %v9359_v53  ;;  %v4833_v61 = vmax.f32 %v4735_v13, 0.0  ;;  %v9362_v35 = vld [vmem:[%s12430_s6 + $0x1a0] sm:$0xff]   ;;  %v9389_v53 = vld [vmem:[%s12430_s6 + $0x2c8] sm:$0xff]   ;;  %v9392_v16 = vld [vmem:[%s12430_s6 + $0x290] sm:$0xff]  }
 0x3e0   :  { %v4836_v36 = vmax.f32 %v4738_v58, 0.0  ;;  %v9397_v13 = vld [vmem:[%s12430_s6 + $0x2e0] sm:$0xff]   ;;  %v9399_v58 = vld [vmem:[%s12430_s6 + $0x2e8] sm:$0xff]  }
 0x3e1   :  { %v4834_v24 = vmax.f32 %v4736_v0, 0.0  ;;  %5048 = vrot.lane.b32.xlu1 %v11846_v33, %s9505_s1  ;;  %v9364_v33 = vld [vmem:[%s12430_s6 + $0x1a8] sm:$0xff]   ;;  %v9398_v30 = vld [vmem:[%s12430_s6 + $0x2a0] sm:$0xff]  }
 0x3e2   :  { %v4885_v39 = vpack.c.bf16 %v4836_v36, %v4835_v63  ;;  %8249 = vmatpush3.bf16.msra.mxu1 %v9360_v29  ;;  %v9400_v29 = vld [vmem:[%s12430_s6 + $0x2a8] sm:$0xff]   ;;  %v9404_v36 = vld [vmem:[%s12430_s6 + $0x2b0] sm:$0xff]  }
 0x3e3   :  { %v4884_v32 = vpack.c.bf16 %v4834_v24, %v4833_v61  ;;  %8250 = vmatprep.subr.bf16.mxu1 %v9361_v25  ;;  %v9403_v25 = vld [vmem:[%s12430_s6 + $0x2f0] sm:$0xff]  }
 0x3e4   :  { %5079 = vst.msk [vmem:[#allocation2 + $0xc0] sm:$0xff] %vm4889_vm2, %v4885_v39  ;;  %v9408_v39 = vld [vmem:[%s12430_s6 + $0x2b8] sm:$0xff]  }
 0x3e5   :  { %5072 = vrot.lane.b32.xlu0 %v4884_v32, %s9505_s1 }
 0x3e6   :  { %v4977_v31 = vpop.permute.xlu0 %4976  ;;  %8251 = vmatpush3.bf16.msra.mxu1 %v9362_v35 }
 0x3e7   :  { %v4980_v49 = vsel %vm4889_vm2, %v12691_v28, %v4977_v31  ;;  %8252 = vmatprep.subr.bf16.mxu1 %v9363_v55  ;;  %v9412_v55 = vld [vmem:[%s12430_s6 + $0x300] sm:$0xff]   ;;  %v9421_v28 = vld [vmem:[%s12430_s6 + $0x548] sm:$0xff]  }
 0x3e9   :  { %5056 = vrot.lane.b32.xlu0 %v11900_v57, %s9505_s1  ;;  %v9369_v57 = vld [vmem:[%s12430_s6 + $0x240] sm:$0xff]  }
 0x3ea   :  { %8253 = vmatpush3.bf16.msra.mxu1 %v9364_v33  ;;  %v9418_v33 = vld [vmem:[%s12430_s6 + $0x500] sm:$0xff]  }
 0x3eb   :  { %8254 = vmatprep.subr.bf16.mxu1 %v9365_v10  ;;  %v9422_v10 = vld [vmem:[%s12430_s6 + $0x508] sm:$0xff]  }
 0x3ee   :  { %v4985_v11 = vpop.permute.xlu1 %4984  ;;  %8255 = vmatpush3.bf16.msra.mxu1 %v9366_v34  ;;  %v9416_v34 = vld [vmem:[%s12430_s6 + $0x310] sm:$0xff]  }
 0x3ef   :  { %v11977_v54 = vsel %vm4889_vm2, %v11528_v12, %v4985_v11  ;;  %8256 = vmatprep.subr.bf16.mxu1 %v9367_v62  ;;  %v9372_v12 = vld [vmem:[%s12430_s6 + $0x208] sm:$0xff]   ;;  %v9419_v62 = vld [vmem:[%s12430_s6 + $0x358] sm:$0xff]   ;;  %v9426_v11 = vld [vmem:[%s12430_s6 + $0x510] sm:$0xff]  }
 0x3f2   :  { %8257 = vmatpush3.bf16.msra.mxu1 %v9368_v37  ;;  %v9429_v37 = vld [vmem:[%s12430_s6 + $0x558] sm:$0xff]  }
 0x3f3   :  { %8264 = vmatprep.subr.bf16.mxu1 %v9369_v57  ;;  %v9420_v57 = vld [vmem:[%s12430_s6 + $0x318] sm:$0xff]  }
 0x3f5   :  { %6839 = vmatmul.mubr.bf16.vlgmr.msra.gmra.mrb[12].mxu1 %v11801_v38  ;;  %v9374_v38 = vld [vmem:[%s12430_s6 + $0x210] sm:$0xff]  }
 0x3f6   :  { %v4993_v15 = vpop.permute.xlu0 %4992  ;;  %8265 = vmatpush3.bf16.msra.mxu1 %v9370_v22  ;;  %6879 = vmatprep.mubr.bf16.mxu1 %v11917_v1  ;;  %v9382_v1 = vld [vmem:[%s12430_s6 + $0x228] sm:$0xff]   ;;  %v9423_v22 = vld [vmem:[%s12430_s6 + $0x360] sm:$0xff]  }
 0x3f7   :  { %v11995_v44 = vsel %vm4889_vm2, %v11554_v21, %v4993_v15  ;;  %8266 = vmatprep.subr.bf16.mxu1 %v9371_v23  ;;  %v9378_v21 = vld [vmem:[%s12430_s6 + $0x218] sm:$0xff]   ;;  %v9433_v15 = vld [vmem:[%s12430_s6 + $0x560] sm:$0xff]  }
 0x3f8   :  { %v9430_v23 = vld [vmem:[%s12430_s6 + $0x518] sm:$0xff]  }
 0x3fa   :  { %8267 = vmatpush3.bf16.msra.mxu1 %v9372_v12  ;;  %v9424_v12 = vld [vmem:[%s12430_s6 + $0x320] sm:$0xff]  }
 0x3fb   :  { %8268 = vmatprep.subr.bf16.mxu1 %v9373_v2  ;;  %v9434_v2 = vld [vmem:[%s12430_s6 + $0x520] sm:$0xff]  }
 0x3fe   :  { %8269 = vmatpush3.bf16.msra.mxu1 %v9374_v38  ;;  %v9437_v38 = vld [vmem:[%s12430_s6 + $0x568] sm:$0xff]  }
 0x3ff   :  { %8270 = vmatprep.subr.bf16.mxu1 %v9377_v50  ;;  %v9428_v50 = vld [vmem:[%s12430_s6 + $0x328] sm:$0xff]  }
 0x402   :  { %8271 = vmatpush3.bf16.msra.mxu1 %v9378_v21  ;;  %v9431_v21 = vld [vmem:[%s12430_s6 + $0x370] sm:$0xff]  }
 0x403   :  { %8272 = vmatprep.subr.bf16.mxu1 %v9379_v52  ;;  %v9438_v52 = vld [vmem:[%s12430_s6 + $0x528] sm:$0xff]  }
 0x406   :  { %8273 = vmatpush3.bf16.msra.mxu1 %v9380_v42  ;;  %v9441_v42 = vld [vmem:[%s12430_s6 + $0x570] sm:$0xff]  }
 0x407   :  { %v5001_v46 = vpop.permute.xlu1 %5000  ;;  %8274 = vmatprep.subr.bf16.mxu1 %v9381_v51  ;;  %v9432_v51 = vld [vmem:[%s12430_s6 + $0x330] sm:$0xff]  }
 0x408   :  { %v12026_v45 = vsel %vm4889_vm2, %v11569_v27, %v5001_v46  ;;  %v9387_v27 = vld [vmem:[%s12430_s6 + $0x2c0] sm:$0xff]   ;;  %v9442_v46 = vld [vmem:[%s12430_s6 + $0x530] sm:$0xff]  }
 0x40a   :  { %8275 = vmatpush3.bf16.msra.mxu1 %v9382_v1  ;;  %v9435_v1 = vld [vmem:[%s12430_s6 + $0x378] sm:$0xff]  }
 0x40b   :  { %8276 = vmatprep.subr.bf16.mxu1 %v9383_v26  ;;  %v9445_v26 = vld [vmem:[%s12430_s6 + $0x578] sm:$0xff]  }
 0x40e   :  { %8277 = vmatpush3.bf16.msra.mxu1 %v9384_v19  ;;  %v9436_v19 = vld [vmem:[%s12430_s6 + $0x338] sm:$0xff]  }
 0x40f   :  { %v5009_v5 = vpop.permute.xlu0 %5008  ;;  %8278 = vmatprep.subr.bf16.mxu1 %v9385_v8 }
 0x410   :  { %v12042_v41 = vsel %vm4889_vm2, %v11593_v43, %v5009_v5  ;;  %v9391_v43 = vld [vmem:[%s12430_s6 + $0x2d0] sm:$0xff]   ;;  %v9446_v5 = vld [vmem:[%s12430_s6 + $0x538] sm:$0xff]  }
 0x412   :  { %8279 = vmatpush3.bf16.msra.mxu1 %v9386_v3  ;;  %v9439_v3 = vld [vmem:[%s12430_s6 + $0x3c0] sm:$0xff]  }
 0x413   :  { %8286 = vmatprep.subr.bf16.mxu1 %v9387_v27 }
 0x415   :  { %6880 = vmatmul.mubr.bf16.vlgmr.msra.gmra.mrb[16].mxu1 %v11888_v56  ;;  %v9395_v56 = vld [vmem:[%s12430_s6 + $0x2d8] sm:$0xff]  }
 0x416   :  { %8287 = vmatpush3.bf16.msra.mxu1 %v9388_v48  ;;  %6920 = vmatprep.mubr.bf16.mxu1 %v4980_v49  ;;  %v9415_v49 = vld [vmem:[%s12430_s6 + $0x350] sm:$0xff]   ;;  %v9440_v48 = vld [vmem:[%s12430_s6 + $0x380] sm:$0xff]  }
 0x417   :  { %8288 = vmatprep.subr.bf16.mxu1 %v9389_v53 }
 0x41a   :  { %8289 = vmatpush3.bf16.msra.mxu1 %v9390_v47  ;;  %v9443_v47 = vld [vmem:[%s12430_s6 + $0x3c8] sm:$0xff]  }
 0x41b   :  { %8290 = vmatprep.subr.bf16.mxu1 %v9391_v43 }
 0x41e   :  { %8291 = vmatpush3.bf16.msra.mxu1 %v9392_v16  ;;  %v9506_v16 = vmov 0.0  }
 0x41f   :  { %8292 = vmatprep.subr.bf16.mxu1 %v9395_v56 }
 0x422   :  { %8293 = vmatpush3.bf16.msra.mxu1 %v9396_v59  ;;  %v9447_v59 = vld [vmem:[%s12430_s6 + $0x3d0] sm:$0xff]  }
 0x423   :  { %8294 = vmatprep.subr.bf16.mxu1 %v9397_v13  ;;  %v9449_v13 = vld [vmem:[%s12430_s6 + $0x3d8] sm:$0xff]  }
 0x426   :  { %v5033_v40 = vpop.permute.xlu1 %5032  ;;  %8295 = vmatpush3.bf16.msra.mxu1 %v9398_v30 }
 0x427   :  { %v12080_v0 = vsel %vm4889_vm2, %v11773_v18, %v5033_v40  ;;  %8296 = vmatprep.subr.bf16.mxu1 %v9399_v58  ;;  %v9407_v18 = vld [vmem:[%s12430_s6 + $0x2f8] sm:$0xff]   ;;  %v9451_v58 = vld [vmem:[%s12430_s6 + $0x3e0] sm:$0xff]   ;;  %v9453_v40 = vld [vmem:[%s12430_s6 + $0x3e8] sm:$0xff]  }
 0x42a   :  { %v5017_v63 = vpop.permute.xlu1 %5016  ;;  %8297 = vmatpush3.bf16.msra.mxu1 %v9400_v29  ;;  %v9454_v29 = vld [vmem:[%s12430_s6 + $0x3a8] sm:$0xff]  }
 0x42b   :  { %v5020_v61 = vsel %vm4889_vm2, %v11630_v9, %v5017_v63  ;;  %8298 = vmatprep.subr.bf16.mxu1 %v9403_v25  ;;  %v9411_v9 = vld [vmem:[%s12430_s6 + $0x340] sm:$0xff]   ;;  %v9455_v25 = vld [vmem:[%s12430_s6 + $0x3f0] sm:$0xff]  }
 0x42e   :  { %v5041_v24 = vpop.permute.xlu0 %5040  ;;  %8299 = vmatpush3.bf16.msra.mxu1 %v9404_v36 }
 0x42f   :  { %v12098_v35 = vsel %vm4889_vm2, %v11812_v6, %v5041_v24  ;;  %8300 = vmatprep.subr.bf16.mxu1 %v9407_v18  ;;  %v9413_v6 = vld [vmem:[%s12430_s6 + $0x348] sm:$0xff]   ;;  %v9456_v24 = vld [vmem:[%s12430_s6 + $0x3b0] sm:$0xff]  }
 0x432   :  { %v5025_v32 = vpop.permute.xlu0 %5024  ;;  %8301 = vmatpush3.bf16.msra.mxu1 %v9408_v39 }
 0x433   :  { %v5028_v31 = vsel %vm4889_vm2, %v11669_v17, %v5025_v32  ;;  %8308 = vmatprep.subr.bf16.mxu1 %v9411_v9  ;;  %v9414_v17 = vld [vmem:[%s12430_s6 + $0x308] sm:$0xff]   ;;  %v9457_v9 = vld [vmem:[%s12430_s6 + $0x3f8] sm:$0xff]  }
 0x434   :  { %7043 = vmatprep.mubr.bf16.mxu0 %v5028_v31  ;;  %v9459_v31 = vld [vmem:[%s12430_s6 + $0x4c0] sm:$0xff]  }
 0x435   :  { %6921 = vmatmul.mubr.bf16.vlgmr.msra.gmra.mrb[20].mxu1 %v11941_v4  ;;  %7044 = vmatmul.mubr.bf16.vlgmr.msra.gmra.mrb[128].mxu0 %v5020_v61  ;;  %v9425_v4 = vld [vmem:[%s12430_s6 + $0x550] sm:$0xff]  }
 0x436   :  { %8309 = vmatpush3.bf16.msra.mxu1 %v9412_v55  ;;  %6961 = vmatprep.mubr.bf16.mxu1 %v11995_v44  ;;  %v9427_v44 = vld [vmem:[%s12430_s6 + $0x368] sm:$0xff]   ;;  %v9458_v55 = vld [vmem:[%s12430_s6 + $0x3b8] sm:$0xff]  }
 0x437   :  { %8310 = vmatprep.subr.bf16.mxu1 %v9413_v6  ;;  %8397 = vmatpush3.bf16.msra.mxu0 %v9418_v33  ;;  %v9460_v6 = vld [vmem:[%s12430_s6 + $0x480] sm:$0xff]   ;;  %v9461_v33 = vld [vmem:[%s12430_s6 + $0x4c8] sm:$0xff]  }
 0x438   :  { %8398 = vmatprep.subr.bf16.mxu0 %v9421_v28  ;;  %v9462_v28 = vld [vmem:[%s12430_s6 + $0x488] sm:$0xff]  }
 0x43a   :  { %8311 = vmatpush3.bf16.msra.mxu1 %v9414_v17  ;;  %v9463_v17 = vld [vmem:[%s12430_s6 + $0x4d0] sm:$0xff]  }
 0x43b   :  { %8312 = vmatprep.subr.bf16.mxu1 %v9415_v49  ;;  %8399 = vmatpush3.bf16.msra.mxu0 %v9422_v10  ;;  %v9464_v49 = vld [vmem:[%s12430_s6 + $0x490] sm:$0xff]   ;;  %v9467_v10 = vld [vmem:[%s12430_s6 + $0x4e0] sm:$0xff]  }
 0x43c   :  { %8400 = vmatprep.subr.bf16.mxu0 %v9425_v4  ;;  %v9468_v4 = vld [vmem:[%s12430_s6 + $0x4a0] sm:$0xff]  }
 0x43e   :  { %8313 = vmatpush3.bf16.msra.mxu1 %v9416_v34  ;;  %v9469_v34 = vld [vmem:[%s12430_s6 + $0x4e8] sm:$0xff]  }
 0x43f   :  { %8314 = vmatprep.subr.bf16.mxu1 %v9419_v62  ;;  %8401 = vmatpush3.bf16.msra.mxu0 %v9426_v11  ;;  %v9470_v62 = vld [vmem:[%s12430_s6 + $0x4a8] sm:$0xff]   ;;  %v7614_v11 = vld [vmem:[%s12432_s7] ss:$0 sm:$0xff] }
 0x440   :  { %8402 = vmatprep.subr.bf16.mxu0 %v9429_v37  ;;  %v9471_v37 = vld [vmem:[%s12430_s6 + $0x4f0] sm:$0xff]  }
 0x442   :  { %8315 = vmatpush3.bf16.msra.mxu1 %v9420_v57 }
 0x443   :  { %8316 = vmatprep.subr.bf16.mxu1 %v9423_v22  ;;  %8403 = vmatpush3.bf16.msra.mxu0 %v9430_v23 }
 0x444   :  { %8404 = vmatprep.subr.bf16.mxu0 %v9433_v15 }
 0x446   :  { %8317 = vmatpush3.bf16.msra.mxu1 %v9424_v12 }
 0x447   :  { %8318 = vmatprep.subr.bf16.mxu1 %v9427_v44  ;;  %8405 = vmatpush3.bf16.msra.mxu0 %v9434_v2  ;;  %v9472_v44 = vld [vmem:[%s12430_s6 + $0x4b0] sm:$0xff]  }
 0x448   :  { %8406 = vmatprep.subr.bf16.mxu0 %v9437_v38  ;;  %v9473_v38 = vld [vmem:[%s12430_s6 + $0x4f8] sm:$0xff]  }
 0x44a   :  { %8319 = vmatpush3.bf16.msra.mxu1 %v9428_v50 }
 0x44b   :  { %8320 = vmatprep.subr.bf16.mxu1 %v9431_v21  ;;  %8407 = vmatpush3.bf16.msra.mxu0 %v9438_v52 }
 0x44c   :  { %8408 = vmatprep.subr.bf16.mxu0 %v9441_v42 }
 0x44e   :  { %8321 = vmatpush3.bf16.msra.mxu1 %v9432_v51  ;;  %v9474_v51 = vld [vmem:[%s12430_s6 + $0x4b8] sm:$0xff]  }
 0x44f   :  { %v5065_v8 = vpop.permute.xlu1 %5064  ;;  %8322 = vmatprep.subr.bf16.mxu1 %v9435_v1  ;;  %8409 = vmatpush3.bf16.msra.mxu0 %v9442_v46  ;;  %v9475_v1 = vld [vmem:[%s12430_s6 + $0x5c0] sm:$0xff]  }
 0x450   :  { %v12202_v27 = vsel %vm4889_vm2, %v11890_v20, %v5065_v8  ;;  %8410 = vmatprep.subr.bf16.mxu0 %v9445_v26  ;;  %v9444_v20 = vld [vmem:[%s12430_s6 + $0x388] sm:$0xff]   ;;  %v9476_v46 = vld [vmem:[%s12430_s6 + $0x580] sm:$0xff]   ;;  %v9479_v8 = vld [vmem:[%s12430_s6 + $0x5d0] sm:$0xff]  }
 0x451   :  { %v9477_v26 = vld [vmem:[%s12430_s6 + $0x5c8] sm:$0xff]  }
 0x452   :  { %8323 = vmatpush3.bf16.msra.mxu1 %v9436_v19  ;;  %v9478_v19 = vld [vmem:[%s12430_s6 + $0x588] sm:$0xff]  }
 0x453   :  { %v5049_v53 = vpop.permute.xlu1 %5048  ;;  %8330 = vmatprep.subr.bf16.mxu1 %v9439_v3  ;;  %8411 = vmatpush3.bf16.msra.mxu0 %v9446_v5  ;;  %v9480_v3 = vld [vmem:[%s12430_s6 + $0x590] sm:$0xff]   ;;  %v9482_v5 = vld [vmem:[%s12430_s6 + $0x598] sm:$0xff]  }
 0x454   :  { %v5052_v43 = vsel %vm4889_vm2, %v11848_v60, %v5049_v53  ;;  %9176 = vmatprep.subr.bf16.mxu0 %v9506_v16  ;;  %v9484_v53 = vld [vmem:[%s12430_s6 + $0x5a0] sm:$0xff]  }
 0x455   :  { %6962 = vmatmul.mubr.bf16.vlgmr.msra.gmra.mrb[24].mxu1 %v11977_v54  ;;  %v9448_v54 = vld [vmem:[%s12430_s6 + $0x390] sm:$0xff]  }
 0x456   :  { %8331 = vmatpush3.bf16.msra.mxu1 %v9440_v48  ;;  %7002 = vmatprep.mubr.bf16.mxu1 %v12042_v41  ;;  %v9483_v48 = vld [vmem:[%s12430_s6 + $0x5e0] sm:$0xff]  }
 0x457   :  { %v5073_v56 = vpop.permute.xlu0 %5072  ;;  %8332 = vmatprep.subr.bf16.mxu1 %v9443_v47  ;;  %v9485_v47 = vld [vmem:[%s12430_s6 + $0x5e8] sm:$0xff]  }
 0x458   :  { %v12223_v60 = vsel %vm4889_vm2, %v11919_v7, %v5073_v56  ;;  %v9450_v7 = vld [vmem:[%s12430_s6 + $0x398] sm:$0xff]  }
 0x45a   :  { %8333 = vmatpush3.bf16.msra.mxu1 %v9444_v20  ;;  %v9487_v20 = vld [vmem:[%s12430_s6 + $0x5f0] sm:$0xff]  }
 0x45b   :  { %v5057_v41 = vpop.permute.xlu0 %5056  ;;  %8334 = vmatprep.subr.bf16.mxu1 %v9447_v59 }
 0x45c   :  { %v5060_v30 = vsel %vm4889_vm2, %v11864_v14, %v5057_v41  ;;  %v9452_v14 = vld [vmem:[%s12430_s6 + $0x3a0] sm:$0xff]   ;;  %v9488_v41 = vld [vmem:[%s12430_s6 + $0x5b0] sm:$0xff]  }
 0x45d   :  { %7125 = vmatprep.mubr.bf16.mxu0 %v5060_v30  ;;  %v9489_v30 = vld [vmem:[%s12430_s6 + $0x5f8] sm:$0xff]  }
 0x45e   :  { %8335 = vmatpush3.bf16.msra.mxu1 %v9448_v54  ;;  %7126 = vmatmul.mubr.bf16.vlgmr.msra.gmra.mrb[132].mxu0 %v5052_v43  ;;  %v9486_v43 = vld [vmem:[%s12430_s6 + $0x5a8] sm:$0xff]  }
 0x45f   :  { %8336 = vmatprep.subr.bf16.mxu1 %v9449_v13  ;;  %9192 = vmatprep.mubr.msk.bf16.mxu0 %vm9507_vm3, %v9506_v16 }
 0x462   :  { %8337 = vmatpush3.bf16.msra.mxu1 %v9450_v7 }
 0x463   :  { %8338 = vmatprep.subr.bf16.mxu1 %v9451_v58 }
 0x466   :  { %8339 = vmatpush3.bf16.msra.mxu1 %v9452_v14 }
 0x467   :  { %8340 = vmatprep.subr.bf16.mxu1 %v9453_v40  ;;  %v9490_v40 = vld [vmem:[%s12430_s6 + $0x5b8] sm:$0xff]  }
 0x468   :  { %v8192_v63 = vpop.f32.mrb[0].mxu1 }
 0x469   :  { %v8193_v36 = vpop.f32.mrb[1].mxu1 }
 0x46a   :  { %v8194_v61 = vadd.f32 %v8193_v36, %v8192_v63  ;;  %8341 = vmatpush3.bf16.msra.mxu1 %v9454_v29  ;;  %v8195_v18 = vpop.f32.mrb[2].mxu1  ;;  %v9491_v29 = vld [vmem:[%s12430_s6 + $0x600] sm:$0xff]   ;;  %v9493_v63 = vld [vmem:[%s12430_s6 + $0x610] sm:$0xff]  }
 0x46b   :  { %v8196_v39 = vpop.f32.mrb[3].mxu1  ;;  %8342 = vmatprep.subr.bf16.mxu1 %v9455_v25  ;;  %v9492_v25 = vld [vmem:[%s12430_s6 + $0x608] sm:$0xff]   ;;  %v5104_v36 = vld [vmem:[#allocation2 + $0xc0] sm:$0xff] }
 0x46c   :  { %v8197_v32 = vadd.f32 %v8196_v39, %v8195_v18  ;;  %v6718_v23 = vadd.f32 %v8194_v61, %v7614_v11 }
 0x46e   :  { %8343 = vmatpush3.bf16.msra.mxu1 %v9456_v24  ;;  %v6721_v50 = vadd.f32 %v8197_v32, %v7614_v11 }
 0x46f   :  { %8344 = vmatprep.subr.bf16.mxu1 %v9457_v9 }
 0x472   :  { %8345 = vmatpush3.bf16.msra.mxu1 %v9458_v55 }
 0x473   :  { %8374 = vmatprep.subr.bf16.mxu1 %v9459_v31 }
 0x475   :  { %7003 = vmatmul.mubr.bf16.vlgmr.msra.gmra.mrb[28].mxu1 %v12026_v45  ;;  %v9465_v45 = vld [vmem:[%s12430_s6 + $0x4d8] sm:$0xff]  }
 0x476   :  { %8375 = vmatpush3.bf16.msra.mxu1 %v9460_v6  ;;  %7084 = vmatprep.mubr.bf16.mxu1 %v12098_v35  ;;  %v9466_v35 = vld [vmem:[%s12430_s6 + $0x498] sm:$0xff]  }
 0x477   :  { %8376 = vmatprep.subr.bf16.mxu1 %v9461_v33 }
 0x47a   :  { %8377 = vmatpush3.bf16.msra.mxu1 %v9462_v28 }
 0x47b   :  { %8378 = vmatprep.subr.bf16.mxu1 %v9463_v17 }
 0x47e   :  { %8379 = vmatpush3.bf16.msra.mxu1 %v9464_v49 }
 0x47f   :  { %8380 = vmatprep.subr.bf16.mxu1 %v9465_v45 }
 0x482   :  { %8381 = vmatpush3.bf16.msra.mxu1 %v9466_v35 }
 0x483   :  { %8382 = vmatprep.subr.bf16.mxu1 %v9467_v10 }
 0x486   :  { %8383 = vmatpush3.bf16.msra.mxu1 %v9468_v4  ;;  %v9495_v4 = vld [vmem:[%s12433_s8] sm:$0xff]  }
 0x487   :  { %8384 = vmatprep.subr.bf16.mxu1 %v9469_v34  ;;  %v9496_v34 = vld [vmem:[%s12433_s8 + $0x8] sm:$0xff]   ;;  %9177 = vmatpush3.bf16.msra.mxu0 %v9495_v4 }
 0x488   :  { %v8214_v57 = vpop.f32.mrb[4].mxu1  ;;  %9178 = vmatprep.subr.bf16.mxu0 %v9506_v16 }
 0x489   :  { %v8215_v22 = vpop.f32.mrb[5].mxu1 }
 0x48a   :  { %v8216_v15 = vadd.f32 %v8215_v22, %v8214_v57  ;;  %v8217_v12 = vpop.f32.mrb[6].mxu1  ;;  %8385 = vmatpush3.bf16.msra.mxu1 %v9470_v62 }
 0x48b   :  { %v8218_v2 = vpop.f32.mrb[7].mxu1  ;;  %8386 = vmatprep.subr.bf16.mxu1 %v9471_v37  ;;  %9179 = vmatpush3.bf16.msra.mxu0 %v9496_v34  ;;  %v9497_v37 = vld [vmem:[%s12433_s8 + $0x10] sm:$0xff]  }
 0x48c   :  { %v6759_v21 = vadd.f32 %v8216_v15, %v6718_v23  ;;  %v8219_v52 = vadd.f32 %v8218_v2, %v8217_v12  ;;  %9180 = vmatprep.subr.bf16.mxu0 %v9506_v16 }
 0x48e   :  { %v6762_v42 = vadd.f32 %v8219_v52, %v6721_v50  ;;  %8387 = vmatpush3.bf16.msra.mxu1 %v9472_v44 }
 0x48f   :  { %8388 = vmatprep.subr.bf16.mxu1 %v9473_v38  ;;  %9181 = vmatpush3.bf16.msra.mxu0 %v9497_v37 }
 0x490   :  { %9182 = vmatprep.subr.bf16.mxu0 %v9506_v16 }
 0x492   :  { %8389 = vmatpush3.bf16.msra.mxu1 %v9474_v51 }
 0x493   :  { %8418 = vmatprep.subr.bf16.mxu1 %v9475_v1  ;;  %v9499_v1 = vld [vmem:[%s12433_s8 + $0x20] sm:$0xff]  }
 0x495   :  { %7085 = vmatmul.mubr.bf16.vlgmr.msra.gmra.mrb[32].mxu1 %v12080_v0  ;;  %v9481_v0 = vld [vmem:[%s12430_s6 + $0x5d8] sm:$0xff]  }
 0x496   :  { %8419 = vmatpush3.bf16.msra.mxu1 %v9476_v46  ;;  %7166 = vmatprep.mubr.bf16.mxu1 %v12223_v60  ;;  %v9500_v46 = vld [vmem:[%s12433_s8 + $0x28] sm:$0xff]  }
 0x497   :  { %8420 = vmatprep.subr.bf16.mxu1 %v9477_v26  ;;  %v9501_v26 = vld [vmem:[%s12433_s8 + $0x30] sm:$0xff]  }
 0x49a   :  { %8421 = vmatpush3.bf16.msra.mxu1 %v9478_v19  ;;  %v9502_v19 = vld [vmem:[%s12433_s8 + $0x38] sm:$0xff]  }
 0x49b   :  { %8422 = vmatprep.subr.bf16.mxu1 %v9479_v8 }
 0x49e   :  { %8423 = vmatpush3.bf16.msra.mxu1 %v9480_v3 }
 0x49f   :  { %8424 = vmatprep.subr.bf16.mxu1 %v9481_v0 }
 0x4a2   :  { %8425 = vmatpush3.bf16.msra.mxu1 %v9482_v5 }
 0x4a3   :  { %8426 = vmatprep.subr.bf16.mxu1 %v9483_v48 }
 0x4a6   :  { %8427 = vmatpush3.bf16.msra.mxu1 %v9484_v53 }
 0x4a7   :  { %8428 = vmatprep.subr.bf16.mxu1 %v9485_v47 }
 0x4a8   :  { %v8236_v56 = vpop.f32.mrb[8].mxu1 }
 0x4a9   :  { %v8237_v59 = vpop.f32.mrb[9].mxu1 }
 0x4aa   :  { %v8238_v60 = vadd.f32 %v8237_v59, %v8236_v56  ;;  %v8239_v54 = vpop.f32.mrb[10].mxu1  ;;  %8429 = vmatpush3.bf16.msra.mxu1 %v9486_v43 }
 0x4ab   :  { %v8240_v13 = vpop.f32.mrb[11].mxu1  ;;  %8430 = vmatprep.subr.bf16.mxu1 %v9487_v20 }
 0x4ac   :  { %v6800_v7 = vadd.f32 %v8238_v60, %v6759_v21  ;;  %v8241_v58 = vadd.f32 %v8240_v13, %v8239_v54 }
 0x4ae   :  { %v6803_v14 = vadd.f32 %v8241_v58, %v6762_v42  ;;  %8431 = vmatpush3.bf16.msra.mxu1 %v9488_v41  ;;  %v9498_v42 = vld [vmem:[%s12433_s8 + $0x18] sm:$0xff]  }
 0x4af   :  { %8432 = vmatprep.subr.bf16.mxu1 %v9489_v30  ;;  %9183 = vmatpush3.bf16.msra.mxu0 %v9498_v42 }
 0x4b0   :  { %9184 = vmatprep.subr.bf16.mxu0 %v9506_v16 }
 0x4b2   :  { %8433 = vmatpush3.bf16.msra.mxu1 %v9490_v40 }
 0x4b3   :  { %9164 = vmatprep.subr.bf16.mxu1 %v9506_v16  ;;  %9185 = vmatpush3.bf16.msra.mxu0 %v9499_v1 }
 0x4b4   :  { %9186 = vmatprep.subr.bf16.mxu0 %v9506_v16 }
 0x4b5   :  { %7167 = vmatmul.mubr.bf16.vlgmr.msra.gmra.mrb[36].mxu1 %v12202_v27  ;;  %v9494_v27 = vld [vmem:[%s12430_s6 + $0x618] sm:$0xff]  }
 0x4b6   :  { %9165 = vmatpush3.bf16.msra.mxu1 %v9491_v29  ;;  %9172 = vmatprep.mubr.msk.bf16.mxu1 %vm9507_vm3, %v9506_v16 }
 0x4b7   :  { %9166 = vmatprep.subr.bf16.mxu1 %v9506_v16  ;;  %9187 = vmatpush3.bf16.msra.mxu0 %v9500_v46 }
 0x4b8   :  { %9188 = vmatprep.subr.bf16.mxu0 %v9506_v16 }
 0x4ba   :  { %9167 = vmatpush3.bf16.msra.mxu1 %v9492_v25 }
 0x4bb   :  { %9168 = vmatprep.subr.bf16.mxu1 %v9506_v16  ;;  %9189 = vmatpush3.bf16.msra.mxu0 %v9501_v26 }
 0x4bc   :  { %9190 = vmatprep.subr.bf16.mxu0 %v9506_v16 }
 0x4be   :  { %9169 = vmatpush3.bf16.msra.mxu1 %v9493_v63 }
 0x4bf   :  { %9170 = vmatprep.subr.bf16.mxu1 %v9506_v16  ;;  %9191 = vmatpush3.bf16.msra.mxu0 %v9502_v19 }
 0x4c2   :  { %9171 = vmatpush3.bf16.msra.mxu1 %v9494_v27 }
 0x4c5   :  { %9173 = vmatmul.mubr.msk.bf16.vlgmr.msra.gmra.mrb[40].mxu1 %vm4889_vm2, %v5104_v36 }
 0x4c8   :  { %v8258_v61 = vpop.f32.mrb[12].mxu1 }
 0x4c9   :  { %v8259_v18 = vpop.f32.mrb[13].mxu1 }
 0x4ca   :  { %v8260_v24 = vadd.f32 %v8259_v18, %v8258_v61  ;;  %v8261_v39 = vpop.f32.mrb[14].mxu1 }
 0x4cb   :  { %v8262_v9 = vpop.f32.mrb[15].mxu1 }
 0x4cc   :  { %v6841_v32 = vadd.f32 %v8260_v24, %v6800_v7  ;;  %v8263_v55 = vadd.f32 %v8262_v9, %v8261_v39 }
 0x4ce   :  { %v6844_v31 = vadd.f32 %v8263_v55, %v6803_v14 }
 0x4e8   :  { %v8280_v6 = vpop.f32.mrb[16].mxu1 }
 0x4e9   :  { %v8281_v33 = vpop.f32.mrb[17].mxu1 }
 0x4ea   :  { %v8282_v28 = vadd.f32 %v8281_v33, %v8280_v6  ;;  %v8283_v17 = vpop.f32.mrb[18].mxu1 }
 0x4eb   :  { %v8284_v49 = vpop.f32.mrb[19].mxu1 }
 0x4ec   :  { %v6882_v45 = vadd.f32 %v8282_v28, %v6841_v32  ;;  %v8285_v35 = vadd.f32 %v8284_v49, %v8283_v17 }
 0x4ee   :  { %v6885_v10 = vadd.f32 %v8285_v35, %v6844_v31 }
 0x508   :  { %v8302_v62 = vpop.f32.mrb[20].mxu1  ;;  %v8368_v11 = vpop.f32.mrb[128].mxu0 }
 0x509   :  { %v8303_v57 = vpop.f32.mrb[21].mxu1  ;;  %v8369_v22 = vpop.f32.mrb[129].mxu0 }
 0x50a   :  { %v8304_v23 = vadd.f32 %v8303_v57, %v8302_v62  ;;  %v8305_v15 = vpop.f32.mrb[22].mxu1  ;;  %v8370_v12 = vadd.f32 %v8369_v22, %v8368_v11  ;;  %v8371_v44 = vpop.f32.mrb[130].mxu0 }
 0x50b   :  { %v8306_v2 = vpop.f32.mrb[23].mxu1  ;;  %v8372_v38 = vpop.f32.mrb[131].mxu0 }
 0x50c   :  { %v6923_v50 = vadd.f32 %v8304_v23, %v6882_v45  ;;  %v8307_v21 = vadd.f32 %v8306_v2, %v8305_v15  ;;  %v8373_v52 = vadd.f32 %v8372_v38, %v8371_v44 }
 0x50e   :  { %v6926_v51 = vadd.f32 %v8307_v21, %v6885_v10 }
 0x528   :  { %v8324_v8 = vpop.f32.mrb[24].mxu1 }
 0x529   :  { %v8325_v3 = vpop.f32.mrb[25].mxu1 }
 0x52a   :  { %v8326_v0 = vadd.f32 %v8325_v3, %v8324_v8  ;;  %v8327_v5 = vpop.f32.mrb[26].mxu1 }
 0x52b   :  { %v8328_v48 = vpop.f32.mrb[27].mxu1 }
 0x52c   :  { %v6964_v53 = vadd.f32 %v8326_v0, %v6923_v50  ;;  %v8329_v47 = vadd.f32 %v8328_v48, %v8327_v5 }
 0x52e   :  { %v6967_v43 = vadd.f32 %v8329_v47, %v6926_v51 }
 0x531   :  { %v8412_v20 = vpop.f32.mrb[132].mxu0 }
 0x532   :  { %v8413_v56 = vpop.f32.mrb[133].mxu0 }
 0x533   :  { %v8414_v59 = vadd.f32 %v8413_v56, %v8412_v20  ;;  %v8415_v60 = vpop.f32.mrb[134].mxu0 }
 0x534   :  { %v8416_v54 = vpop.f32.mrb[135].mxu0 }
 0x535   :  { %v8417_v41 = vadd.f32 %v8416_v54, %v8415_v60 }
 0x548   :  { %v8346_v16 = vpop.f32.mrb[28].mxu1 }
 0x549   :  { %v8347_v13 = vpop.f32.mrb[29].mxu1 }
 0x54a   :  { %v8348_v30 = vadd.f32 %v8347_v13, %v8346_v16  ;;  %v8349_v7 = vpop.f32.mrb[30].mxu1 }
 0x54b   :  { %v8350_v58 = vpop.f32.mrb[31].mxu1 }
 0x54c   :  { %v7005_v14 = vadd.f32 %v8348_v30, %v6964_v53  ;;  %v8351_v40 = vadd.f32 %v8350_v58, %v8349_v7 }
 0x54e   :  { %v7008_v29 = vadd.f32 %v8351_v40, %v6967_v43  ;;  %v7046_v25 = vadd.f32 %v8370_v12, %v7005_v14  ;;  %v7812_v12 = vld [vmem:[%s12434_s9] ss:$0 sm:$0xff] }
 0x550   :  { %v7049_v63 = vadd.f32 %v8373_v52, %v7008_v29 }
 0x568   :  { %v8390_v27 = vpop.f32.mrb[32].mxu1 }
 0x569   :  { %v8391_v36 = vpop.f32.mrb[33].mxu1 }
 0x56a   :  { %v8392_v61 = vadd.f32 %v8391_v36, %v8390_v27  ;;  %v8393_v18 = vpop.f32.mrb[34].mxu1 }
 0x56b   :  { %v8394_v24 = vpop.f32.mrb[35].mxu1 }
 0x56c   :  { %v7087_v39 = vadd.f32 %v8392_v61, %v7046_v25  ;;  %v8395_v9 = vadd.f32 %v8394_v24, %v8393_v18 }
 0x56e   :  { %v7090_v32 = vadd.f32 %v8395_v9, %v7049_v63  ;;  %v7128_v55 = vadd.f32 %v8414_v59, %v7087_v39 }
 0x570   :  { %v7131_v31 = vadd.f32 %v8417_v41, %v7090_v32 }
 0x588   :  { %v8434_v6 = vpop.f32.mrb[36].mxu1 }
 0x589   :  { %v8435_v33 = vpop.f32.mrb[37].mxu1 }
 0x58a   :  { %v8436_v28 = vadd.f32 %v8435_v33, %v8434_v6  ;;  %v8437_v17 = vpop.f32.mrb[38].mxu1 }
 0x58b   :  { %v8438_v49 = vpop.f32.mrb[39].mxu1 }
 0x58c   :  { %v8439_v45 = vadd.f32 %v8438_v49, %v8437_v17  ;;  %v7169_v35 = vadd.f32 %v8436_v28, %v7128_v55 }
 0x58e   :  { %v7172_v10 = vadd.f32 %v8439_v45, %v7131_v31 }
 0x598   :  { %v7209_v4 = vpop.f32.mrb[40].mxu1 }
 0x599   :  { %v7210_v34 = vadd.f32 %v7209_v4, %v7169_v35  ;;  %v9174_v62 = vpop.f32.mrb[41].mxu1 }
 0x59a   :  { %v7212_v11 = vpop.f32.mrb[42].mxu1 }
 0x59b   :  { %v7213_v37 = vadd.f32 %v7212_v11, %v7172_v10  ;;  %v9175_v57 = vpop.f32.mrb[43].mxu1  ;;  %v7216_v22 = vmax.f32 %v7210_v34, 0.0 }
 0x59d   :  { %v7217_v23 = vmax.f32 %v7213_v37, 0.0 }
 0x59f   :  { %v7218_v15 = vpack.c.bf16 %v7217_v23, %v7216_v22 }
 0x5a1   :  { %9193 = vmatmul.mubr.bf16.vlgmr.msra.gmra.mrb[136].mxu0 %v7218_v15 }
 0x674   :  { %v7324_v44 = vpop.f32.mrb[136].mxu0 }
 0x675   :  { %v7325_v2 = vadd.f32 %v7812_v12, %v7324_v44  ;;  %v9194_v38 = vpop.f32.mrb[137].mxu0 }
 0x676   :  { %v7327_v50 = vpop.f32.mrb[138].mxu0 }
 0x677   :  { %7331 = vst [vmem:[%s12435_s10] sm:$0xff] %v7325_v2  ;;  %v7328_v21 = vadd.f32 %v7812_v12, %v7327_v50  ;;  %v9195_v52 = vpop.f32.mrb[139].mxu0 }
 0x679   :  { %7332 = vst [vmem:[%s12435_s10 + $0x8] sm:$0xff] %v7328_v21 }

</bundles_post_ra>
